<compile_context>
chip_gen: v7x
topology: tpu7x:2x2x1
jax: 0.10.0
libtpu: 0.0.40
codegen_flags: <defaults>
</compile_context>

<pallas_src>
import functools
import math

import jax
import jax.numpy as jnp
from jax import lax
from jax.experimental import pallas as pl
from jax.experimental.pallas import tpu as pltpu

SCALE_CLAMP = math.log(1000.0 / 16.0)   # detectron2 Box2BoxTransform default

# Interior offset along the W (sublane) axis of the halo scratch. 8 keeps the big
# interior f32 store sublane-aligned; the 3x3 taps read at offsets _PAD-1.._PAD+1
# (unaligned *reads* are cheap masked loads). H only needs 1 halo row each side.
_PAD = 8


# ----------------------------- kernel helpers ------------------------------ #

def _im2col_3x3(xp_ref, H, W, C):
    """Build the (H*W, 9*C) bf16 im2col patch matrix from the halo scratch so the
    3x3 conv becomes a single large-K MXU matmul. Interior lives at rows [1:1+H],
    cols [_PAD:_PAD+W]."""
    cols = []
    for dy in range(3):
        for dx in range(3):
            tap = xp_ref[dy:dy + H, _PAD - 1 + dx:_PAD - 1 + dx + W, :]
            cols.append(tap.reshape(H * W, C))
    # TODO(synk): the dx = +-1 taps are sublane-unaligned reads; at real H*W move
    #             the shift onto the idle XLU slot with pltpu.roll of an aligned tap.
    return jnp.concatenate(cols, axis=1).astype(jnp.bfloat16)


def _zero_halo_strips(ref, H, W, C):
    """Zero only the 1-row / 1-col border strips the 3x3 taps read (the interior is
    fully overwritten every grid step, so no full-scratch zero pass is needed)."""
    z_row = jnp.zeros((1, W + _PAD + 1, C), ref.dtype)
    ref[0:1, :, :] = z_row                       # top halo row
    ref[H + 1:H + 2, :, :] = z_row               # bottom halo row
    z_col = jnp.zeros((H + 2, 1, C), ref.dtype)
    ref[:, _PAD - 1:_PAD, :] = z_col             # left halo column
    ref[:, _PAD + W:_PAD + W + 1, :] = z_col     # right halo column


# ------------------------------- fused kernel ------------------------------- #

def _proposal_kernel(x_ref, mean_ref, istd_ref, w_bb_ref, b_bb_ref,
                     w3_ref, b3_ref, whT_ref, bhT_ref, anc_ref,
                     obj_ref, box_ref, xp_ref, fp_ref,
                     *, H, W, Cin, Cf, A, img_h, img_w):
    """Fused: pixel normalize + backbone 3x3 conv + ReLU + RPN 3x3 conv + ReLU +
    fused 1x1 obj/delta heads + Box2BoxTransform.apply_deltas + clip-to-image.
    The backbone feature stays in the fp VMEM scratch (never written to HBM)."""
    HW = H * W

    # --- halo borders: strips only ---
    _zero_halo_strips(xp_ref, H, W, Cin)
    _zero_halo_strips(fp_ref, H, W, Cf)

    # --- pixel normalization (fused; padding happens AFTER normalize) ---
    xn = (x_ref[0] - mean_ref[...]) * istd_ref[...]              # (H, W, Cin) f32
    xp_ref[1:1 + H, _PAD:_PAD + W, :] = xn

    # --- backbone: 3x3 conv + bias + ReLU (im2col, bf16 operands, f32 acc) ---
    patches = _im2col_3x3(xp_ref, H, W, Cin)                     # (HW, 9*Cin) bf16
    feat = jnp.dot(patches, w_bb_ref[...], preferred_element_type=jnp.float32)
    feat = jnp.maximum(feat + b_bb_ref[...], 0.0)                # (HW, Cf) f32

    # feature map kept in VMEM scratch; no HBM round trip
    fp_ref[1:1 + H, _PAD:_PAD + W, :] = feat.reshape(H, W, Cf)

    # --- RPN 3x3 conv + bias + ReLU ---
    patches_f = _im2col_3x3(fp_ref, H, W, Cf)                    # (HW, 9*Cf) bf16
    t = jnp.dot(patches_f, w3_ref[...], preferred_element_type=jnp.float32)
    t = jnp.maximum(t + b3_ref[...], 0.0)                        # (HW, Cf) f32

    # --- fused 1x1 objectness + delta heads, produced lane-dense as (5A, HW).
    # dot_general contracts over Cf directly: no t.T materialization / XLU pass.
    head = lax.dot_general(whT_ref[...], t.astype(jnp.bfloat16),
                           (((1,), (1,)), ((), ())),
                           preferred_element_type=jnp.float32) + bhT_ref[...]

    obj = head[0:A, :]
    d_x = head[A:2 * A, :]
    d_y = head[2 * A:3 * A, :]
    d_w = head[3 * A:4 * A, :]
    d_h = head[4 * A:5 * A, :]

    # --- precomputed anchors (host-side), lane-dense (3A, HW): cx / cy / size ---
    cx = anc_ref[0:A, :]
    cy = anc_ref[A:2 * A, :]
    s = anc_ref[2 * A:3 * A, :]

    # --- Box2BoxTransform.apply_deltas (weights (1,1,1,1)) + clip to image ---
    pcx = d_x * s + cx
    pcy = d_y * s + cy
    pw = jnp.exp(jnp.minimum(d_w, SCALE_CLAMP)) * s
    ph = jnp.exp(jnp.minimum(d_h, SCALE_CLAMP)) * s
    x1 = jnp.clip(pcx - 0.5 * pw, 0.0, img_w)
    y1 = jnp.clip(pcy - 0.5 * ph, 0.0, img_h)
    x2 = jnp.clip(pcx + 0.5 * pw, 0.0, img_w)
    y2 = jnp.clip(pcy + 0.5 * ph, 0.0, img_h)

    # lane-dense stores: obj (1, A, HW), boxes (1, 4, A, HW); HW maps to lanes.
    obj_ref[0, :, :] = obj
    box_ref[0, 0, :, :] = x1
    box_ref[0, 1, :, :] = y1
    box_ref[0, 2, :, :] = x2
    box_ref[0, 3, :, :] = y2


# ------------------------------- wrappers ----------------------------------- #

def _default_vmem_limit_bytes():
    """Generation-aware VMEM budget: leave headroom for double buffering; never
    exceed ~100 MiB on 128-MiB parts and stay well under v7x's 64 MiB."""
    try:
        cap = pltpu.get_tpu_info().vmem_capacity_bytes
    except Exception:
        return 32 * 1024 * 1024
    return min((cap * 3) // 4, 100 * 1024 * 1024)


def proposal_network_forward(images_nchw, pixel_mean, pixel_std, params,
                             anchor_sizes=(8.0, 16.0, 32.0), top_n=64,
                             vmem_limit_bytes=None):
    """Inference path of ProposalNetwork.forward (training losses not implemented)."""
    N, Cin, H, W = images_nchw.shape
    Cf = params["bb_w"].shape[-1]
    A = params["obj_w"].shape[-1]
    HW = H * W
    assert len(anchor_sizes) == A
    if vmem_limit_bytes is None:
        vmem_limit_bytes = _default_vmem_limit_bytes()

    x = jnp.transpose(images_nchw, (0, 2, 3, 1)).astype(jnp.float32)   # NCHW -> NHWC
    mean = pixel_mean.reshape(1, Cin).astype(jnp.float32)
    istd = (1.0 / pixel_std).reshape(1, Cin).astype(jnp.float32)

    # Host-side weight repacking (one-time, tiny):
    #   3x3 conv weights -> im2col (9*Cin, Cout) layout, bf16 for the MXU.
    w_bb = params["bb_w"].reshape(9 * Cin, Cf).astype(jnp.bfloat16)
    b_bb = params["bb_b"].reshape(1, Cf).astype(jnp.float32)
    w3 = params["rpn_w"].reshape(9 * Cf, Cf).astype(jnp.bfloat16)
    b3 = params["rpn_b"].reshape(1, Cf).astype(jnp.float32)
    #   1x1 heads fused to a single (5A, Cf) matrix; delta columns reordered from
    #   detectron2's anchor-major (a*4+c) to coordinate-major (c*A+a).
    del_w_cm = params["del_w"].reshape(Cf, A, 4).transpose(0, 2, 1).reshape(Cf, 4 * A)
    del_b_cm = params["del_b"].reshape(A, 4).T.reshape(4 * A)
    w_head = jnp.concatenate([params["obj_w"], del_w_cm], axis=1)       # (Cf, 5A)
    whT = w_head.T.astype(jnp.bfloat16)                                 # (5A, Cf)
    bhT = jnp.concatenate([params["obj_b"], del_b_cm]).reshape(5 * A, 1).astype(jnp.float32)

    # Host-side anchors (feature stride 1, square anchors centred on pixels),
    # packed lane-dense as (3A, HW): rows [0:A]=cx, [A:2A]=cy, [2A:3A]=size.
    hw_idx = jnp.arange(HW, dtype=jnp.int32)
    cx0 = (hw_idx % W).astype(jnp.float32) + 0.5
    cy0 = (hw_idx // W).astype(jnp.float32) + 0.5
    cx = jnp.broadcast_to(cx0[None, :], (A, HW))
    cy = jnp.broadcast_to(cy0[None, :], (A, HW))
    sz = jnp.broadcast_to(jnp.asarray(anchor_sizes, jnp.float32)[:, None], (A, HW))
    anc = jnp.concatenate([cx, cy, sz], axis=0)                         # (3A, HW) f32

    kernel = functools.partial(_proposal_kernel, H=H, W=W, Cin=Cin, Cf=Cf, A=A,
                               img_h=float(H), img_w=float(W))

    # 1+2) ONE fused pallas_call: normalize + backbone conv + RPN head + decode.
    obj, boxes = pl.pallas_call(
        kernel,
        out_shape=(jax.ShapeDtypeStruct((N, A, HW), jnp.float32),
                   jax.ShapeDtypeStruct((N, 4, A, HW), jnp.float32)),
        grid=(N,),
        in_specs=[pl.BlockSpec((1, H, W, Cin), lambda n: (n, 0, 0, 0)),
                  pl.BlockSpec((1, Cin), lambda n: (0, 0)),
                  pl.BlockSpec((1, Cin), lambda n: (0, 0)),
                  pl.BlockSpec((9 * Cin, Cf), lambda n: (0, 0)),
                  pl.BlockSpec((1, Cf), lambda n: (0, 0)),
                  pl.BlockSpec((9 * Cf, Cf), lambda n: (0, 0)),
                  pl.BlockSpec((1, Cf), lambda n: (0, 0)),
                  pl.BlockSpec((5 * A, Cf), lambda n: (0, 0)),
                  pl.BlockSpec((5 * A, 1), lambda n: (0, 0)),
                  pl.BlockSpec((3 * A, HW), lambda n: (0, 0))],
        out_specs=(pl.BlockSpec((1, A, HW), lambda n: (n, 0, 0)),
                   pl.BlockSpec((1, 4, A, HW), lambda n: (n, 0, 0, 0))),
        scratch_shapes=[pltpu.VMEM((H + 2, W + _PAD + 1, Cin), jnp.float32),
                        pltpu.VMEM((H + 2, W + _PAD + 1, Cf), jnp.float32)],
        compiler_params=pltpu.CompilerParams(
            dimension_semantics=("parallel",),
            vmem_limit_bytes=int(vmem_limit_bytes)),
    )(x, mean, istd, w_bb, b_bb, w3, b3, whT, bhT, anc)

    K = A * HW
    obj_flat = obj.reshape(N, K)            # k = a*H*W + h*W + w (contiguous)
    boxes_flat = boxes.reshape(N, 4, K)

    # 3) batched per-image top-k by objectness + box gather (single XLA launch).
    #    detector_postprocess rescale is identity (output size == input size).
    scores, idx = lax.top_k(obj_flat, top_n)                            # (N, top_n)
    sel = jnp.take_along_axis(boxes_flat, idx[:, None, :], axis=2)      # (N, 4, top_n)
    sel = jnp.transpose(sel, (0, 2, 1))                                 # (N, top_n, 4)

    # TODO(synk): NMS / variable-size ImageList padding have no clean Pallas
    #             equivalent; proposals are returned pre-NMS (top-k by objectness).
    return [{"proposals": {"proposal_boxes": sel[i],
                           "objectness_logits": scores[i]}} for i in range(N)]


# --------------------------------- main -------------------------------------- #

if __name__ == "__main__":
    N, Cin, H, W = 2, 3, 16, 16
    Cf, A = 32, 3

    key = jax.random.PRNGKey(0)
    keys = jax.random.split(key, 6)

    images = jax.random.uniform(keys[0], (N, Cin, H, W), jnp.float32, 0.0, 255.0)
    pixel_mean = jnp.array([103.53, 116.28, 123.675], jnp.float32)
    pixel_std = jnp.array([57.375, 57.12, 58.395], jnp.float32)

    params = {
        "bb_w": 0.05 * jax.random.normal(keys[1], (3, 3, Cin, Cf), jnp.float32),
        "bb_b": jnp.zeros((Cf,), jnp.float32),
        "rpn_w": 0.05 * jax.random.normal(keys[2], (3, 3, Cf, Cf), jnp.float32),
        "rpn_b": jnp.zeros((Cf,), jnp.float32),
        "obj_w": 0.05 * jax.random.normal(keys[3], (Cf, A), jnp.float32),
        "obj_b": jnp.zeros((A,), jnp.float32),
        "del_w": 0.05 * jax.random.normal(keys[4], (Cf, 4 * A), jnp.float32),
        "del_b": jnp.zeros((4 * A,), jnp.float32),
    }

    out = proposal_network_forward(images, pixel_mean, pixel_std, params,
                                   anchor_sizes=(8.0, 16.0, 32.0), top_n=64)
    jax.block_until_ready(out)
    print("KERNEL_OK")
</pallas_src>

<mosaic_0001>
module attributes {stable_mosaic.version = 11 : i64} {
  func.func @_proposal_kernel(%arg0: i32, %arg1: memref<1x16x16x3xf32, #tpu.memory_space<vmem>>, %arg2: memref<1x3xf32, #tpu.memory_space<vmem>>, %arg3: memref<1x3xf32, #tpu.memory_space<vmem>>, %arg4: memref<27x32xbf16, #tpu.memory_space<vmem>>, %arg5: memref<1x32xf32, #tpu.memory_space<vmem>>, %arg6: memref<288x32xbf16, #tpu.memory_space<vmem>>, %arg7: memref<1x32xf32, #tpu.memory_space<vmem>>, %arg8: memref<15x32xbf16, #tpu.memory_space<vmem>>, %arg9: memref<15x1xf32, #tpu.memory_space<vmem>>, %arg10: memref<9x256xf32, #tpu.memory_space<vmem>>, %arg11: memref<1x3x256xf32, #tpu.memory_space<vmem>>, %arg12: memref<1x4x3x256xf32, #tpu.memory_space<vmem>>, %arg13: memref<18x25x3xf32, #tpu.memory_space<vmem>>, %arg14: memref<18x25x32xf32, #tpu.memory_space<vmem>>) attributes {dimension_semantics = [#tpu.dimension_semantics<parallel>], iteration_bounds = array<i64: 2>, scalar_prefetch = 0 : i64, scratch_operands = 2 : i64, tpu.core_type = #tpu.core_type<tc>, window_params = [{transform_indices = @transform_0, window_bounds = array<i64: 1, 16, 16, 3>}, {pipeline_mode = #tpu.pipeline_mode<synchronous>, transform_indices = @transform_1, window_bounds = array<i64: 1, 3>}, {pipeline_mode = #tpu.pipeline_mode<synchronous>, transform_indices = @transform_2, window_bounds = array<i64: 1, 3>}, {pipeline_mode = #tpu.pipeline_mode<synchronous>, transform_indices = @transform_3, window_bounds = array<i64: 27, 32>}, {pipeline_mode = #tpu.pipeline_mode<synchronous>, transform_indices = @transform_4, window_bounds = array<i64: 1, 32>}, {pipeline_mode = #tpu.pipeline_mode<synchronous>, transform_indices = @transform_5, window_bounds = array<i64: 288, 32>}, {pipeline_mode = #tpu.pipeline_mode<synchronous>, transform_indices = @transform_6, window_bounds = array<i64: 1, 32>}, {pipeline_mode = #tpu.pipeline_mode<synchronous>, transform_indices = @transform_7, window_bounds = array<i64: 15, 32>}, {pipeline_mode = #tpu.pipeline_mode<synchronous>, transform_indices = @transform_8, window_bounds = array<i64: 15, 1>}, {pipeline_mode = #tpu.pipeline_mode<synchronous>, transform_indices = @transform_9, window_bounds = array<i64: 9, 256>}, {transform_indices = @transform_10, window_bounds = array<i64: 1, 3, 256>}, {transform_indices = @transform_11, window_bounds = array<i64: 1, 4, 3, 256>}]} {
    %cst = arith.constant 0.000000e+00 : f32
    %0 = vector.broadcast %cst : f32 to vector<1x25x3xf32>
    %c0 = arith.constant 0 : index
    %c0_0 = arith.constant 0 : index
    %c0_1 = arith.constant 0 : index
    %1 = vector.load %arg13[%c0, %c0_0, %c0_1] : memref<18x25x3xf32, #tpu.memory_space<vmem>>, vector<1x25x3xf32>
    tpu.vector_store %arg13[%c0, %c0_0, %c0_1], %0 {strides = array<i32>} : memref<18x25x3xf32, #tpu.memory_space<vmem>>, vector<1x25x3xf32>,
    %c17 = arith.constant 17 : index
    %c0_2 = arith.constant 0 : index
    %c0_3 = arith.constant 0 : index
    %2 = vector.load %arg13[%c17, %c0_2, %c0_3] : memref<18x25x3xf32, #tpu.memory_space<vmem>>, vector<1x25x3xf32>
    tpu.vector_store %arg13[%c17, %c0_2, %c0_3], %0 {strides = array<i32>} : memref<18x25x3xf32, #tpu.memory_space<vmem>>, vector<1x25x3xf32>,
    %cst_4 = arith.constant 0.000000e+00 : f32
    %3 = vector.broadcast %cst_4 : f32 to vector<18x1x3xf32>
    %c0_5 = arith.constant 0 : index
    %c7 = arith.constant 7 : index
    %c0_6 = arith.constant 0 : index
    %4 = vector.load %arg13[%c0_5, %c7, %c0_6] : memref<18x25x3xf32, #tpu.memory_space<vmem>>, vector<18x1x3xf32>
    tpu.vector_store %arg13[%c0_5, %c7, %c0_6], %3 {strides = array<i32>} : memref<18x25x3xf32, #tpu.memory_space<vmem>>, vector<18x1x3xf32>,
    %c0_7 = arith.constant 0 : index
    %c24 = arith.constant 24 : index
    %c0_8 = arith.constant 0 : index
    %5 = vector.load %arg13[%c0_7, %c24, %c0_8] : memref<18x25x3xf32, #tpu.memory_space<vmem>>, vector<18x1x3xf32>
    tpu.vector_store %arg13[%c0_7, %c24, %c0_8], %3 {strides = array<i32>} : memref<18x25x3xf32, #tpu.memory_space<vmem>>, vector<18x1x3xf32>,
    %cst_9 = arith.constant 0.000000e+00 : f32
    %6 = vector.broadcast %cst_9 : f32 to vector<1x25x32xf32>
    %c0_10 = arith.constant 0 : index
    %c0_11 = arith.constant 0 : index
    %c0_12 = arith.constant 0 : index
    %7 = vector.load %arg14[%c0_10, %c0_11, %c0_12] : memref<18x25x32xf32, #tpu.memory_space<vmem>>, vector<1x25x32xf32>
    tpu.vector_store %arg14[%c0_10, %c0_11, %c0_12], %6 {strides = array<i32>} : memref<18x25x32xf32, #tpu.memory_space<vmem>>, vector<1x25x32xf32>,
    %c17_13 = arith.constant 17 : index
    %c0_14 = arith.constant 0 : index
    %c0_15 = arith.constant 0 : index
    %8 = vector.load %arg14[%c17_13, %c0_14, %c0_15] : memref<18x25x32xf32, #tpu.memory_space<vmem>>, vector<1x25x32xf32>
    tpu.vector_store %arg14[%c17_13, %c0_14, %c0_15], %6 {strides = array<i32>} : memref<18x25x32xf32, #tpu.memory_space<vmem>>, vector<1x25x32xf32>,
    %cst_16 = arith.constant 0.000000e+00 : f32
    %9 = vector.broadcast %cst_16 : f32 to vector<18x1x32xf32>
    %c0_17 = arith.constant 0 : index
    %c7_18 = arith.constant 7 : index
    %c0_19 = arith.constant 0 : index
    %10 = vector.load %arg14[%c0_17, %c7_18, %c0_19] : memref<18x25x32xf32, #tpu.memory_space<vmem>>, vector<18x1x32xf32>
    tpu.vector_store %arg14[%c0_17, %c7_18, %c0_19], %9 {strides = array<i32>} : memref<18x25x32xf32, #tpu.memory_space<vmem>>, vector<18x1x32xf32>,
    %c0_20 = arith.constant 0 : index
    %c24_21 = arith.constant 24 : index
    %c0_22 = arith.constant 0 : index
    %11 = vector.load %arg14[%c0_20, %c24_21, %c0_22] : memref<18x25x32xf32, #tpu.memory_space<vmem>>, vector<18x1x32xf32>
    tpu.vector_store %arg14[%c0_20, %c24_21, %c0_22], %9 {strides = array<i32>} : memref<18x25x32xf32, #tpu.memory_space<vmem>>, vector<18x1x32xf32>,
    %c0_23 = arith.constant 0 : index
    %c0_24 = arith.constant 0 : index
    %c0_25 = arith.constant 0 : index
    %c0_26 = arith.constant 0 : index
    %12 = vector.load %arg1[%c0_23, %c0_24, %c0_25, %c0_26] : memref<1x16x16x3xf32, #tpu.memory_space<vmem>>, vector<1x16x16x3xf32>
    %13 = vector.shape_cast %12 : vector<1x16x16x3xf32> to vector<16x16x3xf32>
    %c0_27 = arith.constant 0 : index
    %c0_28 = arith.constant 0 : index
    %14 = vector.load %arg2[%c0_27, %c0_28] : memref<1x3xf32, #tpu.memory_space<vmem>>, vector<1x3xf32>
    %15 = vector.shape_cast %14 : vector<1x3xf32> to vector<1x1x3xf32>
    %16 = vector.broadcast %15 : vector<1x1x3xf32> to vector<16x16x3xf32>
    %17 = arith.subf %13, %16 : vector<16x16x3xf32>
    %c0_29 = arith.constant 0 : index
    %c0_30 = arith.constant 0 : index
    %18 = vector.load %arg3[%c0_29, %c0_30] : memref<1x3xf32, #tpu.memory_space<vmem>>, vector<1x3xf32>
    %19 = vector.shape_cast %18 : vector<1x3xf32> to vector<1x1x3xf32>
    %20 = vector.broadcast %19 : vector<1x1x3xf32> to vector<16x16x3xf32>
    %21 = arith.mulf %17, %20 : vector<16x16x3xf32>
    %c1 = arith.constant 1 : index
    %c8 = arith.constant 8 : index
    %c0_31 = arith.constant 0 : index
    %22 = vector.load %arg13[%c1, %c8, %c0_31] : memref<18x25x3xf32, #tpu.memory_space<vmem>>, vector<16x16x3xf32>
    tpu.vector_store %arg13[%c1, %c8, %c0_31], %21 {strides = array<i32>} : memref<18x25x3xf32, #tpu.memory_space<vmem>>, vector<16x16x3xf32>,
    %c0_32 = arith.constant 0 : index
    %c7_33 = arith.constant 7 : index
    %c0_34 = arith.constant 0 : index
    %23 = vector.load %arg13[%c0_32, %c7_33, %c0_34] : memref<18x25x3xf32, #tpu.memory_space<vmem>>, vector<16x16x3xf32>
    %24 = vector.shape_cast %23 : vector<16x16x3xf32> to vector<256x3xf32>
    %c0_35 = arith.constant 0 : index
    %c8_36 = arith.constant 8 : index
    %c0_37 = arith.constant 0 : index
    %25 = vector.load %arg13[%c0_35, %c8_36, %c0_37] : memref<18x25x3xf32, #tpu.memory_space<vmem>>, vector<16x16x3xf32>
    %26 = vector.shape_cast %25 : vector<16x16x3xf32> to vector<256x3xf32>
    %c0_38 = arith.constant 0 : index
    %c9 = arith.constant 9 : index
    %c0_39 = arith.constant 0 : index
    %27 = vector.load %arg13[%c0_38, %c9, %c0_39] : memref<18x25x3xf32, #tpu.memory_space<vmem>>, vector<16x16x3xf32>
    %28 = vector.shape_cast %27 : vector<16x16x3xf32> to vector<256x3xf32>
    %c1_40 = arith.constant 1 : index
    %c7_41 = arith.constant 7 : index
    %c0_42 = arith.constant 0 : index
    %29 = vector.load %arg13[%c1_40, %c7_41, %c0_42] : memref<18x25x3xf32, #tpu.memory_space<vmem>>, vector<16x16x3xf32>
    %30 = vector.shape_cast %29 : vector<16x16x3xf32> to vector<256x3xf32>
    %c1_43 = arith.constant 1 : index
    %c8_44 = arith.constant 8 : index
    %c0_45 = arith.constant 0 : index
    %31 = vector.load %arg13[%c1_43, %c8_44, %c0_45] : memref<18x25x3xf32, #tpu.memory_space<vmem>>, vector<16x16x3xf32>
    %32 = vector.shape_cast %31 : vector<16x16x3xf32> to vector<256x3xf32>
    %c1_46 = arith.constant 1 : index
    %c9_47 = arith.constant 9 : index
    %c0_48 = arith.constant 0 : index
    %33 = vector.load %arg13[%c1_46, %c9_47, %c0_48] : memref<18x25x3xf32, #tpu.memory_space<vmem>>, vector<16x16x3xf32>
    %34 = vector.shape_cast %33 : vector<16x16x3xf32> to vector<256x3xf32>
    %c2 = arith.constant 2 : index
    %c7_49 = arith.constant 7 : index
    %c0_50 = arith.constant 0 : index
    %35 = vector.load %arg13[%c2, %c7_49, %c0_50] : memref<18x25x3xf32, #tpu.memory_space<vmem>>, vector<16x16x3xf32>
    %36 = vector.shape_cast %35 : vector<16x16x3xf32> to vector<256x3xf32>
    %c2_51 = arith.constant 2 : index
    %c8_52 = arith.constant 8 : index
    %c0_53 = arith.constant 0 : index
    %37 = vector.load %arg13[%c2_51, %c8_52, %c0_53] : memref<18x25x3xf32, #tpu.memory_space<vmem>>, vector<16x16x3xf32>
    %38 = vector.shape_cast %37 : vector<16x16x3xf32> to vector<256x3xf32>
    %c2_54 = arith.constant 2 : index
    %c9_55 = arith.constant 9 : index
    %c0_56 = arith.constant 0 : index
    %39 = vector.load %arg13[%c2_54, %c9_55, %c0_56] : memref<18x25x3xf32, #tpu.memory_space<vmem>>, vector<16x16x3xf32>
    %40 = vector.shape_cast %39 : vector<16x16x3xf32> to vector<256x3xf32>
    %41 = tpu.concatenate %24, %26, %28, %30, %32, %34, %36, %38, %40 in 1 : vector<256x3xf32>, vector<256x3xf32>, vector<256x3xf32>, vector<256x3xf32>, vector<256x3xf32>, vector<256x3xf32>, vector<256x3xf32>, vector<256x3xf32>, vector<256x3xf32> -> vector<256x27xf32>
    %42 = arith.truncf %41 : vector<256x27xf32> to vector<256x27xbf16>
    %c0_57 = arith.constant 0 : index
    %c0_58 = arith.constant 0 : index
    %43 = vector.load %arg4[%c0_57, %c0_58] : memref<27x32xbf16, #tpu.memory_space<vmem>>, vector<27x32xbf16>
    %cst_59 = arith.constant dense<0.000000e+00> : vector<256x32xf32>
    %44 = tpu.matmul %42, %43, %cst_59 {dimension_numbers = #tpu.dot_dimension_numbers<[1], [0], [0], [1], [0, 0, 1, 1], [], []>} : vector<256x27xbf16>, vector<27x32xbf16>, vector<256x32xf32> -> vector<256x32xf32>
    %c0_60 = arith.constant 0 : index
    %c0_61 = arith.constant 0 : index
    %45 = vector.load %arg5[%c0_60, %c0_61] : memref<1x32xf32, #tpu.memory_space<vmem>>, vector<1x32xf32>
    %46 = vector.broadcast %45 : vector<1x32xf32> to vector<256x32xf32>
    %47 = arith.addf %44, %46 : vector<256x32xf32>
    %cst_62 = arith.constant 0.000000e+00 : f32
    %48 = vector.broadcast %cst_62 : f32 to vector<256x32xf32>
    %49 = arith.maximumf %47, %48 : vector<256x32xf32>
    %50 = vector.shape_cast %49 : vector<256x32xf32> to vector<16x16x32xf32>
    %c1_63 = arith.constant 1 : index
    %c8_64 = arith.constant 8 : index
    %c0_65 = arith.constant 0 : index
    %51 = vector.load %arg14[%c1_63, %c8_64, %c0_65] : memref<18x25x32xf32, #tpu.memory_space<vmem>>, vector<16x16x32xf32>
    tpu.vector_store %arg14[%c1_63, %c8_64, %c0_65], %50 {strides = array<i32>} : memref<18x25x32xf32, #tpu.memory_space<vmem>>, vector<16x16x32xf32>,
    %c0_66 = arith.constant 0 : index
    %c7_67 = arith.constant 7 : index
    %c0_68 = arith.constant 0 : index
    %52 = vector.load %arg14[%c0_66, %c7_67, %c0_68] : memref<18x25x32xf32, #tpu.memory_space<vmem>>, vector<16x16x32xf32>
    %53 = vector.shape_cast %52 : vector<16x16x32xf32> to vector<256x32xf32>
    %c0_69 = arith.constant 0 : index
    %c8_70 = arith.constant 8 : index
    %c0_71 = arith.constant 0 : index
    %54 = vector.load %arg14[%c0_69, %c8_70, %c0_71] : memref<18x25x32xf32, #tpu.memory_space<vmem>>, vector<16x16x32xf32>
    %55 = vector.shape_cast %54 : vector<16x16x32xf32> to vector<256x32xf32>
    %c0_72 = arith.constant 0 : index
    %c9_73 = arith.constant 9 : index
    %c0_74 = arith.constant 0 : index
    %56 = vector.load %arg14[%c0_72, %c9_73, %c0_74] : memref<18x25x32xf32, #tpu.memory_space<vmem>>, vector<16x16x32xf32>
    %57 = vector.shape_cast %56 : vector<16x16x32xf32> to vector<256x32xf32>
    %c1_75 = arith.constant 1 : index
    %c7_76 = arith.constant 7 : index
    %c0_77 = arith.constant 0 : index
    %58 = vector.load %arg14[%c1_75, %c7_76, %c0_77] : memref<18x25x32xf32, #tpu.memory_space<vmem>>, vector<16x16x32xf32>
    %59 = vector.shape_cast %58 : vector<16x16x32xf32> to vector<256x32xf32>
    %c1_78 = arith.constant 1 : index
    %c8_79 = arith.constant 8 : index
    %c0_80 = arith.constant 0 : index
    %60 = vector.load %arg14[%c1_78, %c8_79, %c0_80] : memref<18x25x32xf32, #tpu.memory_space<vmem>>, vector<16x16x32xf32>
    %61 = vector.shape_cast %60 : vector<16x16x32xf32> to vector<256x32xf32>
    %c1_81 = arith.constant 1 : index
    %c9_82 = arith.constant 9 : index
    %c0_83 = arith.constant 0 : index
    %62 = vector.load %arg14[%c1_81, %c9_82, %c0_83] : memref<18x25x32xf32, #tpu.memory_space<vmem>>, vector<16x16x32xf32>
    %63 = vector.shape_cast %62 : vector<16x16x32xf32> to vector<256x32xf32>
    %c2_84 = arith.constant 2 : index
    %c7_85 = arith.constant 7 : index
    %c0_86 = arith.constant 0 : index
    %64 = vector.load %arg14[%c2_84, %c7_85, %c0_86] : memref<18x25x32xf32, #tpu.memory_space<vmem>>, vector<16x16x32xf32>
    %65 = vector.shape_cast %64 : vector<16x16x32xf32> to vector<256x32xf32>
    %c2_87 = arith.constant 2 : index
    %c8_88 = arith.constant 8 : index
    %c0_89 = arith.constant 0 : index
    %66 = vector.load %arg14[%c2_87, %c8_88, %c0_89] : memref<18x25x32xf32, #tpu.memory_space<vmem>>, vector<16x16x32xf32>
    %67 = vector.shape_cast %66 : vector<16x16x32xf32> to vector<256x32xf32>
    %c2_90 = arith.constant 2 : index
    %c9_91 = arith.constant 9 : index
    %c0_92 = arith.constant 0 : index
    %68 = vector.load %arg14[%c2_90, %c9_91, %c0_92] : memref<18x25x32xf32, #tpu.memory_space<vmem>>, vector<16x16x32xf32>
    %69 = vector.shape_cast %68 : vector<16x16x32xf32> to vector<256x32xf32>
    %70 = tpu.concatenate %53, %55, %57, %59, %61, %63, %65, %67, %69 in 1 : vector<256x32xf32>, vector<256x32xf32>, vector<256x32xf32>, vector<256x32xf32>, vector<256x32xf32>, vector<256x32xf32>, vector<256x32xf32>, vector<256x32xf32>, vector<256x32xf32> -> vector<256x288xf32>
    %71 = arith.truncf %70 : vector<256x288xf32> to vector<256x288xbf16>
    %c0_93 = arith.constant 0 : index
    %c0_94 = arith.constant 0 : index
    %72 = vector.load %arg6[%c0_93, %c0_94] : memref<288x32xbf16, #tpu.memory_space<vmem>>, vector<288x32xbf16>
    %cst_95 = arith.constant dense<0.000000e+00> : vector<256x32xf32>
    %73 = tpu.matmul %71, %72, %cst_95 {dimension_numbers = #tpu.dot_dimension_numbers<[1], [0], [0], [1], [0, 0, 1, 1], [], []>} : vector<256x288xbf16>, vector<288x32xbf16>, vector<256x32xf32> -> vector<256x32xf32>
    %c0_96 = arith.constant 0 : index
    %c0_97 = arith.constant 0 : index
    %74 = vector.load %arg7[%c0_96, %c0_97] : memref<1x32xf32, #tpu.memory_space<vmem>>, vector<1x32xf32>
    %75 = vector.broadcast %74 : vector<1x32xf32> to vector<256x32xf32>
    %76 = arith.addf %73, %75 : vector<256x32xf32>
    %cst_98 = arith.constant 0.000000e+00 : f32
    %77 = vector.broadcast %cst_98 : f32 to vector<256x32xf32>
    %78 = arith.maximumf %76, %77 : vector<256x32xf32>
    %c0_99 = arith.constant 0 : index
    %c0_100 = arith.constant 0 : index
    %79 = vector.load %arg8[%c0_99, %c0_100] : memref<15x32xbf16, #tpu.memory_space<vmem>>, vector<15x32xbf16>
    %80 = arith.truncf %78 : vector<256x32xf32> to vector<256x32xbf16>
    %cst_101 = arith.constant dense<0.000000e+00> : vector<15x256xf32>
    %81 = tpu.matmul %79, %80, %cst_101 {dimension_numbers = #tpu.dot_dimension_numbers<[1], [1], [0], [0], [0, 0, 1, 0], [], []>} : vector<15x32xbf16>, vector<256x32xbf16>, vector<15x256xf32> -> vector<15x256xf32>
    %c0_102 = arith.constant 0 : index
    %c0_103 = arith.constant 0 : index
    %82 = vector.load %arg9[%c0_102, %c0_103] : memref<15x1xf32, #tpu.memory_space<vmem>>, vector<15x1xf32>
    %83 = vector.broadcast %82 : vector<15x1xf32> to vector<15x256xf32>
    %84 = arith.addf %81, %83 : vector<15x256xf32>
    %85 = vector.extract_strided_slice %84 {offsets = [0, 0], sizes = [3, 256], strides = [1, 1]} : vector<15x256xf32> to vector<3x256xf32>
    %86 = vector.extract_strided_slice %84 {offsets = [3, 0], sizes = [3, 256], strides = [1, 1]} : vector<15x256xf32> to vector<3x256xf32>
    %87 = vector.extract_strided_slice %84 {offsets = [6, 0], sizes = [3, 256], strides = [1, 1]} : vector<15x256xf32> to vector<3x256xf32>
    %88 = vector.extract_strided_slice %84 {offsets = [9, 0], sizes = [3, 256], strides = [1, 1]} : vector<15x256xf32> to vector<3x256xf32>
    %89 = vector.extract_strided_slice %84 {offsets = [12, 0], sizes = [3, 256], strides = [1, 1]} : vector<15x256xf32> to vector<3x256xf32>
    %c0_104 = arith.constant 0 : index
    %c0_105 = arith.constant 0 : index
    %90 = vector.load %arg10[%c0_104, %c0_105] : memref<9x256xf32, #tpu.memory_space<vmem>>, vector<3x256xf32>
    %c3 = arith.constant 3 : index
    %c0_106 = arith.constant 0 : index
    %91 = vector.load %arg10[%c3, %c0_106] : memref<9x256xf32, #tpu.memory_space<vmem>>, vector<3x256xf32>
    %c6 = arith.constant 6 : index
    %c0_107 = arith.constant 0 : index
    %92 = vector.load %arg10[%c6, %c0_107] : memref<9x256xf32, #tpu.memory_space<vmem>>, vector<3x256xf32>
    %93 = arith.mulf %86, %92 : vector<3x256xf32>
    %94 = arith.addf %93, %90 : vector<3x256xf32>
    %95 = arith.mulf %87, %92 : vector<3x256xf32>
    %96 = arith.addf %95, %91 : vector<3x256xf32>
    %cst_108 = arith.constant 4.13516665 : f32
    %97 = vector.broadcast %cst_108 : f32 to vector<3x256xf32>
    %98 = arith.minimumf %88, %97 : vector<3x256xf32>
    %99 = math.exp %98 : vector<3x256xf32>
    %100 = arith.mulf %99, %92 : vector<3x256xf32>
    %cst_109 = arith.constant 4.13516665 : f32
    %101 = vector.broadcast %cst_109 : f32 to vector<3x256xf32>
    %102 = arith.minimumf %89, %101 : vector<3x256xf32>
    %103 = math.exp %102 : vector<3x256xf32>
    %104 = arith.mulf %103, %92 : vector<3x256xf32>
    %cst_110 = arith.constant 5.000000e-01 : f32
    %105 = vector.broadcast %cst_110 : f32 to vector<3x256xf32>
    %106 = arith.mulf %105, %100 : vector<3x256xf32>
    %107 = arith.subf %94, %106 : vector<3x256xf32>
    %cst_111 = arith.constant 0.000000e+00 : f32
    %cst_112 = arith.constant 1.600000e+01 : f32
    %108 = vector.broadcast %cst_111 : f32 to vector<3x256xf32>
    %109 = arith.maximumf %108, %107 : vector<3x256xf32>
    %110 = vector.broadcast %cst_112 : f32 to vector<3x256xf32>
    %111 = arith.minimumf %110, %109 : vector<3x256xf32>
    %cst_113 = arith.constant 5.000000e-01 : f32
    %112 = vector.broadcast %cst_113 : f32 to vector<3x256xf32>
    %113 = arith.mulf %112, %104 : vector<3x256xf32>
    %114 = arith.subf %96, %113 : vector<3x256xf32>
    %cst_114 = arith.constant 0.000000e+00 : f32
    %cst_115 = arith.constant 1.600000e+01 : f32
    %115 = vector.broadcast %cst_114 : f32 to vector<3x256xf32>
    %116 = arith.maximumf %115, %114 : vector<3x256xf32>
    %117 = vector.broadcast %cst_115 : f32 to vector<3x256xf32>
    %118 = arith.minimumf %117, %116 : vector<3x256xf32>
    %cst_116 = arith.constant 5.000000e-01 : f32
    %119 = vector.broadcast %cst_116 : f32 to vector<3x256xf32>
    %120 = arith.mulf %119, %100 : vector<3x256xf32>
    %121 = arith.addf %94, %120 : vector<3x256xf32>
    %cst_117 = arith.constant 0.000000e+00 : f32
    %cst_118 = arith.constant 1.600000e+01 : f32
    %122 = vector.broadcast %cst_117 : f32 to vector<3x256xf32>
    %123 = arith.maximumf %122, %121 : vector<3x256xf32>
    %124 = vector.broadcast %cst_118 : f32 to vector<3x256xf32>
    %125 = arith.minimumf %124, %123 : vector<3x256xf32>
    %cst_119 = arith.constant 5.000000e-01 : f32
    %126 = vector.broadcast %cst_119 : f32 to vector<3x256xf32>
    %127 = arith.mulf %126, %104 : vector<3x256xf32>
    %128 = arith.addf %96, %127 : vector<3x256xf32>
    %cst_120 = arith.constant 0.000000e+00 : f32
    %cst_121 = arith.constant 1.600000e+01 : f32
    %129 = vector.broadcast %cst_120 : f32 to vector<3x256xf32>
    %130 = arith.maximumf %129, %128 : vector<3x256xf32>
    %131 = vector.broadcast %cst_121 : f32 to vector<3x256xf32>
    %132 = arith.minimumf %131, %130 : vector<3x256xf32>
    %c0_122 = arith.constant 0 : index
    %c0_123 = arith.constant 0 : index
    %c0_124 = arith.constant 0 : index
    %133 = vector.load %arg11[%c0_122, %c0_123, %c0_124] : memref<1x3x256xf32, #tpu.memory_space<vmem>>, vector<1x3x256xf32>
    %134 = vector.shape_cast %133 : vector<1x3x256xf32> to vector<3x256xf32>
    %135 = vector.shape_cast %85 : vector<3x256xf32> to vector<1x3x256xf32>
    tpu.vector_store %arg11[%c0_122, %c0_123, %c0_124], %135 {strides = array<i32>} : memref<1x3x256xf32, #tpu.memory_space<vmem>>, vector<1x3x256xf32>,
    %c0_125 = arith.constant 0 : index
    %c0_126 = arith.constant 0 : index
    %c0_127 = arith.constant 0 : index
    %c0_128 = arith.constant 0 : index
    %136 = vector.load %arg12[%c0_125, %c0_126, %c0_127, %c0_128] : memref<1x4x3x256xf32, #tpu.memory_space<vmem>>, vector<1x1x3x256xf32>
    %137 = vector.shape_cast %136 : vector<1x1x3x256xf32> to vector<3x256xf32>
    %138 = vector.shape_cast %111 : vector<3x256xf32> to vector<1x1x3x256xf32>
    tpu.vector_store %arg12[%c0_125, %c0_126, %c0_127, %c0_128], %138 {strides = array<i32>} : memref<1x4x3x256xf32, #tpu.memory_space<vmem>>, vector<1x1x3x256xf32>,
    %c0_129 = arith.constant 0 : index
    %c1_130 = arith.constant 1 : index
    %c0_131 = arith.constant 0 : index
    %c0_132 = arith.constant 0 : index
    %139 = vector.load %arg12[%c0_129, %c1_130, %c0_131, %c0_132] : memref<1x4x3x256xf32, #tpu.memory_space<vmem>>, vector<1x1x3x256xf32>
    %140 = vector.shape_cast %139 : vector<1x1x3x256xf32> to vector<3x256xf32>
    %141 = vector.shape_cast %118 : vector<3x256xf32> to vector<1x1x3x256xf32>
    tpu.vector_store %arg12[%c0_129, %c1_130, %c0_131, %c0_132], %141 {strides = array<i32>} : memref<1x4x3x256xf32, #tpu.memory_space<vmem>>, vector<1x1x3x256xf32>,
    %c0_133 = arith.constant 0 : index
    %c2_134 = arith.constant 2 : index
    %c0_135 = arith.constant 0 : index
    %c0_136 = arith.constant 0 : index
    %142 = vector.load %arg12[%c0_133, %c2_134, %c0_135, %c0_136] : memref<1x4x3x256xf32, #tpu.memory_space<vmem>>, vector<1x1x3x256xf32>
    %143 = vector.shape_cast %142 : vector<1x1x3x256xf32> to vector<3x256xf32>
    %144 = vector.shape_cast %125 : vector<3x256xf32> to vector<1x1x3x256xf32>
    tpu.vector_store %arg12[%c0_133, %c2_134, %c0_135, %c0_136], %144 {strides = array<i32>} : memref<1x4x3x256xf32, #tpu.memory_space<vmem>>, vector<1x1x3x256xf32>,
    %c0_137 = arith.constant 0 : index
    %c3_138 = arith.constant 3 : index
    %c0_139 = arith.constant 0 : index
    %c0_140 = arith.constant 0 : index
    %145 = vector.load %arg12[%c0_137, %c3_138, %c0_139, %c0_140] : memref<1x4x3x256xf32, #tpu.memory_space<vmem>>, vector<1x1x3x256xf32>
    %146 = vector.shape_cast %145 : vector<1x1x3x256xf32> to vector<3x256xf32>
    %147 = vector.shape_cast %132 : vector<3x256xf32> to vector<1x1x3x256xf32>
    tpu.vector_store %arg12[%c0_137, %c3_138, %c0_139, %c0_140], %147 {strides = array<i32>} : memref<1x4x3x256xf32, #tpu.memory_space<vmem>>, vector<1x1x3x256xf32>,
    return
  }
  func.func @transform_0(%arg0: i32) -> (i32, i32, i32, i32) {
    %c0_i32 = arith.constant 0 : i32
    %c0_i32_0 = arith.constant 0 : i32
    %c0_i32_1 = arith.constant 0 : i32
    %c0_i32_2 = arith.constant 0 : i32
    return %arg0, %c0_i32, %c0_i32_0, %c0_i32_1 : i32, i32, i32, i32
  }
  func.func @transform_1(%arg0: i32) -> (i32, i32) {
    %c0_i32 = arith.constant 0 : i32
    %c0_i32_0 = arith.constant 0 : i32
    %c0_i32_1 = arith.constant 0 : i32
    return %c0_i32, %c0_i32_0 : i32, i32
  }
  func.func @transform_2(%arg0: i32) -> (i32, i32) {
    %c0_i32 = arith.constant 0 : i32
    %c0_i32_0 = arith.constant 0 : i32
    %c0_i32_1 = arith.constant 0 : i32
    return %c0_i32, %c0_i32_0 : i32, i32
  }
  func.func @transform_3(%arg0: i32) -> (i32, i32) {
    %c0_i32 = arith.constant 0 : i32
    %c0_i32_0 = arith.constant 0 : i32
    %c0_i32_1 = arith.constant 0 : i32
    return %c0_i32, %c0_i32_0 : i32, i32
  }
  func.func @transform_4(%arg0: i32) -> (i32, i32) {
    %c0_i32 = arith.constant 0 : i32
    %c0_i32_0 = arith.constant 0 : i32
    %c0_i32_1 = arith.constant 0 : i32
    return %c0_i32, %c0_i32_0 : i32, i32
  }
  func.func @transform_5(%arg0: i32) -> (i32, i32) {
    %c0_i32 = arith.constant 0 : i32
    %c0_i32_0 = arith.constant 0 : i32
    %c0_i32_1 = arith.constant 0 : i32
    return %c0_i32, %c0_i32_0 : i32, i32
  }
  func.func @transform_6(%arg0: i32) -> (i32, i32) {
    %c0_i32 = arith.constant 0 : i32
    %c0_i32_0 = arith.constant 0 : i32
    %c0_i32_1 = arith.constant 0 : i32
    return %c0_i32, %c0_i32_0 : i32, i32
  }
  func.func @transform_7(%arg0: i32) -> (i32, i32) {
    %c0_i32 = arith.constant 0 : i32
    %c0_i32_0 = arith.constant 0 : i32
    %c0_i32_1 = arith.constant 0 : i32
    return %c0_i32, %c0_i32_0 : i32, i32
  }
  func.func @transform_8(%arg0: i32) -> (i32, i32) {
    %c0_i32 = arith.constant 0 : i32
    %c0_i32_0 = arith.constant 0 : i32
    %c0_i32_1 = arith.constant 0 : i32
    return %c0_i32, %c0_i32_0 : i32, i32
  }
  func.func @transform_9(%arg0: i32) -> (i32, i32) {
    %c0_i32 = arith.constant 0 : i32
    %c0_i32_0 = arith.constant 0 : i32
    %c0_i32_1 = arith.constant 0 : i32
    return %c0_i32, %c0_i32_0 : i32, i32
  }
  func.func @transform_10(%arg0: i32) -> (i32, i32, i32) {
    %c0_i32 = arith.constant 0 : i32
    %c0_i32_0 = arith.constant 0 : i32
    %c0_i32_1 = arith.constant 0 : i32
    return %arg0, %c0_i32, %c0_i32_0 : i32, i32, i32
  }
  func.func @transform_11(%arg0: i32) -> (i32, i32, i32, i32) {
    %c0_i32 = arith.constant 0 : i32
    %c0_i32_0 = arith.constant 0 : i32
    %c0_i32_1 = arith.constant 0 : i32
    %c0_i32_2 = arith.constant 0 : i32
    return %arg0, %c0_i32, %c0_i32_0, %c0_i32_1 : i32, i32, i32, i32
  }
}

</mosaic_0001>

<bundles_post_ra>
// kernel: tpu_custom_call.1
= control target key start
LH: loop header
LB: loop body
LE: loop exit
PB: predicated region body
PF: predicated region fallthrough
CT: control target
= control target key end

     0   :  { %s6387_s17 = smov 0   ;;  %s8433_s0 = inlined_call_operand.vmem [shape: f32[2,16,16,3], index: 0, kind: input, shape index: {}]   ;;  %s8434_s1 = inlined_call_operand.vmem [shape: f32[1,3], index: 1, kind: input, shape index: {}]   ;;  %s8435_s2 = inlined_call_operand.vmem [shape: f32[1,3], index: 2, kind: input, shape index: {}]   ;;  %s8436_s3 = inlined_call_operand.vmem [shape: bf16[27,32], index: 3, kind: input, shape index: {}]   ;;  %s8437_s4 = inlined_call_operand.vmem [shape: f32[1,32], index: 4, kind: input, shape index: {}]   ;;  %s8438_s5 = inlined_call_operand.vmem [shape: bf16[288,32], index: 5, kind: input, shape index: {}]   ;;  %s8439_s6 = inlined_call_operand.vmem [shape: f32[1,32], index: 6, kind: input, shape index: {}]   ;;  %s8440_s7 = inlined_call_operand.vmem [shape: bf16[15,32], index: 7, kind: input, shape index: {}]   ;;  %s8441_s8 = inlined_call_operand.vmem [shape: f32[15,1], index: 8, kind: input, shape index: {}]   ;;  %s8442_s9 = inlined_call_operand.vmem [shape: f32[9,256], index: 9, kind: input, shape index: {}]   ;;  %s8443_s10 = inlined_call_operand.vmem [shape: f32[2,3,256], index: 10, kind: output, shape index: {0}]   ;;  %s8444_s11 = inlined_call_operand.vmem [shape: f32[2,4,3,256], index: 11, kind: output, shape index: {1}]  }
   0x1 LB: > { %s4784_s18 = sadd.s32 4294967295, %s6311_s17   ;;  %p4788_p0 = scmp.ge.s32.totalorder %s6311_s17, 1  ;;  %s6311_s17 = sphi %s6387_s17, %s22_s17  }
   0x2   : > { %p340_p1 = scmp.lt.s32.totalorder %s6311_s17, 3 }
   0x4   : > { %p341_p2 = pnand %p4788_p0, %p340_p1 }
   0x5   : > { %vm401_vm0 = vcmask (!%p341_p2), 23552   ;;  %vm405_vm1 = vcmask (!%p341_p2), 16384   ;;  %v6313_v0 = vmov (!%p341_p2), 0.0   ;;  %p385_p3 = scmp.lt.s32.totalorder (!%p341_p2), %s4784_s18, 1  ;;  %v6492_v1 = vld [vmem:[%s8434_s1] ss:$0 sm:$0xff] (!%p341_p2) }
   0x6   : > { %344 = sbr.rel (%p341_p2) target bundleno = 1274 (0x4fa), region = 60  ;;  %403 = vst.msk [vmem:[#allocation2 + $0x8] sm:$0xff] (!%p341_p2), %vm401_vm0, %v6313_v0  ;;  %404 = vst.msk [vmem:[#allocation2 + $0x10] sm:$0xff] (!%p341_p2), %vm401_vm0, %v6313_v0  ;;  %v6498_v2 = vld [vmem:[%s8435_s2] ss:$0 sm:$0xff] (!%p341_p2)  ;;  %s6314_s27 = smov (!%p341_p2), 3  }
   0x7   : > { %406 = vst.msk [vmem:[#allocation2 + $0x18] sm:$0x1] (!%p341_p2), %vm405_vm1, %v6313_v0  ;;  %411 = vst.msk [vmem:[#allocation2 + $0x238] sm:$0x1] (!%p341_p2), %vm405_vm1, %v6313_v0  ;;  %s6315_s28 = smov (!%p341_p2), 6   ;;  %s6316_s29 = smov (!%p341_p2), 9  }
   0x8   : > { %402 = vst.msk [vmem:[#allocation2] sm:$0xff] (!%p341_p2), %vm401_vm0, %v6313_v0  ;;  %408 = vst.msk [vmem:[#allocation2 + $0x220] sm:$0xff] (!%p341_p2), %vm401_vm0, %v6313_v0  ;;  %s6317_s30 = smov (!%p341_p2), 12   ;;  %s6318_s12 = smov (!%p341_p2), 15   ;;  %vm2301_vm2 = vcmask (!%p341_p2), 1044480   ;;  %vm2302_vm3 = vcmask (!%p341_p2), 1045504  }
   0x9   : > { %409 = vst.msk [vmem:[#allocation2 + $0x228] sm:$0xff] (!%p341_p2), %vm401_vm0, %v6313_v0  ;;  %410 = vst.msk [vmem:[#allocation2 + $0x230] sm:$0xff] (!%p341_p2), %vm401_vm0, %v6313_v0  ;;  %s6320_s13 = smov (!%p341_p2), 18   ;;  %s6321_s20 = smov (!%p341_p2), 21   ;;  %vm1983_vm4 = vcmask (!%p341_p2), 48128   ;;  %vm2016_vm5 = vcmask (!%p341_p2), 72704  }
   0xa   : > { %413 = vst.msk [vmem:[#allocation2 + $0x27] sm:$0x1] (!%p341_p2), %vm405_vm1, %v6313_v0  ;;  %414 = vst.msk [vmem:[#allocation2 + $0x47] sm:$0x1] (!%p341_p2), %vm405_vm1, %v6313_v0  ;;  %vm2049_vm6 = vcmask (!%p341_p2), 97280   ;;  %vm2082_vm7 = vcmask (!%p341_p2), 121856  }
   0xb   : > { %415 = vst.msk [vmem:[#allocation2 + $0x67] sm:$0x1] (!%p341_p2), %vm405_vm1, %v6313_v0  ;;  %416 = vst.msk [vmem:[#allocation2 + $0x87] sm:$0x1] (!%p341_p2), %vm405_vm1, %v6313_v0  ;;  %vm2115_vm8 = vcmask (!%p341_p2), 146432   ;;  %vm2148_vm9 = vcmask (!%p341_p2), 171008  }
   0xc   : > { %417 = vst.msk [vmem:[#allocation2 + $0xa7] sm:$0x1] (!%p341_p2), %vm405_vm1, %v6313_v0  ;;  %418 = vst.msk [vmem:[#allocation2 + $0xc7] sm:$0x1] (!%p341_p2), %vm405_vm1, %v6313_v0  ;;  %vm2181_vm10 = vcmask (!%p341_p2), 195584   ;;  %vm2252_vm11 = vcmask (!%p341_p2), 220160  }
   0xd   : > { %419 = vst.msk [vmem:[#allocation2 + $0xe7] sm:$0x1] %vm405_vm1, %v6313_v0  ;;  %420 = vst.msk [vmem:[#allocation2 + $0x107] sm:$0x1] %vm405_vm1, %v6313_v0  ;;  %s8451_s18 = smov (!%p385_p3, %s4784_s18), 1  ;;  %v702_v6 = vld [vmem:[#allocation2 + $0x9] sm:$0xff] }
   0xe   : > { %421 = vst.msk [vmem:[#allocation2 + $0x127] sm:$0x1] %vm405_vm1, %v6313_v0  ;;  %422 = vst.msk [vmem:[#allocation2 + $0x147] sm:$0x1] %vm405_vm1, %v6313_v0  ;;  %s4862_s21 = sshll.u32 %s8451_s18, 8  ;;  %v670_v7 = vld [vmem:[#allocation2 + $0x8] sm:$0xff] }
   0xf   : > { %423 = vst.msk [vmem:[#allocation2 + $0x167] sm:$0x1] %vm405_vm1, %v6313_v0  ;;  %424 = vst.msk [vmem:[#allocation2 + $0x187] sm:$0x1] %vm405_vm1, %v6313_v0  ;;  %s6503_s26 = scalar_lea.vmem %s8433_s0, %s4862_s21  ;;  %v671_v8 = vld [vmem:[#allocation2 + $0x10] sm:$0xff]  ;;  %s6322_s21 = smov 24  }
  0x10   : > { %425 = vst.msk [vmem:[#allocation2 + $0x1a7] sm:$0x1] %vm405_vm1, %v6313_v0  ;;  %426 = vst.msk [vmem:[#allocation2 + $0x1c7] sm:$0x1] %vm405_vm1, %v6313_v0  ;;  %v495_v3 = vld [vmem:[%s6503_s26] sm:$0xff]  ;;  %v496_v4 = vld [vmem:[%s6503_s26 + $0x8] sm:$0xff]  ;;  %v5149_v13 = vpack.i.bf16 %v671_v8, %v670_v7 }
  0x11   : > { %427 = vst.msk [vmem:[#allocation2 + $0x1e7] sm:$0x1] %vm405_vm1, %v6313_v0  ;;  %428 = vst.msk [vmem:[#allocation2 + $0x207] sm:$0x1] %vm405_vm1, %v6313_v0  ;;  %v497_v5 = vld [vmem:[%s6503_s26 + $0x10] sm:$0xff]  ;;  %v534_v9 = vsub.f32 %v495_v3, %v6492_v1  ;;  %v535_v10 = vsub.f32 %v496_v4, %v6492_v1  ;;  %v498_v14 = vld [vmem:[%s6503_s26 + $0x18] sm:$0xff] }
  0x12   : > { %431 = vst.msk [vmem:[#allocation2 + $0x38] sm:$0x1] %vm405_vm1, %v6313_v0  ;;  %432 = vst.msk [vmem:[#allocation2 + $0x58] sm:$0x1] %vm405_vm1, %v6313_v0  ;;  %v536_v11 = vsub.f32 %v497_v5, %v6492_v1  ;;  %v499_v15 = vld [vmem:[%s6503_s26 + $0x20] sm:$0xff]  ;;  %v537_v19 = vsub.f32 %v498_v14, %v6492_v1  ;;  %v500_v20 = vld [vmem:[%s6503_s26 + $0x28] sm:$0xff]  ;;  %5150 = vrot.lane.b32.xlu0 %v5149_v13, %s6314_s27 }
  0x13   : > { %433 = vst.msk [vmem:[#allocation2 + $0x78] sm:$0x1] %vm405_vm1, %v6313_v0  ;;  %434 = vst.msk [vmem:[#allocation2 + $0x98] sm:$0x1] %vm405_vm1, %v6313_v0  ;;  %v573_v17 = vmul.f32 %v6498_v2, %v534_v9  ;;  %v574_v18 = vmul.f32 %v6498_v2, %v535_v10  ;;  %v501_v21 = vld [vmem:[%s6503_s26 + $0x30] sm:$0xff]  ;;  %v502_v22 = vld [vmem:[%s6503_s26 + $0x38] sm:$0xff]  ;;  %v538_v24 = vsub.f32 %v499_v15, %v6492_v1 }
  0x14   : > { %435 = vst.msk [vmem:[#allocation2 + $0xb8] sm:$0x1] %vm405_vm1, %v6313_v0  ;;  %436 = vst.msk [vmem:[#allocation2 + $0xd8] sm:$0x1] %vm405_vm1, %v6313_v0  ;;  %v575_v23 = vmul.f32 %v6498_v2, %v536_v11  ;;  %v539_v25 = vsub.f32 %v500_v20, %v6492_v1  ;;  %v540_v26 = vsub.f32 %v501_v21, %v6492_v1  ;;  %v503_v27 = vld [vmem:[%s6503_s26 + $0x40] sm:$0xff]  ;;  %v504_v28 = vld [vmem:[%s6503_s26 + $0x48] sm:$0xff] }
  0x15   : > { %437 = vst.msk [vmem:[#allocation2 + $0xf8] sm:$0x1] %vm405_vm1, %v6313_v0  ;;  %438 = vst.msk [vmem:[#allocation2 + $0x118] sm:$0x1] %vm405_vm1, %v6313_v0  ;;  %v505_v29 = vld [vmem:[%s6503_s26 + $0x50] sm:$0xff]  ;;  %v576_v30 = vmul.f32 %v6498_v2, %v537_v19  ;;  %v541_v31 = vsub.f32 %v502_v22, %v6492_v1  ;;  %v542_v32 = vsub.f32 %v503_v27, %v6492_v1  ;;  %v506_v34 = vld [vmem:[%s6503_s26 + $0x58] sm:$0xff] }
  0x16   : > { %439 = vst.msk [vmem:[#allocation2 + $0x138] sm:$0x1] %vm405_vm1, %v6313_v0  ;;  %440 = vst.msk [vmem:[#allocation2 + $0x158] sm:$0x1] %vm405_vm1, %v6313_v0  ;;  %v543_v33 = vsub.f32 %v504_v28, %v6492_v1  ;;  %v507_v35 = vld [vmem:[%s6503_s26 + $0x60] sm:$0xff]  ;;  %v508_v36 = vld [vmem:[%s6503_s26 + $0x68] sm:$0xff]  ;;  %v577_v37 = vmul.f32 %v6498_v2, %v538_v24  ;;  %v578_v38 = vmul.f32 %v6498_v2, %v539_v25 }
  0x17   : > { %441 = vst.msk [vmem:[#allocation2 + $0x178] sm:$0x1] %vm405_vm1, %v6313_v0  ;;  %442 = vst.msk [vmem:[#allocation2 + $0x198] sm:$0x1] %vm405_vm1, %v6313_v0  ;;  %v579_v39 = vmul.f32 %v6498_v2, %v540_v26  ;;  %v544_v40 = vsub.f32 %v505_v29, %v6492_v1  ;;  %v509_v41 = vld [vmem:[%s6503_s26 + $0x70] sm:$0xff]  ;;  %v510_v42 = vld [vmem:[%s6503_s26 + $0x78] sm:$0xff]  ;;  %v580_v43 = vmul.f32 %v6498_v2, %v541_v31 }
  0x18   : > { %443 = vst.msk [vmem:[#allocation2 + $0x1b8] sm:$0x1] %vm405_vm1, %v6313_v0  ;;  %444 = vst.msk [vmem:[#allocation2 + $0x1d8] sm:$0x1] %vm405_vm1, %v6313_v0  ;;  %v581_v44 = vmul.f32 %v6498_v2, %v542_v32  ;;  %v582_v45 = vmul.f32 %v6498_v2, %v543_v33  ;;  %v545_v46 = vsub.f32 %v506_v34, %v6492_v1  ;;  %v511_v47 = vld [vmem:[%s6503_s26 + $0x80] sm:$0xff]  ;;  %v512_v48 = vld [vmem:[%s6503_s26 + $0x88] sm:$0xff] }
  0x19   : > { %445 = vst.msk [vmem:[#allocation2 + $0x1f8] sm:$0x1] %vm405_vm1, %v6313_v0  ;;  %446 = vst.msk [vmem:[#allocation2 + $0x218] sm:$0x1] %vm405_vm1, %v6313_v0  ;;  %v583_v49 = vmul.f32 %v6498_v2, %v544_v40  ;;  %v546_v50 = vsub.f32 %v507_v35, %v6492_v1  ;;  %v547_v51 = vsub.f32 %v508_v36, %v6492_v1  ;;  %v513_v53 = vld [vmem:[%s6503_s26 + $0x90] sm:$0xff]  ;;  %v514_v54 = vld [vmem:[%s6503_s26 + $0x98] sm:$0xff] }
  0x1a   : > { %430 = vst.msk [vmem:[#allocation2 + $0x18] sm:$0x1] %vm405_vm1, %v6313_v0  ;;  %412 = vst.msk [vmem:[#allocation2 + $0x7] sm:$0x1] %vm405_vm1, %v6313_v0  ;;  %v548_v52 = vsub.f32 %v509_v41, %v6492_v1  ;;  %v584_v55 = vmul.f32 %v6498_v2, %v545_v46  ;;  %v549_v56 = vsub.f32 %v510_v42, %v6492_v1  ;;  %v6319_v31 = vmov 65535   ;;  %v6271_v34 = vld [vmem:[%s8436_s3] sm:$0xff]  }
  0x1b   : > { %429 = vst.msk [vmem:[#allocation2 + $0x227] sm:$0x1] %vm405_vm1, %v6313_v0  ;;  %447 = vst.msk [vmem:[#allocation2 + $0x238] sm:$0x1] %vm405_vm1, %v6313_v0  ;;  %v550_v57 = vsub.f32 %v511_v47, %v6492_v1  ;;  %v551_v58 = vsub.f32 %v512_v48, %v6492_v1  ;;  %v585_v59 = vmul.f32 %v6498_v2, %v546_v50  ;;  %v2303_v32 = vsel %vm2301_vm2, 4294967295, %v6319_v31  ;;  %v517_v46 = vld [vmem:[%s6503_s26 + $0xb0] sm:$0xff] }
  0x1c   : > { %606 = vst.msk [vmem:[#allocation2 + $0x28] sm:$0xff] %vm401_vm0, %v573_v17  ;;  %607 = vst.msk [vmem:[#allocation2 + $0x30] sm:$0xff] %vm401_vm0, %v574_v18  ;;  %v586_v60 = vmul.f32 %v6498_v2, %v547_v51  ;;  %v587_v61 = vmul.f32 %v6498_v2, %v548_v52  ;;  %v588_v62 = vmul.f32 %v6498_v2, %v549_v56  ;;  %v2304_v35 = vsel %vm2302_vm3, %v2303_v32, 0  ;;  %v6272_v36 = vld [vmem:[%s8436_s3 + $0x8] sm:$0x3f]   ;;  %v518_v47 = vld [vmem:[%s6503_s26 + $0xb8] sm:$0xff] }
  0x1d   : > { %608 = vst.msk [vmem:[#allocation2 + $0x48] sm:$0xff] %vm401_vm0, %v575_v23  ;;  %609 = vst.msk [vmem:[#allocation2 + $0x50] sm:$0xff] %vm401_vm0, %v576_v30  ;;  %v589_v63 = vmul.f32 %v6498_v2, %v550_v57  ;;  %v590_v3 = vmul.f32 %v6498_v2, %v551_v58  ;;  %v552_v7 = vsub.f32 %v513_v53, %v6492_v1  ;;  %5031 = vmatprep.subr.bf16.mxu0 %v6271_v34  ;;  %v519_v58 = vld [vmem:[%s6503_s26 + $0xc0] sm:$0xff]  ;;  %vm448_vm12 = vcmask 261120   ;;  %s6323_s22 = smov 32   ;;  %s6324_s23 = smov 64  }
  0x1e   : > { %610 = vst.msk [vmem:[#allocation2 + $0x68] sm:$0xff] %vm401_vm0, %v577_v37  ;;  %611 = vst.msk [vmem:[#allocation2 + $0x70] sm:$0xff] %vm401_vm0, %v578_v38  ;;  %v553_v8 = vsub.f32 %v514_v54, %v6492_v1  ;;  %v515_v37 = vld [vmem:[%s6503_s26 + $0xa0] sm:$0xff]  ;;  %v516_v38 = vld [vmem:[%s6503_s26 + $0xa8] sm:$0xff]  ;;  %5032 = vmatpush3.bf16.msra.mxu0 %v6271_v34  ;;  %v2306_v40 = vand.u32 %v6272_v36, %v2304_v35  ;;  %v556_v48 = vsub.f32 %v517_v46, %v6492_v1  ;;  %vm452_vm13 = vcmask 253952   ;;  %s6325_s14 = smov 96  }
  0x1f   : > { %612 = vst.msk [vmem:[#allocation2 + $0x88] sm:$0xff] %vm401_vm0, %v579_v39  ;;  %613 = vst.msk [vmem:[#allocation2 + $0x90] sm:$0xff] %vm401_vm0, %v580_v43  ;;  %v554_v39 = vsub.f32 %v515_v37, %v6492_v1  ;;  %v555_v41 = vsub.f32 %v516_v38, %v6492_v1  ;;  %v524_v34 = vld [vmem:[%s6503_s26 + $0xe8] sm:$0xff]  ;;  %vm3623_vm14 = vcmask 523264   ;;  %vm3656_vm15 = vcmask 785408  }
  0x20   : > { %614 = vst.msk [vmem:[#allocation2 + $0xa8] sm:$0xff] %vm401_vm0, %v581_v44  ;;  %615 = vst.msk [vmem:[#allocation2 + $0xb0] sm:$0xff] %vm401_vm0, %v582_v45  ;;  %v592_v17 = vmul.f32 %v6498_v2, %v553_v8  ;;  %5033 = vmatprep.subr.bf16.mxu0 %v2306_v40  ;;  %v595_v51 = vmul.f32 %v6498_v2, %v556_v48  ;;  %v563_v36 = vsub.f32 %v524_v34, %v6492_v1  ;;  %vm4647_vm1 = vcmask 1040384  }
  0x21   : > { %v703_v12 = vld [vmem:[#allocation2 + $0x11] sm:$0xff]  ;;  %616 = vst.msk [vmem:[#allocation2 + $0xc8] sm:$0xff] %vm401_vm0, %v583_v49  ;;  %617 = vst.msk [vmem:[#allocation2 + $0xd0] sm:$0xff] %vm401_vm0, %v584_v55  ;;  %v593_v44 = vmul.f32 %v6498_v2, %v554_v39  ;;  %v594_v45 = vmul.f32 %v6498_v2, %v555_v41  ;;  %v557_v49 = vsub.f32 %v518_v47, %v6492_v1  ;;  %v638_v34 = vld [vmem:[#allocation2 + $0x7] sm:$0xff] }
  0x22   : > { %v5154_v16 = vpack.i.bf16 %v703_v12, %v702_v6  ;;  %618 = vst.msk [vmem:[#allocation2 + $0xe8] sm:$0xff] %vm401_vm0, %v585_v59  ;;  %619 = vst.msk [vmem:[#allocation2 + $0xf0] sm:$0xff] %vm401_vm0, %v586_v60  ;;  %5034 = vmatpush3.bf16.msra.mxu0 %v2306_v40  ;;  %v520_v59 = vld [vmem:[%s6503_s26 + $0xc8] sm:$0xff]  ;;  %v558_v60 = vsub.f32 %v519_v58, %v6492_v1  ;;  %v602_v41 = vmul.f32 %v6498_v2, %v563_v36 }
  0x23   : > { %v704_v4 = vld [vmem:[#allocation2 + $0x29] sm:$0xff]  ;;  %v705_v5 = vld [vmem:[#allocation2 + $0x31] sm:$0xff]  ;;  %620 = vst.msk [vmem:[#allocation2 + $0x108] sm:$0xff] %vm401_vm0, %v587_v61  ;;  %621 = vst.msk [vmem:[#allocation2 + $0x110] sm:$0xff] %vm401_vm0, %v588_v62  ;;  %v596_v52 = vmul.f32 %v6498_v2, %v557_v49  ;;  %v559_v62 = vsub.f32 %v520_v59, %v6492_v1 }
  0x24   : > { %5155 = vrot.lane.b32.xlu1 %v5154_v16, %s6315_s28  ;;  %v672_v6 = vld [vmem:[#allocation2 + $0x28] sm:$0xff]  ;;  %v5164_v9 = vpack.i.bf16 %v705_v5, %v704_v4  ;;  %v673_v10 = vld [vmem:[#allocation2 + $0x30] sm:$0xff]  ;;  %622 = vst.msk [vmem:[#allocation2 + $0x128] sm:$0xff] %vm401_vm0, %v589_v63  ;;  %623 = vst.msk [vmem:[#allocation2 + $0x130] sm:$0xff] %vm401_vm0, %v590_v3  ;;  %v591_v16 = vmul.f32 %v6498_v2, %v552_v7  ;;  %v597_v4 = vmul.f32 %v6498_v2, %v558_v60 }
  0x25   : > { %v6580_v11 = vld [vmem:[#allocation2 + $0x47] sm:$0xff]  ;;  %v5159_v13 = vpack.i.bf16 %v673_v10, %v672_v6  ;;  %v6587_v14 = vld [vmem:[#allocation2 + $0x4f] sm:$0xff]  ;;  %625 = vst.msk [vmem:[#allocation2 + $0x150] sm:$0xff] %vm401_vm0, %v592_v17  ;;  %626 = vst.msk [vmem:[#allocation2 + $0x168] sm:$0xff] %vm401_vm0, %v593_v44  ;;  %v598_v5 = vmul.f32 %v6498_v2, %v559_v62 }
  0x26   : > { %v6582_v12 = vld [vmem:[#allocation2 + $0x27] sm:$0xff]  ;;  %v6589_v15 = vld [vmem:[#allocation2 + $0x2f] sm:$0xff]  ;;  %v5174_v18 = vpack.i.bf16 %v6587_v14, %v6580_v11  ;;  %624 = vst.msk [vmem:[#allocation2 + $0x148] sm:$0xff] %vm401_vm0, %v591_v16  ;;  %627 = vst.msk [vmem:[#allocation2 + $0x170] sm:$0xff] %vm401_vm0, %v594_v45 }
  0x27   : > { %5160 = vrot.lane.b32.xlu0 %v5159_v13, %s6314_s27  ;;  %v5169_v19 = vpack.i.bf16 %v6589_v15, %v6582_v12  ;;  %v768_v20 = vld [vmem:[#allocation2 + $0x48] sm:$0xff]  ;;  %v769_v21 = vld [vmem:[#allocation2 + $0x50] sm:$0xff]  ;;  %628 = vst.msk [vmem:[#allocation2 + $0x188] sm:$0xff] %vm401_vm0, %v595_v51  ;;  %629 = vst.msk [vmem:[#allocation2 + $0x190] sm:$0xff] %vm401_vm0, %v596_v52 }
  0x28   : > { %5165 = vrot.lane.b32.xlu1 %v5164_v9, %s6315_s28  ;;  %v5184_v22 = vpack.i.bf16 %v769_v21, %v768_v20  ;;  %v800_v23 = vld [vmem:[#allocation2 + $0x49] sm:$0xff]  ;;  %v801_v24 = vld [vmem:[#allocation2 + $0x51] sm:$0xff]  ;;  %630 = vst.msk [vmem:[#allocation2 + $0x1a8] sm:$0xff] %vm401_vm0, %v597_v4  ;;  %631 = vst.msk [vmem:[#allocation2 + $0x1b0] sm:$0xff] %vm401_vm0, %v598_v5 }
  0x29   : > { %v5194_v25 = vpack.i.bf16 %v801_v24, %v800_v23  ;;  %v6605_v26 = vld [vmem:[#allocation2 + $0x67] sm:$0xff]  ;;  %v6607_v27 = vld [vmem:[#allocation2 + $0x6f] sm:$0xff]  ;;  %v522_v21 = vld [vmem:[%s6503_s26 + $0xd8] sm:$0xff]  ;;  %635 = vst.msk [vmem:[#allocation2 + $0x1f0] sm:$0xff] %vm401_vm0, %v602_v41 }
  0x2a   : > { %v5204_v28 = vpack.i.bf16 %v6607_v27, %v6605_v26  ;;  %v865_v29 = vld [vmem:[#allocation2 + $0x68] sm:$0xff]  ;;  %v866_v30 = vld [vmem:[#allocation2 + $0x70] sm:$0xff]  ;;  %v561_v23 = vsub.f32 %v522_v21, %v6492_v1  ;;  %449 = vst.msk [vmem:[#allocation3] sm:$0xff] %vm448_vm12, %v6313_v0  ;;  %450 = vst.msk [vmem:[#allocation3 + $0x8] sm:$0xff] %vm448_vm12, %v6313_v0 }
  0x2b   : > { %5170 = vrot.lane.b32.xlu0 %v5169_v19, %s6316_s29  ;;  %v5214_v33 = vpack.i.bf16 %v866_v30, %v865_v29  ;;  %v897_v42 = vld [vmem:[#allocation2 + $0x69] sm:$0xff]  ;;  %v898_v43 = vld [vmem:[#allocation2 + $0x71] sm:$0xff]  ;;  %451 = vst.msk [vmem:[#allocation3 + $0x10] sm:$0xff] %vm448_vm12, %v6313_v0  ;;  %455 = vst.msk [vmem:[#allocation3 + $0x220] sm:$0xff] %vm448_vm12, %v6313_v0 }
  0x2c   : > { %5175 = vrot.lane.b32.xlu1 %v5174_v18, %s6316_s29  ;;  %v5229_v50 = vpack.i.bf16 %v898_v43, %v897_v42  ;;  %v740_v53 = vld [vmem:[#allocation2 + $0x87] sm:$0xff]  ;;  %v741_v54 = vld [vmem:[#allocation2 + $0x8f] sm:$0xff]  ;;  %456 = vst.msk [vmem:[#allocation3 + $0x228] sm:$0xff] %vm448_vm12, %v6313_v0  ;;  %457 = vst.msk [vmem:[#allocation3 + $0x230] sm:$0xff] %vm448_vm12, %v6313_v0 }
  0x2d   : > { %v5254_v55 = vpack.i.bf16 %v741_v54, %v740_v53  ;;  %v772_v56 = vld [vmem:[#allocation2 + $0x88] sm:$0xff]  ;;  %v773_v57 = vld [vmem:[#allocation2 + $0x90] sm:$0xff]  ;;  %v526_v53 = vld [vmem:[%s6503_s26 + $0xf8] sm:$0xff]  ;;  %453 = vst.msk [vmem:[#allocation3 + $0x18] sm:$0x1] %vm452_vm13, %v6313_v0 }
  0x2e   : > { %v5264_v61 = vpack.i.bf16 %v773_v57, %v772_v56  ;;  %v804_v63 = vld [vmem:[#allocation2 + $0x89] sm:$0xff]  ;;  %v805_v3 = vld [vmem:[#allocation2 + $0x91] sm:$0xff]  ;;  %458 = vst.msk [vmem:[#allocation3 + $0x238] sm:$0x1] %vm452_vm13, %v6313_v0  ;;  %459 = vst.msk [vmem:[#allocation3 + $0x7] sm:$0x1] %vm452_vm13, %v6313_v0 }
  0x2f   : > { %5180 = vrot.lane.b32.xlu0 %v5159_v13, %s6317_s30  ;;  %v5274_v6 = vpack.i.bf16 %v805_v3, %v804_v63  ;;  %v6659_v7 = vld [vmem:[#allocation2 + $0xa7] sm:$0xff]  ;;  %v6661_v8 = vld [vmem:[#allocation2 + $0xaf] sm:$0xff]  ;;  %460 = vst.msk [vmem:[#allocation3 + $0x27] sm:$0x1] %vm452_vm13, %v6313_v0  ;;  %461 = vst.msk [vmem:[#allocation3 + $0x47] sm:$0x1] %vm452_vm13, %v6313_v0 }
  0x30   : > { %5185 = vrot.lane.b32.xlu1 %v5184_v22, %s6317_s30  ;;  %v869_v10 = vld [vmem:[#allocation2 + $0xa8] sm:$0xff]  ;;  %v870_v13 = vld [vmem:[#allocation2 + $0xb0] sm:$0xff]  ;;  %462 = vst.msk [vmem:[#allocation3 + $0x67] sm:$0x1] %vm452_vm13, %v6313_v0  ;;  %463 = vst.msk [vmem:[#allocation3 + $0x87] sm:$0x1] %vm452_vm13, %v6313_v0 }
  0x31   : > { %v5294_v16 = vpack.i.bf16 %v870_v13, %v869_v10  ;;  %v901_v17 = vld [vmem:[#allocation2 + $0xa9] sm:$0xff]  ;;  %v809_v39 = vld [vmem:[#allocation2 + $0xd1] sm:$0xff]  ;;  %464 = vst.msk [vmem:[#allocation3 + $0xa7] sm:$0x1] %vm452_vm13, %v6313_v0  ;;  %465 = vst.msk [vmem:[#allocation3 + $0xc7] sm:$0x1] %vm452_vm13, %v6313_v0 }
  0x32   : > { %v521_v20 = vld [vmem:[%s6503_s26 + $0xd0] sm:$0xff]  ;;  %v776_v31 = vld [vmem:[#allocation2 + $0xc8] sm:$0xff]  ;;  %466 = vst.msk [vmem:[#allocation3 + $0xe7] sm:$0x1] %vm452_vm13, %v6313_v0  ;;  %467 = vst.msk [vmem:[#allocation3 + $0x107] sm:$0x1] %vm452_vm13, %v6313_v0 }
  0x33   : > { %5190 = vrot.lane.b32.xlu0 %v5164_v9, %s6318_s12  ;;  %v5284_v9 = vpack.i.bf16 %v6661_v8, %v6659_v7  ;;  %v745_v29 = vld [vmem:[#allocation2 + $0xcf] sm:$0xff]  ;;  %v841_v43 = vld [vmem:[#allocation2 + $0xe7] sm:$0xff]  ;;  %468 = vst.msk [vmem:[#allocation3 + $0x127] sm:$0x1] %vm452_vm13, %v6313_v0  ;;  %469 = vst.msk [vmem:[#allocation3 + $0x147] sm:$0x1] %vm452_vm13, %v6313_v0 }
  0x34   : > { %5195 = vrot.lane.b32.xlu1 %v5194_v25, %s6318_s12  ;;  %v777_v32 = vld [vmem:[#allocation2 + $0xd0] sm:$0xff]  ;;  %v873_v46 = vld [vmem:[#allocation2 + $0xe8] sm:$0xff]  ;;  %470 = vst.msk [vmem:[#allocation3 + $0x167] sm:$0x1] %vm452_vm13, %v6313_v0  ;;  %471 = vst.msk [vmem:[#allocation3 + $0x187] sm:$0x1] %vm452_vm13, %v6313_v0 }
  0x35   : > { %v5344_v37 = vpack.i.bf16 %v777_v32, %v776_v31  ;;  %v808_v38 = vld [vmem:[#allocation2 + $0xc9] sm:$0xff]  ;;  %v813_v63 = vld [vmem:[#allocation2 + $0x111] sm:$0xff]  ;;  %472 = vst.msk [vmem:[#allocation3 + $0x1a7] sm:$0x1] %vm452_vm13, %v6313_v0  ;;  %473 = vst.msk [vmem:[#allocation3 + $0x1c7] sm:$0x1] %vm452_vm13, %v6313_v0 }
  0x36   : > { %v5354_v42 = vpack.i.bf16 %v809_v39, %v808_v38  ;;  %v842_v44 = vld [vmem:[#allocation2 + $0xef] sm:$0xff]  ;;  %v748_v58 = vld [vmem:[#allocation2 + $0x107] sm:$0xff]  ;;  %474 = vst.msk [vmem:[#allocation3 + $0x1e7] sm:$0x1] %vm452_vm13, %v6313_v0  ;;  %475 = vst.msk [vmem:[#allocation3 + $0x207] sm:$0x1] %vm452_vm13, %v6313_v0 }
  0x37   : > { %5200 = vrot.lane.b32.xlu0 %v5174_v18, %s6320_s13  ;;  %v902_v18 = vld [vmem:[#allocation2 + $0xb1] sm:$0xff]  ;;  %v5364_v45 = vpack.i.bf16 %v842_v44, %v841_v43  ;;  %v905_v49 = vld [vmem:[#allocation2 + $0xe9] sm:$0xff]  ;;  %476 = vst.msk [vmem:[#allocation3 + $0x227] sm:$0x1] %vm452_vm13, %v6313_v0  ;;  %478 = vst.msk [vmem:[#allocation3 + $0x38] sm:$0x1] %vm452_vm13, %v6313_v0 }
  0x38   : > { %5205 = vrot.lane.b32.xlu1 %v5204_v28, %s6320_s13  ;;  %v5304_v19 = vpack.i.bf16 %v902_v18, %v901_v17  ;;  %v874_v47 = vld [vmem:[#allocation2 + $0xf0] sm:$0xff]  ;;  %v845_v4 = vld [vmem:[#allocation2 + $0x127] sm:$0xff]  ;;  %479 = vst.msk [vmem:[#allocation3 + $0x58] sm:$0x1] %vm452_vm13, %v6313_v0  ;;  %480 = vst.msk [vmem:[#allocation3 + $0x78] sm:$0x1] %vm452_vm13, %v6313_v0 }
  0x39   : > { %v5374_v48 = vpack.i.bf16 %v874_v47, %v873_v46  ;;  %v525_v52 = vld [vmem:[%s6503_s26 + $0xf0] sm:$0xff]  ;;  %v877_v13 = vld [vmem:[#allocation2 + $0x128] sm:$0xff]  ;;  %481 = vst.msk [vmem:[#allocation3 + $0x98] sm:$0x1] %vm452_vm13, %v6313_v0  ;;  %482 = vst.msk [vmem:[#allocation3 + $0xb8] sm:$0x1] %vm452_vm13, %v6313_v0 }
  0x3a   : > { %v564_v54 = vsub.f32 %v525_v52, %v6492_v1  ;;  %v749_v59 = vld [vmem:[#allocation2 + $0x10f] sm:$0xff]  ;;  %483 = vst.msk [vmem:[#allocation3 + $0xd8] sm:$0x1] %vm452_vm13, %v6313_v0  ;;  %484 = vst.msk [vmem:[#allocation3 + $0xf8] sm:$0x1] %vm452_vm13, %v6313_v0 }
  0x3b   : > { %5210 = vrot.lane.b32.xlu0 %v5184_v22, %s6321_s20  ;;  %v5414_v60 = vpack.i.bf16 %v749_v59, %v748_v58  ;;  %v812_v62 = vld [vmem:[#allocation2 + $0x109] sm:$0xff]  ;;  %485 = vst.msk [vmem:[#allocation3 + $0x118] sm:$0x1] %vm452_vm13, %v6313_v0  ;;  %486 = vst.msk [vmem:[#allocation3 + $0x138] sm:$0x1] %vm452_vm13, %v6313_v0 }
  0x3c   : > { %5215 = vrot.lane.b32.xlu1 %v5214_v33, %s6321_s20  ;;  %v603_v56 = vmul.f32 %v6498_v2, %v564_v54  ;;  %v5434_v3 = vpack.i.bf16 %v813_v63, %v812_v62  ;;  %v846_v5 = vld [vmem:[#allocation2 + $0x12f] sm:$0xff]  ;;  %487 = vst.msk [vmem:[#allocation3 + $0x158] sm:$0x1] %vm452_vm13, %v6313_v0  ;;  %488 = vst.msk [vmem:[#allocation3 + $0x178] sm:$0x1] %vm452_vm13, %v6313_v0 }
  0x3d   : > { %v909_v18 = vld [vmem:[#allocation2 + $0x129] sm:$0xff]  ;;  %489 = vst.msk [vmem:[#allocation3 + $0x198] sm:$0x1] %vm452_vm13, %v6313_v0  ;;  %490 = vst.msk [vmem:[#allocation3 + $0x1b8] sm:$0x1] %vm452_vm13, %v6313_v0 }
  0x3e   : > { %636 = vst.msk [vmem:[#allocation2 + $0x208] sm:$0xff] %vm401_vm0, %v603_v56  ;;  %v785_v43 = vld [vmem:[#allocation2 + $0x150] sm:$0xff] }
  0x3f   : > { %5220 = vrot.lane.b32.xlu0 %v5194_v25, %s6322_s21  ;;  %v816_v44 = vld [vmem:[#allocation2 + $0x149] sm:$0xff]  ;;  %491 = vst.msk [vmem:[#allocation3 + $0x1d8] sm:$0x1] %vm452_vm13, %v6313_v0  ;;  %492 = vst.msk [vmem:[#allocation3 + $0x1f8] sm:$0x1] %vm452_vm13, %v6313_v0 }
  0x40   : > { %5225 = vrot.lane.b32.xlu1 %v5184_v22, %s6314_s27  ;;  %v560_v22 = vsub.f32 %v521_v20, %v6492_v1  ;;  %v850_v52 = vld [vmem:[#allocation2 + $0x16f] sm:$0xff]  ;;  %493 = vst.msk [vmem:[#allocation3 + $0x218] sm:$0x1] %vm452_vm13, %v6313_v0  ;;  %477 = vst.msk [vmem:[#allocation3 + $0x18] sm:$0x1] %vm452_vm13, %v6313_v0 }
  0x41   : > { %494 = vst.msk [vmem:[#allocation3 + $0x238] sm:$0x1] %vm452_vm13, %v6313_v0  ;;  %v893_v0 = vld [vmem:[#allocation2 + $0x228] sm:$0xff] }
  0x42   : > { %v599_v24 = vmul.f32 %v6498_v2, %v560_v22 }
  0x43   : > { %5230 = vrot.lane.b32.xlu0 %v5229_v50, %s6322_s21 }
  0x44   : > { %5235 = vrot.lane.b32.xlu1 %v5214_v33, %s6314_s27  ;;  %632 = vst.msk [vmem:[#allocation2 + $0x1c8] sm:$0xff] %vm401_vm0, %v599_v24 }
  0x47   : > { %5240 = vrot.lane.b32.xlu0 %v5194_v25, %s6315_s28  ;;  %v600_v25 = vmul.f32 %v6498_v2, %v561_v23 }
  0x48   : > { %5245 = vrot.lane.b32.xlu1 %v5229_v50, %s6315_s28 }
  0x49   : > { %633 = vst.msk [vmem:[#allocation2 + $0x1d0] sm:$0xff] %vm401_vm0, %v600_v25 }
  0x4b   : > { %5250 = vrot.lane.b32.xlu0 %v5204_v28, %s6316_s29  ;;  %v744_v28 = vld [vmem:[#allocation2 + $0xc7] sm:$0xff] }
  0x4c   : > { %5255 = vrot.lane.b32.xlu1 %v5254_v55, %s6316_s29  ;;  %v5334_v30 = vpack.i.bf16 %v745_v29, %v744_v28  ;;  %v752_v29 = vld [vmem:[#allocation2 + $0x147] sm:$0xff] }
  0x4f   : > { %5260 = vrot.lane.b32.xlu0 %v5214_v33, %s6317_s30  ;;  %v523_v33 = vld [vmem:[%s6503_s26 + $0xe0] sm:$0xff]  ;;  %s4863_s26 = sshll.u32 %s8451_s18, 3 }
  0x50   : > { %5265 = vrot.lane.b32.xlu1 %v5264_v61, %s6317_s30  ;;  %v562_v35 = vsub.f32 %v523_v33, %v6492_v1 }
  0x52   : > { %v601_v40 = vmul.f32 %v6498_v2, %v562_v35  ;;  %v639_v35 = vld [vmem:[#allocation2 + $0xf] sm:$0xff] }
  0x53   : > { %5270 = vrot.lane.b32.xlu0 %v5229_v50, %s6318_s12  ;;  %v906_v50 = vld [vmem:[#allocation2 + $0xf1] sm:$0xff] }
  0x54   : > { %5275 = vrot.lane.b32.xlu1 %v5274_v6, %s6318_s12  ;;  %634 = vst.msk [vmem:[#allocation2 + $0x1e8] sm:$0xff] %vm401_vm0, %v601_v40  ;;  %v5384_v51 = vpack.i.bf16 %v906_v50, %v905_v49  ;;  %v817_v50 = vld [vmem:[#allocation2 + $0x151] sm:$0xff] }
  0x57   : > { %5280 = vrot.lane.b32.xlu0 %v5254_v55, %s6320_s13  ;;  %v565_v55 = vsub.f32 %v526_v53, %v6492_v1  ;;  %v780_v1 = vld [vmem:[#allocation2 + $0x108] sm:$0xff] }
  0x58   : > { %5285 = vrot.lane.b32.xlu1 %v5284_v9, %s6320_s13 }
  0x59   : > { %v604_v57 = vmul.f32 %v6498_v2, %v565_v55 }
  0x5b   : > { %5290 = vrot.lane.b32.xlu0 %v5264_v61, %s6321_s20  ;;  %637 = vst.msk [vmem:[#allocation2 + $0x210] sm:$0xff] %vm401_vm0, %v604_v57 }
  0x5c   : > { %5295 = vrot.lane.b32.xlu1 %v5294_v16, %s6321_s20 }
  0x5f   : > { %5300 = vrot.lane.b32.xlu0 %v5274_v6, %s6322_s21 }
  0x60   : > { %5305 = vrot.lane.b32.xlu1 %v5304_v19, %s6322_s21 }
  0x63   : > { %5310 = vrot.lane.b32.xlu0 %v5264_v61, %s6314_s27  ;;  %v781_v61 = vld [vmem:[#allocation2 + $0x110] sm:$0xff] }
  0x64   : > { %5315 = vrot.lane.b32.xlu1 %v5294_v16, %s6314_s27  ;;  %v5424_v2 = vpack.i.bf16 %v781_v61, %v780_v1 }
  0x67   : > { %5320 = vrot.lane.b32.xlu0 %v5274_v6, %s6315_s28 }
  0x68   : > { %5325 = vrot.lane.b32.xlu1 %v5304_v19, %s6315_s28 }
  0x6b   : > { %5330 = vrot.lane.b32.xlu0 %v5284_v9, %s6316_s29  ;;  %v6724_v9 = vpack.i.bf16 %v846_v5, %v845_v4 }
  0x6c   : > { %5335 = vrot.lane.b32.xlu1 %v5334_v30, %s6316_s29 }
  0x6f   : > { %5340 = vrot.lane.b32.xlu0 %v5294_v16, %s6317_s30  ;;  %v878_v16 = vld [vmem:[#allocation2 + $0x130] sm:$0xff] }
  0x70   : > { %5345 = vrot.lane.b32.xlu1 %v5344_v37, %s6317_s30  ;;  %v6729_v17 = vpack.i.bf16 %v878_v16, %v877_v13 }
  0x73   : > { %5350 = vrot.lane.b32.xlu0 %v5304_v19, %s6318_s12  ;;  %v910_v19 = vld [vmem:[#allocation2 + $0x131] sm:$0xff] }
  0x74   : > { %5355 = vrot.lane.b32.xlu1 %v5354_v42, %s6318_s12  ;;  %v6736_v22 = vpack.i.bf16 %v910_v19, %v909_v18 }
  0x77   : > { %5360 = vrot.lane.b32.xlu0 %v5334_v30, %s6320_s13  ;;  %v753_v30 = vld [vmem:[#allocation2 + $0x14f] sm:$0xff] }
  0x78   : > { %5365 = vrot.lane.b32.xlu1 %v5364_v45, %s6320_s13  ;;  %v6759_v39 = vpack.i.bf16 %v753_v30, %v752_v29 }
  0x7b   : > { %5370 = vrot.lane.b32.xlu0 %v5344_v37, %s6321_s20 }
  0x7c   : > { %5375 = vrot.lane.b32.xlu1 %v5374_v48, %s6321_s20 }
  0x7f   : > { %5380 = vrot.lane.b32.xlu0 %v5354_v42, %s6322_s21 }
  0x80   : > { %5385 = vrot.lane.b32.xlu1 %v5384_v51, %s6322_s21 }
  0x83   : > { %5390 = vrot.lane.b32.xlu0 %v5344_v37, %s6314_s27 }
  0x84   : > { %5395 = vrot.lane.b32.xlu1 %v5374_v48, %s6314_s27  ;;  %v5151_v10 = vpop.permute.xlu0 %5150 }
  0x85   : > { %v5153_v31 = vunpack.i.h.bf16 %v5151_v10  ;;  %v5152_v32 = vunpack.i.l.bf16 %v5151_v10 }
  0x87   : > { %5400 = vrot.lane.b32.xlu0 %v5354_v42, %s6315_s28  ;;  %v784_v42 = vld [vmem:[#allocation2 + $0x148] sm:$0xff]  ;;  %v1952_v46 = vsel %vm401_vm0, %v639_v35, %v5153_v31 }
  0x88   : > { %5405 = vrot.lane.b32.xlu1 %v5384_v51, %s6315_s28 }
  0x8b   : > { %5410 = vrot.lane.b32.xlu0 %v5364_v45, %s6316_s29  ;;  %v1951_v45 = vsel %vm401_vm0, %v638_v34, %v5152_v32 }
  0x8c   : > { %5415 = vrot.lane.b32.xlu1 %v5414_v60, %s6316_s29 }
  0x8f   : > { %5420 = vrot.lane.b32.xlu0 %v5374_v48, %s6317_s30 }
  0x90   : > { %5425 = vrot.lane.b32.xlu1 %v5424_v2, %s6317_s30 }
  0x93   : > { %5430 = vrot.lane.b32.xlu0 %v5384_v51, %s6318_s12  ;;  %v849_v51 = vld [vmem:[#allocation2 + $0x167] sm:$0xff] }
  0x94   : > { %5435 = vrot.lane.b32.xlu1 %v5434_v3, %s6318_s12  ;;  %v6788_v61 = vpack.i.bf16 %v850_v52, %v849_v51 }
  0x96   : > { %v6722_v6 = vpop.permute.xlu1 %5155 }
  0x97   : > { %5440 = vrot.lane.b32.xlu0 %v5414_v60, %s6320_s13  ;;  %v5158_v40 = vunpack.i.h.bf16 %v6722_v6  ;;  %v5157_v41 = vunpack.i.l.bf16 %v6722_v6  ;;  %v6780_v60 = vpack.i.bf16 %v785_v43, %v784_v42  ;;  %v881_v42 = vld [vmem:[#allocation2 + $0x168] sm:$0xff]  ;;  %v882_v43 = vld [vmem:[#allocation2 + $0x170] sm:$0xff] }
  0x98   : > { %5445 = vrot.lane.b32.xlu1 %v6724_v9, %s6320_s13 }
  0x99   : > { %v5161_v21 = vpop.permute.xlu0 %5160  ;;  %v1985_v1 = vsel %vm1983_vm4, %v1952_v46, %v5158_v40 }
  0x9a   : > { %v6732_v20 = vpop.permute.xlu1 %5165  ;;  %v5163_v36 = vunpack.i.h.bf16 %v5161_v21  ;;  %v5162_v37 = vunpack.i.l.bf16 %v5161_v21 }
  0x9b   : > { %5450 = vrot.lane.b32.xlu0 %v5424_v2, %s6321_s20  ;;  %v5168_v47 = vunpack.i.h.bf16 %v6732_v20  ;;  %v5167_v48 = vunpack.i.l.bf16 %v6732_v20 }
  0x9c   : > { %5455 = vrot.lane.b32.xlu1 %v6729_v17, %s6321_s20  ;;  %v1953_v53 = vsel %vm401_vm0, %v6582_v12, %v5162_v37  ;;  %v1954_v54 = vsel %vm401_vm0, %v6589_v15, %v5163_v36  ;;  %v1984_v12 = vsel %vm1983_vm4, %v1951_v45, %v5157_v41  ;;  %v6786_v15 = vpack.i.bf16 %v817_v50, %v816_v44 }
  0x9d   : > { %v6741_v24 = vpop.permute.xlu0 %5170  ;;  %v1987_v62 = vsel %vm1983_vm4, %v1954_v54, %v5168_v47 }
  0x9e   : > { %v6739_v23 = vpop.permute.xlu1 %5175  ;;  %v5173_v58 = vunpack.i.h.bf16 %v6741_v24  ;;  %v5172_v59 = vunpack.i.l.bf16 %v6741_v24 }
  0x9f   : > { %5460 = vrot.lane.b32.xlu0 %v5434_v3, %s6322_s21  ;;  %v5178_v55 = vunpack.i.h.bf16 %v6739_v23  ;;  %v5177_v56 = vunpack.i.l.bf16 %v6739_v23 }
  0xa0   : > { %5465 = vrot.lane.b32.xlu1 %v6736_v22, %s6322_s21  ;;  %v2018_v16 = vsel %vm2016_vm5, %v1985_v1, %v5173_v58  ;;  %v2017_v18 = vsel %vm2016_vm5, %v1984_v12, %v5172_v59 }
  0xa1   : > { %v6748_v28 = vpop.permute.xlu0 %5180  ;;  %v2020_v6 = vsel %vm2016_vm5, %v1987_v62, %v5178_v55  ;;  %v913_v62 = vld [vmem:[#allocation2 + $0x169] sm:$0xff] }
  0xa2   : > { %v6746_v25 = vpop.permute.xlu1 %5185  ;;  %v5183_v63 = vunpack.i.h.bf16 %v6748_v28 }
  0xa3   : > { %5470 = vrot.lane.b32.xlu0 %v5424_v2, %s6314_s27  ;;  %v1986_v2 = vsel %vm1983_vm4, %v1953_v53, %v5167_v48  ;;  %v5188_v21 = vunpack.i.h.bf16 %v6746_v25  ;;  %v5187_v23 = vunpack.i.l.bf16 %v6746_v25 }
  0xa4   : > { %5475 = vrot.lane.b32.xlu1 %v6729_v17, %s6314_s27  ;;  %v2019_v5 = vsel %vm2016_vm5, %v1986_v2, %v5177_v56  ;;  %v2051_v30 = vsel %vm2049_vm6, %v2018_v16, %v5183_v63  ;;  %v6832_v56 = vpack.i.bf16 %v882_v43, %v881_v42  ;;  %v914_v63 = vld [vmem:[#allocation2 + $0x171] sm:$0xff] }
  0xa5   : > { %v6755_v38 = vpop.permute.xlu0 %5190  ;;  %v2052_v48 = vsel %vm2049_vm6, %v2019_v5, %v5187_v23  ;;  %v789_v23 = vld [vmem:[#allocation2 + $0x190] sm:$0xff] }
  0xa6   : > { %v6753_v33 = vpop.permute.xlu1 %5195  ;;  %v5192_v10 = vunpack.i.l.bf16 %v6755_v38 }
  0xa7   : > { %5480 = vrot.lane.b32.xlu0 %v5434_v3, %s6315_s28  ;;  %v5182_v3 = vunpack.i.l.bf16 %v6748_v28  ;;  %v5198_v31 = vunpack.i.h.bf16 %v6753_v33  ;;  %v5197_v32 = vunpack.i.l.bf16 %v6753_v33 }
  0xa8   : > { %5485 = vrot.lane.b32.xlu1 %v6736_v22, %s6315_s28 }
  0xa9   : > { %v5201_v57 = vpop.permute.xlu0 %5200  ;;  %v2050_v29 = vsel %vm2049_vm6, %v2017_v18, %v5182_v3  ;;  %v2085_v53 = vsel %vm2082_vm7, %v2052_v48, %v5197_v32  ;;  %v854_v32 = vld [vmem:[#allocation2 + $0x1af] sm:$0xff] }
  0xaa   : > { %v6768_v49 = vpop.permute.xlu1 %5205  ;;  %v5203_v19 = vunpack.i.h.bf16 %v5201_v57  ;;  %v5202_v20 = vunpack.i.l.bf16 %v5201_v57  ;;  %v2083_v35 = vsel %vm2082_vm7, %v2050_v29, %v5192_v10  ;;  %v6847_v10 = vpack.i.bf16 %v914_v63, %v913_v62 }
  0xab   : > { %5490 = vrot.lane.b32.xlu0 %v6724_v9, %s6316_s29  ;;  %v5193_v9 = vunpack.i.h.bf16 %v6755_v38  ;;  %v5208_v25 = vunpack.i.h.bf16 %v6768_v49  ;;  %v5207_v37 = vunpack.i.l.bf16 %v6768_v49  ;;  %v2053_v49 = vsel %vm2049_vm6, %v2020_v6, %v5188_v21  ;;  %v788_v21 = vld [vmem:[#allocation2 + $0x188] sm:$0xff] }
  0xac   : > { %5495 = vrot.lane.b32.xlu1 %v6759_v39, %s6316_s29  ;;  %v2116_v41 = vsel %vm2115_vm8, %v2083_v35, %v5202_v20  ;;  %v2086_v54 = vsel %vm2082_vm7, %v2053_v49, %v5198_v31  ;;  %v757_v20 = vld [vmem:[#allocation2 + $0x18f] sm:$0xff]  ;;  %v853_v31 = vld [vmem:[#allocation2 + $0x1a7] sm:$0xff]  ;;  %v6868_v42 = vpack.i.bf16 %v789_v23, %v788_v21 }
  0xad   : > { %v5211_v13 = vpop.permute.xlu0 %5210  ;;  %v2084_v36 = vsel %vm2082_vm7, %v2051_v30, %v5193_v9  ;;  %v2118_v57 = vsel %vm2115_vm8, %v2085_v53, %v5207_v37  ;;  %v2119_v58 = vsel %vm2115_vm8, %v2086_v54, %v5208_v25  ;;  %v821_v30 = vld [vmem:[#allocation2 + $0x191] sm:$0xff] }
  0xae   : > { %v5216_v4 = vpop.permute.xlu1 %5215  ;;  %v5213_v24 = vunpack.i.h.bf16 %v5211_v13  ;;  %v5212_v28 = vunpack.i.l.bf16 %v5211_v13  ;;  %v2117_v33 = vsel %vm2115_vm8, %v2084_v36, %v5203_v19  ;;  %v756_v19 = vld [vmem:[#allocation2 + $0x187] sm:$0xff] }
  0xaf   : > { %5500 = vrot.lane.b32.xlu0 %v6729_v17, %s6317_s30  ;;  %v5218_v44 = vunpack.i.h.bf16 %v5216_v4  ;;  %v5217_v45 = vunpack.i.l.bf16 %v5216_v4 }
  0xb0   : > { %5505 = vrot.lane.b32.xlu1 %v6780_v60, %s6317_s30  ;;  %v2149_v46 = vsel %vm2148_vm9, %v2116_v41, %v5212_v28  ;;  %v2150_v47 = vsel %vm2148_vm9, %v2117_v33, %v5213_v24  ;;  %v820_v24 = vld [vmem:[#allocation2 + $0x189] sm:$0xff]  ;;  %v6866_v33 = vpack.i.bf16 %v757_v20, %v756_v19 }
  0xb1   : > { %v5221_v38 = vpop.permute.xlu0 %5220  ;;  %v2151_v1 = vsel %vm2148_vm9, %v2118_v57, %v5217_v45  ;;  %v2152_v2 = vsel %vm2148_vm9, %v2119_v58, %v5218_v44  ;;  %v6874_v45 = vpack.i.bf16 %v854_v32, %v853_v31 }
  0xb2   : > { %v6810_v34 = vpop.permute.xlu1 %5225  ;;  %v5223_v17 = vunpack.i.h.bf16 %v5221_v38  ;;  %v5222_v40 = vunpack.i.l.bf16 %v5221_v38 }
  0xb3   : > { %5510 = vrot.lane.b32.xlu0 %v6736_v22, %s6318_s12  ;;  %v5228_v35 = vunpack.i.h.bf16 %v6810_v34  ;;  %v5227_v36 = vunpack.i.l.bf16 %v6810_v34 }
  0xb4   : > { %5515 = vrot.lane.b32.xlu1 %v6786_v15, %s6318_s12  ;;  %v2182_v51 = vsel %vm2181_vm10, %v2149_v46, %v5222_v40  ;;  %v2183_v52 = vsel %vm2181_vm10, %v2150_v47, %v5223_v17 }
  0xb5   : > { %v5231_v55 = vpop.permute.xlu0 %5230  ;;  %v2214_v22 = vpack.c.bf16 %v2183_v52, %v2182_v51  ;;  %v1956_v49 = vsel %vm401_vm0, %v6587_v14, %v5228_v35 }
  0xb6   : > { %v6826_v50 = vpop.permute.xlu1 %5235  ;;  %v5233_v59 = vunpack.i.h.bf16 %v5231_v55  ;;  %v5232_v12 = vunpack.i.l.bf16 %v5231_v55 }
  0xb7   : > { %5520 = vrot.lane.b32.xlu0 %v6759_v39, %s6320_s13  ;;  %5035 = vmatprep.mubr.msk.bf16.mxu0 %vm2252_vm11, %v2214_v22  ;;  %v5238_v28 = vunpack.i.h.bf16 %v6826_v50  ;;  %v5237_v29 = vunpack.i.l.bf16 %v6826_v50  ;;  %v1955_v50 = vsel %vm401_vm0, %v6580_v11, %v5227_v36 }
  0xb8   : > { %5525 = vrot.lane.b32.xlu1 %v6788_v61, %s6320_s13  ;;  %v2184_v3 = vsel %vm2181_vm10, %v2151_v1, %v5232_v12  ;;  %v2185_v4 = vsel %vm2181_vm10, %v2152_v2, %v5233_v59 }
  0xb9   : > { %v5241_v6 = vpop.permute.xlu0 %5240  ;;  %v2215_v9 = vpack.c.bf16 %v2185_v4, %v2184_v3  ;;  %v1958_v34 = vsel %vm401_vm0, %v6607_v27, %v5238_v28  ;;  %v1957_v46 = vsel %vm401_vm0, %v6605_v26, %v5237_v29 }
  0xba   : > { %v5246_v5 = vpop.permute.xlu1 %5245  ;;  %v5243_v17 = vunpack.i.h.bf16 %v5241_v6  ;;  %v5242_v40 = vunpack.i.l.bf16 %v5241_v6 }
  0xbb   : > { %5530 = vrot.lane.b32.xlu0 %v6780_v60, %s6321_s20  ;;  %5036 = vmatmul.mubr.msk.bf16.vlgmr.msra.gmra.mrb[0].mxu0 %vm2252_vm11, %v2215_v9  ;;  %v5248_v25 = vunpack.i.h.bf16 %v5246_v5  ;;  %v5247_v37 = vunpack.i.l.bf16 %v5246_v5 }
  0xbc   : > { %5535 = vrot.lane.b32.xlu1 %v6832_v56, %s6321_s20  ;;  %v1989_v27 = vsel %vm1983_vm4, %v1956_v49, %v5243_v17  ;;  %v1988_v26 = vsel %vm1983_vm4, %v1955_v50, %v5242_v40 }
  0xbd   : > { %v5251_v13 = vpop.permute.xlu0 %5250  ;;  %v1990_v51 = vsel %vm1983_vm4, %v1957_v46, %v5247_v37  ;;  %v1991_v52 = vsel %vm1983_vm4, %v1958_v34, %v5248_v25 }
  0xbe   : > { %v5256_v39 = vpop.permute.xlu1 %5255  ;;  %v5253_v47 = vunpack.i.h.bf16 %v5251_v13  ;;  %v5252_v48 = vunpack.i.l.bf16 %v5251_v13 }
  0xbf   : > { %5540 = vrot.lane.b32.xlu0 %v6786_v15, %s6322_s21  ;;  %v5258_v43 = vunpack.i.h.bf16 %v5256_v39  ;;  %v5257_v44 = vunpack.i.l.bf16 %v5256_v39 }
  0xc0   : > { %5545 = vrot.lane.b32.xlu1 %v6847_v10, %s6322_s21  ;;  %v2021_v58 = vsel %vm2016_vm5, %v1988_v26, %v5252_v48  ;;  %v2022_v59 = vsel %vm2016_vm5, %v1989_v27, %v5253_v47  ;;  %v885_v47 = vld [vmem:[#allocation2 + $0x1a8] sm:$0xff]  ;;  %v886_v48 = vld [vmem:[#allocation2 + $0x1b0] sm:$0xff] }
  0xc1   : > { %v6856_v18 = vpop.permute.xlu0 %5260  ;;  %v2024_v57 = vsel %vm2016_vm5, %v1991_v52, %v5258_v43  ;;  %v6930_v26 = vpack.i.bf16 %v886_v48, %v885_v47 }
  0xc2   : > { %v5266_v16 = vpop.permute.xlu1 %5265  ;;  %v5263_v14 = vunpack.i.h.bf16 %v6856_v18  ;;  %v5262_v11 = vunpack.i.l.bf16 %v6856_v18 }
  0xc3   : > { %5550 = vrot.lane.b32.xlu0 %v6780_v60, %s6314_s27  ;;  %v6872_v60 = vpack.i.bf16 %v821_v30, %v820_v24  ;;  %v5268_v54 = vunpack.i.h.bf16 %v5266_v16  ;;  %v5267_v55 = vunpack.i.l.bf16 %v5266_v16 }
  0xc4   : > { %5555 = vrot.lane.b32.xlu1 %v6832_v56, %s6314_s27  ;;  %v2054_v16 = vsel %vm2049_vm6, %v2021_v58, %v5262_v11  ;;  %v2055_v18 = vsel %vm2049_vm6, %v2022_v59, %v5263_v14  ;;  %v760_v58 = vld [vmem:[#allocation2 + $0x1c7] sm:$0xff]  ;;  %v761_v59 = vld [vmem:[#allocation2 + $0x1cf] sm:$0xff] }
  0xc5   : > { %v5271_v41 = vpop.permute.xlu0 %5270  ;;  %v2057_v6 = vsel %vm2049_vm6, %v2024_v57, %v5268_v54  ;;  %v918_v54 = vld [vmem:[#allocation2 + $0x1b1] sm:$0xff] }
  0xc6   : > { %v5276_v38 = vpop.permute.xlu1 %5275  ;;  %v5273_v2 = vunpack.i.h.bf16 %v5271_v41  ;;  %v5272_v62 = vunpack.i.l.bf16 %v5271_v41 }
  0xc7   : > { %5560 = vrot.lane.b32.xlu0 %v6786_v15, %s6315_s28  ;;  %v2023_v15 = vsel %vm2016_vm5, %v1990_v51, %v5257_v44  ;;  %v5278_v12 = vunpack.i.h.bf16 %v5276_v38  ;;  %v5277_v1 = vunpack.i.l.bf16 %v5276_v38 }
  0xc8   : > { %5565 = vrot.lane.b32.xlu1 %v6847_v10, %s6315_s28  ;;  %v2056_v5 = vsel %vm2049_vm6, %v2023_v15, %v5267_v55  ;;  %v2087_v28 = vsel %vm2082_vm7, %v2054_v16, %v5272_v62  ;;  %v2088_v29 = vsel %vm2082_vm7, %v2055_v18, %v5273_v2  ;;  %v824_v2 = vld [vmem:[#allocation2 + $0x1c9] sm:$0xff] }
  0xc9   : > { %v5281_v22 = vpop.permute.xlu0 %5280  ;;  %v2090_v21 = vsel %vm2082_vm7, %v2057_v6, %v5278_v12  ;;  %v792_v12 = vld [vmem:[#allocation2 + $0x1c8] sm:$0xff] }
  0xca   : > { %v5286_v53 = vpop.permute.xlu1 %5285  ;;  %v5283_v9 = vunpack.i.h.bf16 %v5281_v22  ;;  %v5282_v39 = vunpack.i.l.bf16 %v5281_v22  ;;  %v646_v18 = vld [vmem:[#allocation2 + $0x87] sm:$0xff] }
  0xcb   : > { %5570 = vrot.lane.b32.xlu0 %v6788_v61, %s6316_s29  ;;  %v5288_v63 = vunpack.i.h.bf16 %v5286_v53  ;;  %v5287_v3 = vunpack.i.l.bf16 %v5286_v53  ;;  %v2089_v61 = vsel %vm2082_vm7, %v2056_v5, %v5277_v1  ;;  %v793_v1 = vld [vmem:[#allocation2 + $0x1d0] sm:$0xff] }
  0xcc   : > { %5575 = vrot.lane.b32.xlu1 %v6866_v33, %s6316_s29  ;;  %v2120_v35 = vsel %vm2115_vm8, %v2087_v28, %v5282_v39  ;;  %v2121_v36 = vsel %vm2115_vm8, %v2088_v29, %v5283_v9  ;;  %v858_v5 = vld [vmem:[#allocation2 + $0x1ef] sm:$0xff] }
  0xcd   : > { %v5291_v13 = vpop.permute.xlu0 %5290  ;;  %v2122_v30 = vsel %vm2115_vm8, %v2089_v61, %v5287_v3  ;;  %v2123_v31 = vsel %vm2115_vm8, %v2090_v21, %v5288_v63  ;;  %v825_v3 = vld [vmem:[#allocation2 + $0x1d1] sm:$0xff] }
  0xce   : > { %v5296_v4 = vpop.permute.xlu1 %5295  ;;  %v5293_v23 = vunpack.i.h.bf16 %v5291_v13  ;;  %v5292_v24 = vunpack.i.l.bf16 %v5291_v13 }
  0xcf   : > { %v5298_v19 = vunpack.i.h.bf16 %v5296_v4  ;;  %v5297_v20 = vunpack.i.l.bf16 %v5296_v4  ;;  %5580 = vrot.lane.b32.xlu0 %v6832_v56, %s6317_s30  ;;  %v857_v4 = vld [vmem:[#allocation2 + $0x1e7] sm:$0xff] }
  0xd0   : > { %5585 = vrot.lane.b32.xlu1 %v6868_v42, %s6317_s30  ;;  %v2153_v43 = vsel %vm2148_vm9, %v2120_v35, %v5292_v24  ;;  %v2154_v44 = vsel %vm2148_vm9, %v2121_v36, %v5293_v23  ;;  %v6954_v23 = vpack.i.bf16 %v761_v59, %v760_v58  ;;  %v6956_v24 = vpack.i.bf16 %v793_v1, %v792_v12 }
  0xd1   : > { %v5301_v38 = vpop.permute.xlu0 %5300  ;;  %v2155_v17 = vsel %vm2148_vm9, %v2122_v30, %v5297_v20  ;;  %v2156_v56 = vsel %vm2148_vm9, %v2123_v31, %v5298_v19  ;;  %v647_v19 = vld [vmem:[#allocation2 + $0x8f] sm:$0xff]  ;;  %v6962_v30 = vpack.i.bf16 %v858_v5, %v857_v4 }
  0xd2   : > { %v5306_v32 = vpop.permute.xlu1 %5305  ;;  %v5303_v40 = vunpack.i.h.bf16 %v5301_v38  ;;  %v5302_v41 = vunpack.i.l.bf16 %v5301_v38 }
  0xd3   : > { %v5308_v25 = vunpack.i.h.bf16 %v5306_v32  ;;  %v5307_v37 = vunpack.i.l.bf16 %v5306_v32  ;;  %5590 = vrot.lane.b32.xlu0 %v6847_v10, %s6318_s12  ;;  %v917_v10 = vld [vmem:[#allocation2 + $0x1a9] sm:$0xff] }
  0xd4   : > { %5595 = vrot.lane.b32.xlu1 %v6872_v60, %s6318_s12  ;;  %v2186_v49 = vsel %vm2181_vm10, %v2153_v43, %v5302_v41  ;;  %v2187_v50 = vsel %vm2181_vm10, %v2154_v44, %v5303_v40  ;;  %v6938_v15 = vpack.i.bf16 %v918_v54, %v917_v10 }
  0xd5   : > { %v2188_v34 = vsel %vm2181_vm10, %v2155_v17, %v5307_v37  ;;  %v2189_v46 = vsel %vm2181_vm10, %v2156_v56, %v5308_v25  ;;  %v5311_v53 = vpop.permute.xlu0 %5310  ;;  %v2216_v27 = vpack.c.bf16 %v2187_v50, %v2186_v49 }
  0xd6   : > { %v5316_v51 = vpop.permute.xlu1 %5315  ;;  %v2217_v52 = vpack.c.bf16 %v2189_v46, %v2188_v34  ;;  %v5313_v6 = vunpack.i.h.bf16 %v5311_v53  ;;  %v5312_v9 = vunpack.i.l.bf16 %v5311_v53 }
  0xd7   : > { %5600 = vrot.lane.b32.xlu0 %v6866_v33, %s6320_s13  ;;  %5039 = vmatprep.mubr.msk.bf16.mxu0 %vm2252_vm11, %v2216_v27  ;;  %v5318_v62 = vunpack.i.h.bf16 %v5316_v51  ;;  %v5317_v63 = vunpack.i.l.bf16 %v5316_v51 }
  0xd8   : > { %5605 = vrot.lane.b32.xlu1 %v6874_v45, %s6320_s13  ;;  %5040 = vmatmul.mubr.msk.bf16.gmra.mrb[4].mxu0 %vm2252_vm11, %v2217_v52  ;;  %v1960_v25 = vsel %vm401_vm0, %v647_v19, %v5313_v6  ;;  %v1959_v37 = vsel %vm401_vm0, %v646_v18, %v5312_v9 }
  0xd9   : > { %v5321_v22 = vpop.permute.xlu0 %5320  ;;  %v1962_v31 = vsel %vm401_vm0, %v6661_v8, %v5318_v62  ;;  %v1961_v32 = vsel %vm401_vm0, %v6659_v7, %v5317_v63 }
  0xda   : > { %v5326_v55 = vpop.permute.xlu1 %5325  ;;  %v5323_v20 = vunpack.i.h.bf16 %v5321_v22  ;;  %v5322_v61 = vunpack.i.l.bf16 %v5321_v22 }
  0xdb   : > { %5610 = vrot.lane.b32.xlu0 %v6868_v42, %s6321_s20  ;;  %v5328_v39 = vunpack.i.h.bf16 %v5326_v55  ;;  %v5327_v13 = vunpack.i.l.bf16 %v5326_v55 }
  0xdc   : > { %5615 = vrot.lane.b32.xlu1 %v6930_v26, %s6321_s20  ;;  %v1992_v40 = vsel %vm1983_vm4, %v1959_v37, %v5322_v61  ;;  %v1993_v8 = vsel %vm1983_vm4, %v1960_v25, %v5323_v20 }
  0xdd   : > { %v5331_v14 = vpop.permute.xlu0 %5330  ;;  %v1994_v38 = vsel %vm1983_vm4, %v1961_v32, %v5327_v13  ;;  %v1995_v17 = vsel %vm1983_vm4, %v1962_v31, %v5328_v39  ;;  %v889_v31 = vld [vmem:[#allocation2 + $0x1e8] sm:$0xff]  ;;  %v890_v32 = vld [vmem:[#allocation2 + $0x1f0] sm:$0xff] }
  0xde   : > { %v5336_v57 = vpop.permute.xlu1 %5335  ;;  %v5333_v35 = vunpack.i.h.bf16 %v5331_v14  ;;  %v5332_v36 = vunpack.i.l.bf16 %v5331_v14 }
  0xdf   : > { %5620 = vrot.lane.b32.xlu0 %v6872_v60, %s6322_s21  ;;  %v5338_v28 = vunpack.i.h.bf16 %v5336_v57  ;;  %v5337_v29 = vunpack.i.l.bf16 %v5336_v57 }
  0xe0   : > { %5625 = vrot.lane.b32.xlu1 %v6938_v15, %s6322_s21  ;;  %v2025_v47 = vsel %vm2016_vm5, %v1992_v40, %v5332_v36  ;;  %v2026_v48 = vsel %vm2016_vm5, %v1993_v8, %v5333_v35  ;;  %v922_v40 = vld [vmem:[#allocation2 + $0x1f1] sm:$0xff] }
  0xe1   : > { %v6948_v11 = vpop.permute.xlu0 %5340  ;;  %v2028_v44 = vsel %vm2016_vm5, %v1995_v17, %v5338_v28 }
  0xe2   : > { %v6946_v33 = vpop.permute.xlu1 %5345  ;;  %v5343_v34 = vunpack.i.h.bf16 %v6948_v11  ;;  %v5342_v46 = vunpack.i.l.bf16 %v6948_v11 }
  0xe3   : > { %5630 = vrot.lane.b32.xlu0 %v6868_v42, %s6314_s27  ;;  %v6960_v42 = vpack.i.bf16 %v825_v3, %v824_v2  ;;  %v5348_v7 = vunpack.i.h.bf16 %v6946_v33  ;;  %v5347_v41 = vunpack.i.l.bf16 %v6946_v33 }
  0xe4   : > { %5635 = vrot.lane.b32.xlu1 %v6930_v26, %s6314_s27  ;;  %v2058_v33 = vsel %vm2049_vm6, %v2025_v47, %v5342_v46  ;;  %v2059_v11 = vsel %vm2049_vm6, %v2026_v48, %v5343_v34  ;;  %v765_v34 = vld [vmem:[#allocation2 + $0x20f] sm:$0xff] }
  0xe5   : > { %v5351_v21 = vpop.permute.xlu0 %5350  ;;  %v2061_v55 = vsel %vm2049_vm6, %v2028_v44, %v5348_v7  ;;  %v764_v44 = vld [vmem:[#allocation2 + $0x207] sm:$0xff] }
  0xe6   : > { %v5356_v16 = vpop.permute.xlu1 %5355  ;;  %v5353_v51 = vunpack.i.h.bf16 %v5351_v21  ;;  %v5352_v52 = vunpack.i.l.bf16 %v5351_v21  ;;  %v796_v47 = vld [vmem:[#allocation2 + $0x208] sm:$0xff] }
  0xe7   : > { %5640 = vrot.lane.b32.xlu0 %v6872_v60, %s6315_s28  ;;  %v2027_v60 = vsel %vm2016_vm5, %v1994_v38, %v5337_v29  ;;  %v5358_v49 = vunpack.i.h.bf16 %v5356_v16  ;;  %v5357_v50 = vunpack.i.l.bf16 %v5356_v16 }
  0xe8   : > { %5645 = vrot.lane.b32.xlu1 %v6938_v15, %s6315_s28  ;;  %v2060_v54 = vsel %vm2049_vm6, %v2027_v60, %v5347_v41  ;;  %v2091_v62 = vsel %vm2082_vm7, %v2058_v33, %v5352_v52  ;;  %v2092_v63 = vsel %vm2082_vm7, %v2059_v11, %v5353_v51  ;;  %v829_v51 = vld [vmem:[#allocation2 + $0x211] sm:$0xff] }
  0xe9   : > { %v5361_v43 = vpop.permute.xlu0 %5360  ;;  %v2094_v12 = vsel %vm2082_vm7, %v2061_v55, %v5358_v49  ;;  %v797_v49 = vld [vmem:[#allocation2 + $0x210] sm:$0xff] }
  0xea   : > { %v5366_v56 = vpop.permute.xlu1 %5365  ;;  %v5363_v22 = vunpack.i.h.bf16 %v5361_v43  ;;  %v5362_v57 = vunpack.i.l.bf16 %v5361_v43  ;;  %v653_v52 = vld [vmem:[#allocation2 + $0xef] sm:$0xff] }
  0xeb   : > { %5650 = vrot.lane.b32.xlu0 %v6874_v45, %s6316_s29  ;;  %v5368_v53 = vunpack.i.h.bf16 %v5366_v56  ;;  %v5367_v27 = vunpack.i.l.bf16 %v5366_v56  ;;  %v2093_v45 = vsel %vm2082_vm7, %v2060_v54, %v5357_v50  ;;  %v7018_v56 = vpack.i.bf16 %v890_v32, %v889_v31  ;;  %v828_v50 = vld [vmem:[#allocation2 + $0x209] sm:$0xff] }
  0xec   : > { %5655 = vrot.lane.b32.xlu1 %v6954_v23, %s6316_s29  ;;  %v2124_v6 = vsel %vm2115_vm8, %v2091_v62, %v5362_v57  ;;  %v2125_v9 = vsel %vm2115_vm8, %v2092_v63, %v5363_v22  ;;  %v7044_v54 = vld [vmem:[#allocation2 + $0x227] sm:$0xff]  ;;  %v7046_v55 = vld [vmem:[#allocation2 + $0x22f] sm:$0xff]  ;;  %v7048_v62 = vpack.i.bf16 %v797_v49, %v796_v47 }
  0xed   : > { %v5371_v14 = vpop.permute.xlu0 %5370  ;;  %v2126_v3 = vsel %vm2115_vm8, %v2093_v45, %v5367_v27  ;;  %v2127_v4 = vsel %vm2115_vm8, %v2094_v12, %v5368_v53  ;;  %v652_v22 = vld [vmem:[#allocation2 + $0xe7] sm:$0xff]  ;;  %v651_v45 = vld [vmem:[#allocation2 + $0xcf] sm:$0xff] }
  0xee   : > { %v5376_v10 = vpop.permute.xlu1 %5375  ;;  %v5373_v1 = vunpack.i.h.bf16 %v5371_v14  ;;  %v5372_v2 = vunpack.i.l.bf16 %v5371_v14  ;;  %v650_v57 = vld [vmem:[#allocation2 + $0xc7] sm:$0xff] }
  0xef   : > { %v5378_v58 = vunpack.i.h.bf16 %v5376_v10  ;;  %v5377_v59 = vunpack.i.l.bf16 %v5376_v10  ;;  %5660 = vrot.lane.b32.xlu0 %v6930_v26, %s6317_s30  ;;  %v7042_v10 = vpack.i.bf16 %v765_v34, %v764_v44 }
  0xf0   : > { %5665 = vrot.lane.b32.xlu1 %v6956_v24, %s6317_s30  ;;  %v2157_v61 = vsel %vm2148_vm9, %v2124_v6, %v5372_v2  ;;  %v2158_v21 = vsel %vm2148_vm9, %v2125_v9, %v5373_v1 }
  0xf1   : > { %v5381_v16 = vpop.permute.xlu0 %5380  ;;  %v2159_v18 = vsel %vm2148_vm9, %v2126_v3, %v5377_v59  ;;  %v2160_v26 = vsel %vm2148_vm9, %v2127_v4, %v5378_v58 }
  0xf2   : > { %v5386_v5 = vpop.permute.xlu1 %5385  ;;  %v5383_v19 = vunpack.i.h.bf16 %v5381_v16  ;;  %v5382_v20 = vunpack.i.l.bf16 %v5381_v16 }
  0xf3   : > { %v5388_v39 = vunpack.i.h.bf16 %v5386_v5  ;;  %v5387_v13 = vunpack.i.l.bf16 %v5386_v5  ;;  %5670 = vrot.lane.b32.xlu0 %v6938_v15, %s6318_s12  ;;  %v921_v15 = vld [vmem:[#allocation2 + $0x1e9] sm:$0xff]  ;;  %v5764_v5 = vpack.i.bf16 %v7046_v55, %v7044_v54 }
  0xf4   : > { %5675 = vrot.lane.b32.xlu1 %v6960_v42, %s6318_s12  ;;  %v2190_v35 = vsel %vm2181_vm10, %v2157_v61, %v5382_v20  ;;  %v2191_v36 = vsel %vm2181_vm10, %v2158_v21, %v5383_v19  ;;  %v7026_v41 = vpack.i.bf16 %v922_v40, %v921_v15  ;;  %v2566_v54 = vld [vmem:[#allocation3 + $0x8] sm:$0xff]  ;;  %v2567_v55 = vld [vmem:[#allocation3 + $0x10] sm:$0xff] }
  0xf5   : > { %v2192_v28 = vsel %vm2181_vm10, %v2159_v18, %v5387_v13  ;;  %v2193_v29 = vsel %vm2181_vm10, %v2160_v26, %v5388_v39  ;;  %v5391_v38 = vpop.permute.xlu0 %5390  ;;  %v2218_v17 = vpack.c.bf16 %v2191_v36, %v2190_v35 }
  0xf6   : > { %v5396_v25 = vpop.permute.xlu1 %5395  ;;  %v2219_v37 = vpack.c.bf16 %v2193_v29, %v2192_v28  ;;  %v5392_v27 = vunpack.i.l.bf16 %v5391_v38  ;;  %v5393_v14 = vunpack.i.h.bf16 %v5391_v38 }
  0xf7   : > { %5680 = vrot.lane.b32.xlu0 %v6954_v23, %s6320_s13  ;;  %5043 = vmatprep.mubr.msk.bf16.mxu0 %vm2252_vm11, %v2218_v17  ;;  %v5398_v48 = vunpack.i.h.bf16 %v5396_v25  ;;  %v5397_v53 = vunpack.i.l.bf16 %v5396_v25 }
  0xf8   : > { %5685 = vrot.lane.b32.xlu1 %v6962_v30, %s6320_s13  ;;  %5044 = vmatmul.mubr.msk.bf16.gmra.mrb[8].mxu0 %vm2252_vm11, %v2219_v37  ;;  %v1963_v9 = vsel %vm401_vm0, %v650_v57, %v5392_v27  ;;  %v1964_v16 = vsel %vm401_vm0, %v651_v45, %v5393_v14 }
  0xf9   : > { %v5401_v7 = vpop.permute.xlu0 %5400  ;;  %v1966_v63 = vsel %vm401_vm0, %v653_v52, %v5398_v48  ;;  %v1965_v6 = vsel %vm401_vm0, %v652_v22, %v5397_v53 }
  0xfa   : > { %v5406_v8 = vpop.permute.xlu1 %5405  ;;  %v5402_v58 = vunpack.i.l.bf16 %v5401_v7  ;;  %v5403_v12 = vunpack.i.h.bf16 %v5401_v7 }
  0xfb   : > { %5690 = vrot.lane.b32.xlu0 %v6956_v24, %s6321_s20  ;;  %v5408_v33 = vunpack.i.h.bf16 %v5406_v8  ;;  %v5407_v11 = vunpack.i.l.bf16 %v5406_v8 }
  0xfc   : > { %5695 = vrot.lane.b32.xlu1 %v7018_v56, %s6321_s20  ;;  %v1996_v19 = vsel %vm1983_vm4, %v1963_v9, %v5402_v58  ;;  %v1997_v61 = vsel %vm1983_vm4, %v1964_v16, %v5403_v12 }
  0xfd   : > { %v5411_v60 = vpop.permute.xlu0 %5410  ;;  %v1998_v18 = vsel %vm1983_vm4, %v1965_v6, %v5407_v11  ;;  %v1999_v26 = vsel %vm1983_vm4, %v1966_v63, %v5408_v33  ;;  %v894_v6 = vld [vmem:[#allocation2 + $0x230] sm:$0xff] }
  0xfe   : > { %v5416_v43 = vpop.permute.xlu1 %5415  ;;  %v5412_v4 = vunpack.i.l.bf16 %v5411_v60  ;;  %v5413_v39 = vunpack.i.h.bf16 %v5411_v60 }
  0xff   : > { %5700 = vrot.lane.b32.xlu0 %v6960_v42, %s6322_s21  ;;  %v5417_v1 = vunpack.i.l.bf16 %v5416_v43  ;;  %v5418_v3 = vunpack.i.h.bf16 %v5416_v43 }
 0x100   : > { %5705 = vrot.lane.b32.xlu1 %v7026_v41, %s6322_s21  ;;  %v2029_v32 = vsel %vm2016_vm5, %v1996_v19, %v5412_v4  ;;  %v2030_v25 = vsel %vm2016_vm5, %v1997_v61, %v5413_v39  ;;  %v5774_v19 = vpack.i.bf16 %v894_v6, %v893_v0 }
 0x101   : > { %v7036_v46 = vpop.permute.xlu0 %5420  ;;  %v2031_v21 = vsel %vm2016_vm5, %v1998_v18, %v5417_v1 }
 0x102   : > { %v7034_v23 = vpop.permute.xlu1 %5425  ;;  %v5422_v29 = vunpack.i.l.bf16 %v7036_v46  ;;  %v5423_v35 = vunpack.i.h.bf16 %v7036_v46 }
 0x103   : > { %5710 = vrot.lane.b32.xlu0 %v6956_v24, %s6314_s27  ;;  %v7050_v24 = vpack.i.bf16 %v829_v51, %v828_v50  ;;  %v5427_v13 = vunpack.i.l.bf16 %v7034_v23  ;;  %v5428_v28 = vunpack.i.h.bf16 %v7034_v23 }
 0x104   : > { %5715 = vrot.lane.b32.xlu1 %v7018_v56, %s6314_s27  ;;  %v2062_v60 = vsel %vm2049_vm6, %v2029_v32, %v5422_v29 }
 0x105   : > { %v5431_v2 = vpop.permute.xlu0 %5430  ;;  %v2064_v37 = vsel %vm2049_vm6, %v2031_v21, %v5427_v13 }
 0x106   : > { %v5436_v59 = vpop.permute.xlu1 %5435  ;;  %v5433_v17 = vunpack.i.h.bf16 %v5431_v2  ;;  %v5432_v15 = vunpack.i.l.bf16 %v5431_v2 }
 0x107   : > { %5720 = vrot.lane.b32.xlu0 %v6960_v42, %s6315_s28  ;;  %v2032_v42 = vsel %vm2016_vm5, %v1999_v26, %v5418_v3  ;;  %v5437_v36 = vunpack.i.l.bf16 %v5436_v59  ;;  %v5438_v38 = vunpack.i.h.bf16 %v5436_v59 }
 0x108   : > { %5725 = vrot.lane.b32.xlu1 %v7026_v41, %s6315_s28  ;;  %v2065_v43 = vsel %vm2049_vm6, %v2032_v42, %v5428_v28  ;;  %v2095_v52 = vsel %vm2082_vm7, %v2062_v60, %v5432_v15  ;;  %v2599_v42 = vld [vmem:[#allocation3 + $0x11] sm:$0xff] }
 0x109   : > { %v7070_v31 = vpop.permute.xlu0 %5440  ;;  %v2097_v46 = vsel %vm2082_vm7, %v2064_v37, %v5437_v36  ;;  %v2098_v49 = vsel %vm2082_vm7, %v2065_v43, %v5438_v38  ;;  %v656_v37 = vld [vmem:[#allocation2 + $0x127] sm:$0xff]  ;;  %v657_v38 = vld [vmem:[#allocation2 + $0x12f] sm:$0xff] }
 0x10a   : > { %v5446_v20 = vpop.permute.xlu1 %5445  ;;  %v5443_v23 = vunpack.i.h.bf16 %v7070_v31  ;;  %v5442_v44 = vunpack.i.l.bf16 %v7070_v31  ;;  %v2598_v31 = vld [vmem:[#allocation3 + $0x9] sm:$0xff] }
 0x10b   : > { %5730 = vrot.lane.b32.xlu0 %v6962_v30, %s6316_s29  ;;  %v5448_v40 = vunpack.i.h.bf16 %v5446_v20  ;;  %v5447_v8 = vunpack.i.l.bf16 %v5446_v20  ;;  %v2063_v30 = vsel %vm2049_vm6, %v2030_v25, %v5423_v35  ;;  %v926_v20 = vld [vmem:[#allocation2 + $0x231] sm:$0xff]  ;;  %v5794_v36 = vpack.i.bf16 %v2599_v42, %v2598_v31  ;;  %v654_v43 = vld [vmem:[#allocation2 + $0x107] sm:$0xff] }
 0x10c   : > { %5735 = vrot.lane.b32.xlu1 %v7042_v10, %s6316_s29  ;;  %v2096_v53 = vsel %vm2082_vm7, %v2063_v30, %v5433_v17  ;;  %v655_v60 = vld [vmem:[#allocation2 + $0x10f] sm:$0xff]  ;;  %s394_s29 = scalar_lea.vmem %s8443_s10, %s4863_s26 }
 0x10d   : > { %v7087_v34 = vpop.permute.xlu0 %5450  ;;  %v2130_v27 = vsel %vm2115_vm8, %v2097_v46, %v5447_v8  ;;  %v2131_v22 = vsel %vm2115_vm8, %v2098_v49, %v5448_v40  ;;  %v2129_v14 = vsel %vm2115_vm8, %v2096_v53, %v5443_v23 }
 0x10e   : > { %v7081_v7 = vpop.permute.xlu1 %5455  ;;  %v5453_v50 = vunpack.i.h.bf16 %v7087_v34  ;;  %v5452_v51 = vunpack.i.l.bf16 %v7087_v34 }
 0x10f   : > { %v5458_v47 = vunpack.i.h.bf16 %v7081_v7  ;;  %v5457_v48 = vunpack.i.l.bf16 %v7081_v7  ;;  %5740 = vrot.lane.b32.xlu0 %v7018_v56, %s6317_s30  ;;  %v2128_v56 = vsel %vm2115_vm8, %v2095_v52, %v5442_v44 }
 0x110   : > { %5745 = vrot.lane.b32.xlu1 %v7048_v62, %s6317_s30  ;;  %v2161_v2 = vsel %vm2148_vm9, %v2128_v56, %v5452_v51  ;;  %v2162_v63 = vsel %vm2148_vm9, %v2129_v14, %v5453_v50 }
 0x111   : > { %v5461_v58 = vpop.permute.xlu0 %5460  ;;  %v2163_v59 = vsel %vm2148_vm9, %v2130_v27, %v5457_v48  ;;  %v2164_v45 = vsel %vm2148_vm9, %v2131_v22, %v5458_v47 }
 0x112   : > { %v5466_v57 = vpop.permute.xlu1 %5465  ;;  %v5463_v12 = vunpack.i.h.bf16 %v5461_v58  ;;  %v5462_v1 = vunpack.i.l.bf16 %v5461_v58 }
 0x113   : > { %v5468_v33 = vunpack.i.h.bf16 %v5466_v57  ;;  %v5467_v11 = vunpack.i.l.bf16 %v5466_v57  ;;  %5750 = vrot.lane.b32.xlu0 %v7026_v41, %s6318_s12  ;;  %v925_v41 = vld [vmem:[#allocation2 + $0x229] sm:$0xff] }
 0x114   : > { %5755 = vrot.lane.b32.xlu1 %v7050_v24, %s6318_s12  ;;  %v2194_v9 = vsel %vm2181_vm10, %v2161_v2, %v5462_v1  ;;  %v2195_v39 = vsel %vm2181_vm10, %v2162_v63, %v5463_v12  ;;  %v5784_v28 = vpack.i.bf16 %v926_v20, %v925_v41 }
 0x115   : > { %v2196_v3 = vsel %vm2181_vm10, %v2163_v59, %v5467_v11  ;;  %v2197_v4 = vsel %vm2181_vm10, %v2164_v45, %v5468_v33  ;;  %v5471_v18 = vpop.permute.xlu0 %5470  ;;  %v2220_v26 = vpack.c.bf16 %v2195_v39, %v2194_v9 }
 0x116   : > { %v5476_v13 = vpop.permute.xlu1 %5475  ;;  %v2221_v16 = vpack.c.bf16 %v2197_v4, %v2196_v3  ;;  %v5473_v17 = vunpack.i.h.bf16 %v5471_v18  ;;  %v5472_v15 = vunpack.i.l.bf16 %v5471_v18 }
 0x117   : > { %5760 = vrot.lane.b32.xlu0 %v7042_v10, %s6320_s13  ;;  %5047 = vmatprep.mubr.msk.bf16.mxu0 %vm2252_vm11, %v2220_v26  ;;  %v5789_v10 = vpack.i.bf16 %v2567_v55, %v2566_v54  ;;  %v5478_v25 = vunpack.i.h.bf16 %v5476_v13 }
 0x118   : > { %5765 = vrot.lane.b32.xlu1 %v5764_v5, %s6320_s13  ;;  %5048 = vmatmul.mubr.msk.bf16.gmra.mrb[12].mxu0 %vm2252_vm11, %v2221_v16  ;;  %v1968_v50 = vsel %vm401_vm0, %v655_v60, %v5473_v17  ;;  %v1967_v51 = vsel %vm401_vm0, %v654_v43, %v5472_v15 }
 0x119   : > { %v5481_v21 = vpop.permute.xlu0 %5480  ;;  %v1970_v46 = vsel %vm401_vm0, %v657_v38, %v5478_v25 }
 0x11a   : > { %v5486_v61 = vpop.permute.xlu1 %5485  ;;  %v5482_v23 = vunpack.i.l.bf16 %v5481_v21 }
 0x11b   : > { %5770 = vrot.lane.b32.xlu0 %v7048_v62, %s6321_s20  ;;  %v5477_v62 = vunpack.i.l.bf16 %v5476_v13  ;;  %v5488_v40 = vunpack.i.h.bf16 %v5486_v61  ;;  %v5487_v8 = vunpack.i.l.bf16 %v5486_v61 }
 0x11c   : > { %5775 = vrot.lane.b32.xlu1 %v5774_v19, %s6321_s20  ;;  %v2000_v22 = vsel %vm1983_vm4, %v1967_v51, %v5482_v23 }
 0x11d   : > { %v5491_v29 = vpop.permute.xlu0 %5490  ;;  %v1969_v47 = vsel %vm401_vm0, %v656_v37, %v5477_v62  ;;  %v2003_v53 = vsel %vm1983_vm4, %v1970_v46, %v5488_v40 }
 0x11e   : > { %v5496_v5 = vpop.permute.xlu1 %5495  ;;  %v5493_v48 = vunpack.i.h.bf16 %v5491_v29  ;;  %v5492_v49 = vunpack.i.l.bf16 %v5491_v29  ;;  %v2002_v52 = vsel %vm1983_vm4, %v1969_v47, %v5487_v8 }
 0x11f   : > { %5780 = vrot.lane.b32.xlu0 %v7050_v24, %s6322_s21  ;;  %v5483_v24 = vunpack.i.h.bf16 %v5481_v21  ;;  %v5498_v34 = vunpack.i.h.bf16 %v5496_v5  ;;  %v5497_v30 = vunpack.i.l.bf16 %v5496_v5 }
 0x120   : > { %5785 = vrot.lane.b32.xlu1 %v5784_v28, %s6322_s21  ;;  %v2033_v12 = vsel %vm2016_vm5, %v2000_v22, %v5492_v49  ;;  %v661_v22 = vld [vmem:[#allocation2 + $0x16f] sm:$0xff] }
 0x121   : > { %v5501_v35 = vpop.permute.xlu0 %5500  ;;  %v2001_v57 = vsel %vm1983_vm4, %v1968_v50, %v5483_v24  ;;  %v2035_v11 = vsel %vm2016_vm5, %v2002_v52, %v5497_v30  ;;  %v2036_v58 = vsel %vm2016_vm5, %v2003_v53, %v5498_v34 }
 0x122   : > { %v5506_v32 = vpop.permute.xlu1 %5505  ;;  %v5503_v59 = vunpack.i.h.bf16 %v5501_v35  ;;  %v5502_v45 = vunpack.i.l.bf16 %v5501_v35  ;;  %v2034_v1 = vsel %vm2016_vm5, %v2001_v57, %v5493_v48 }
 0x123   : > { %v5508_v56 = vunpack.i.h.bf16 %v5506_v32  ;;  %v5507_v14 = vunpack.i.l.bf16 %v5506_v32 }
 0x124   : > { %5790 = vrot.lane.b32.xlu1 %v5789_v10, %s6323_s22  ;;  %v2066_v19 = vsel %vm2049_vm6, %v2033_v12, %v5502_v45  ;;  %v2067_v41 = vsel %vm2049_vm6, %v2034_v1, %v5503_v59  ;;  %v659_v59 = vld [vmem:[#allocation2 + $0x14f] sm:$0xff] }
 0x125   : > { %v5511_v44 = vpop.permute.xlu0 %5510  ;;  %v2068_v39 = vsel %vm2049_vm6, %v2035_v11, %v5507_v14  ;;  %v2069_v13 = vsel %vm2049_vm6, %v2036_v58, %v5508_v56  ;;  %v658_v58 = vld [vmem:[#allocation2 + $0x147] sm:$0xff] }
 0x126   : > { %v5516_v7 = vpop.permute.xlu1 %5515  ;;  %v5513_v3 = vunpack.i.h.bf16 %v5511_v44  ;;  %v5512_v4 = vunpack.i.l.bf16 %v5511_v44 }
 0x127   : > { %v5518_v2 = vunpack.i.h.bf16 %v5516_v7  ;;  %v5517_v63 = vunpack.i.l.bf16 %v5516_v7 }
 0x128   : > { %5795 = vrot.lane.b32.xlu1 %v5794_v36, %s6324_s23  ;;  %v2099_v5 = vsel %vm2082_vm7, %v2066_v19, %v5512_v4  ;;  %v2100_v29 = vsel %vm2082_vm7, %v2067_v41, %v5513_v3 }
 0x129   : > { %v5521_v33 = vpop.permute.xlu0 %5520  ;;  %v2101_v21 = vsel %vm2082_vm7, %v2068_v39, %v5517_v63  ;;  %v2102_v28 = vsel %vm2082_vm7, %v2069_v13, %v5518_v2 }
 0x12a   : > { %v5526_v27 = vpop.permute.xlu1 %5525  ;;  %v5523_v16 = vunpack.i.h.bf16 %v5521_v33  ;;  %v5522_v18 = vunpack.i.l.bf16 %v5521_v33 }
 0x12b   : > { %v5528_v0 = vunpack.i.h.bf16 %v5526_v27  ;;  %v5527_v6 = vunpack.i.l.bf16 %v5526_v27  ;;  %v660_v27 = vld [vmem:[#allocation2 + $0x167] sm:$0xff] }
 0x12c   : > { %v2132_v32 = vsel %vm2115_vm8, %v2099_v5, %v5522_v18  ;;  %v2133_v35 = vsel %vm2115_vm8, %v2100_v29, %v5523_v16 }
 0x12d   : > { %v5531_v26 = vpop.permute.xlu0 %5530  ;;  %v2134_v10 = vsel %vm2115_vm8, %v2101_v21, %v5527_v6  ;;  %v2135_v31 = vsel %vm2115_vm8, %v2102_v28, %v5528_v0 }
 0x12e   : > { %v5536_v9 = vpop.permute.xlu1 %5535  ;;  %v5533_v54 = vunpack.i.h.bf16 %v5531_v26  ;;  %v5532_v55 = vunpack.i.l.bf16 %v5531_v26 }
 0x12f   : > { %v5538_v20 = vunpack.i.h.bf16 %v5536_v9  ;;  %v5537_v61 = vunpack.i.l.bf16 %v5536_v9 }
 0x130   : > { %v2165_v40 = vsel %vm2148_vm9, %v2132_v32, %v5532_v55  ;;  %v2166_v8 = vsel %vm2148_vm9, %v2133_v35, %v5533_v54 }
 0x131   : > { %v5541_v62 = vpop.permute.xlu0 %5540  ;;  %v2167_v37 = vsel %vm2148_vm9, %v2134_v10, %v5537_v61  ;;  %v2168_v38 = vsel %vm2148_vm9, %v2135_v31, %v5538_v20 }
 0x132   : > { %v5546_v42 = vpop.permute.xlu1 %5545  ;;  %v5543_v17 = vunpack.i.h.bf16 %v5541_v62  ;;  %v5542_v15 = vunpack.i.l.bf16 %v5541_v62 }
 0x133   : > { %v5548_v36 = vunpack.i.h.bf16 %v5546_v42  ;;  %v5547_v25 = vunpack.i.l.bf16 %v5546_v42 }
 0x134   : > { %v2198_v60 = vsel %vm2181_vm10, %v2165_v40, %v5542_v15  ;;  %v2199_v24 = vsel %vm2181_vm10, %v2166_v8, %v5543_v17 }
 0x135   : > { %v2200_v7 = vsel %vm2181_vm10, %v2167_v37, %v5547_v25  ;;  %v2201_v43 = vsel %vm2181_vm10, %v2168_v38, %v5548_v36  ;;  %v5551_v34 = vpop.permute.xlu0 %5550  ;;  %v2222_v30 = vpack.c.bf16 %v2199_v24, %v2198_v60 }
 0x136   : > { %v5556_v23 = vpop.permute.xlu1 %5555  ;;  %v2223_v44 = vpack.c.bf16 %v2201_v43, %v2200_v7  ;;  %v5553_v57 = vunpack.i.h.bf16 %v5551_v34  ;;  %v5552_v56 = vunpack.i.l.bf16 %v5551_v34 }
 0x137   : > { %5051 = vmatprep.mubr.msk.bf16.mxu0 %vm2252_vm11, %v2222_v30  ;;  %v5558_v52 = vunpack.i.h.bf16 %v5556_v23  ;;  %v5557_v53 = vunpack.i.l.bf16 %v5556_v23 }
 0x138   : > { %5052 = vmatmul.mubr.msk.bf16.gmra.mrb[16].mxu0 %vm2252_vm11, %v2223_v44  ;;  %v1972_v9 = vsel %vm401_vm0, %v659_v59, %v5553_v57  ;;  %v1971_v39 = vsel %vm401_vm0, %v658_v58, %v5552_v56 }
 0x139   : > { %v5561_v47 = vpop.permute.xlu0 %5560  ;;  %v1974_v3 = vsel %vm401_vm0, %v661_v22, %v5558_v52  ;;  %v1973_v4 = vsel %vm401_vm0, %v660_v27, %v5557_v53 }
 0x13a   : > { %v5566_v46 = vpop.permute.xlu1 %5565  ;;  %v5563_v45 = vunpack.i.h.bf16 %v5561_v47  ;;  %v5562_v12 = vunpack.i.l.bf16 %v5561_v47 }
 0x13b   : > { %v5568_v14 = vunpack.i.h.bf16 %v5566_v46  ;;  %v5567_v33 = vunpack.i.l.bf16 %v5566_v46 }
 0x13c   : > { %v2004_v26 = vsel %vm1983_vm4, %v1971_v39, %v5562_v12  ;;  %v2005_v19 = vsel %vm1983_vm4, %v1972_v9, %v5563_v45 }
 0x13d   : > { %v5571_v49 = vpop.permute.xlu0 %5570  ;;  %v2006_v13 = vsel %vm1983_vm4, %v1973_v4, %v5567_v33  ;;  %v2007_v16 = vsel %vm1983_vm4, %v1974_v3, %v5568_v14 }
 0x13e   : > { %v5576_v48 = vpop.permute.xlu1 %5575  ;;  %v5573_v0 = vunpack.i.h.bf16 %v5571_v49  ;;  %v5572_v6 = vunpack.i.l.bf16 %v5571_v49 }
 0x13f   : > { %v5578_v2 = vunpack.i.h.bf16 %v5576_v48  ;;  %v5577_v63 = vunpack.i.l.bf16 %v5576_v48 }
 0x140   : > { %v2037_v5 = vsel %vm2016_vm5, %v2004_v26, %v5572_v6  ;;  %v2038_v29 = vsel %vm2016_vm5, %v2005_v19, %v5573_v0  ;;  %v665_v26 = vld [vmem:[#allocation2 + $0x1af] sm:$0xff] }
 0x141   : > { %v5581_v51 = vpop.permute.xlu0 %5580  ;;  %v2039_v21 = vsel %vm2016_vm5, %v2006_v13, %v5577_v63  ;;  %v2040_v28 = vsel %vm2016_vm5, %v2007_v16, %v5578_v2 }
 0x142   : > { %v5586_v50 = vpop.permute.xlu1 %5585  ;;  %v5583_v54 = vunpack.i.h.bf16 %v5581_v51  ;;  %v5582_v55 = vunpack.i.l.bf16 %v5581_v51 }
 0x143   : > { %v5588_v41 = vunpack.i.h.bf16 %v5586_v50  ;;  %v5587_v20 = vunpack.i.l.bf16 %v5586_v50 }
 0x144   : > { %v2070_v40 = vsel %vm2049_vm6, %v2037_v5, %v5582_v55  ;;  %v2071_v8 = vsel %vm2049_vm6, %v2038_v29, %v5583_v54  ;;  %v663_v54 = vld [vmem:[#allocation2 + $0x18f] sm:$0xff] }
 0x145   : > { %v5591_v1 = vpop.permute.xlu0 %5590  ;;  %v2072_v62 = vsel %vm2049_vm6, %v2039_v21, %v5587_v20  ;;  %v2073_v37 = vsel %vm2049_vm6, %v2040_v28, %v5588_v41  ;;  %v662_v28 = vld [vmem:[#allocation2 + $0x187] sm:$0xff] }
 0x146   : > { %v5596_v11 = vpop.permute.xlu1 %5595  ;;  %v5593_v42 = vunpack.i.h.bf16 %v5591_v1  ;;  %v5592_v32 = vunpack.i.l.bf16 %v5591_v1 }
 0x147   : > { %v5598_v10 = vunpack.i.h.bf16 %v5596_v11  ;;  %v5597_v31 = vunpack.i.l.bf16 %v5596_v11 }
 0x148   : > { %v2103_v34 = vsel %vm2082_vm7, %v2070_v40, %v5592_v32  ;;  %v2104_v30 = vsel %vm2082_vm7, %v2071_v8, %v5593_v42 }
 0x149   : > { %v5601_v61 = vpop.permute.xlu0 %5600  ;;  %v2105_v60 = vsel %vm2082_vm7, %v2072_v62, %v5597_v31  ;;  %v2106_v24 = vsel %vm2082_vm7, %v2073_v37, %v5598_v10 }
 0x14a   : > { %v5606_v18 = vpop.permute.xlu1 %5605  ;;  %v5603_v38 = vunpack.i.h.bf16 %v5601_v61  ;;  %v5602_v17 = vunpack.i.l.bf16 %v5601_v61 }
 0x14b   : > { %v5608_v35 = vunpack.i.h.bf16 %v5606_v18  ;;  %v5607_v36 = vunpack.i.l.bf16 %v5606_v18  ;;  %v664_v18 = vld [vmem:[#allocation2 + $0x1a7] sm:$0xff] }
 0x14c   : > { %v2136_v49 = vsel %vm2115_vm8, %v2103_v34, %v5602_v17  ;;  %v2137_v50 = vsel %vm2115_vm8, %v2104_v30, %v5603_v38 }
 0x14d   : > { %v5611_v15 = vpop.permute.xlu0 %5610  ;;  %v2138_v46 = vsel %vm2115_vm8, %v2105_v60, %v5607_v36  ;;  %v2139_v47 = vsel %vm2115_vm8, %v2106_v24, %v5608_v35 }
 0x14e   : > { %v5616_v25 = vpop.permute.xlu1 %5615  ;;  %v5613_v23 = vunpack.i.h.bf16 %v5611_v15  ;;  %v5612_v44 = vunpack.i.l.bf16 %v5611_v15 }
 0x14f   : > { %v5618_v7 = vunpack.i.h.bf16 %v5616_v25  ;;  %v5617_v43 = vunpack.i.l.bf16 %v5616_v25 }
 0x150   : > { %v2169_v14 = vsel %vm2148_vm9, %v2136_v49, %v5612_v44  ;;  %v2170_v33 = vsel %vm2148_vm9, %v2137_v50, %v5613_v23 }
 0x151   : > { %v5621_v53 = vpop.permute.xlu0 %5620  ;;  %v2171_v27 = vsel %vm2148_vm9, %v2138_v46, %v5617_v43  ;;  %v2172_v22 = vsel %vm2148_vm9, %v2139_v47, %v5618_v7 }
 0x152   : > { %v5626_v48 = vpop.permute.xlu1 %5625  ;;  %v5623_v57 = vunpack.i.h.bf16 %v5621_v53  ;;  %v5622_v56 = vunpack.i.l.bf16 %v5621_v53 }
 0x153   : > { %v5628_v51 = vunpack.i.h.bf16 %v5626_v48  ;;  %v5627_v52 = vunpack.i.l.bf16 %v5626_v48 }
 0x154   : > { %v2202_v59 = vsel %vm2181_vm10, %v2169_v14, %v5622_v56  ;;  %v2203_v45 = vsel %vm2181_vm10, %v2170_v33, %v5623_v57 }
 0x155   : > { %v2204_v11 = vsel %vm2181_vm10, %v2171_v27, %v5627_v52  ;;  %v2205_v58 = vsel %vm2181_vm10, %v2172_v22, %v5628_v51  ;;  %v5631_v2 = vpop.permute.xlu0 %5630  ;;  %v2224_v63 = vpack.c.bf16 %v2203_v45, %v2202_v59 }
 0x156   : > { %v5636_v12 = vpop.permute.xlu1 %5635  ;;  %v2225_v1 = vpack.c.bf16 %v2205_v58, %v2204_v11  ;;  %v5633_v19 = vunpack.i.h.bf16 %v5631_v2  ;;  %v5632_v41 = vunpack.i.l.bf16 %v5631_v2 }
 0x157   : > { %5055 = vmatprep.mubr.msk.bf16.mxu0 %vm2252_vm11, %v2224_v63  ;;  %v5638_v13 = vunpack.i.h.bf16 %v5636_v12  ;;  %v5637_v16 = vunpack.i.l.bf16 %v5636_v12 }
 0x158   : > { %5056 = vmatmul.mubr.msk.bf16.gmra.mrb[20].mxu0 %vm2252_vm11, %v2225_v1  ;;  %v1976_v25 = vsel %vm401_vm0, %v663_v54, %v5633_v19  ;;  %v1975_v62 = vsel %vm401_vm0, %v662_v28, %v5632_v41 }
 0x159   : > { %v5641_v4 = vpop.permute.xlu0 %5640  ;;  %v1978_v42 = vsel %vm401_vm0, %v665_v26, %v5638_v13  ;;  %v1977_v32 = vsel %vm401_vm0, %v664_v18, %v5637_v16 }
 0x15a   : > { %v5646_v3 = vpop.permute.xlu1 %5645  ;;  %v5643_v55 = vunpack.i.h.bf16 %v5641_v4  ;;  %v5642_v5 = vunpack.i.l.bf16 %v5641_v4 }
 0x15b   : > { %v5648_v20 = vunpack.i.h.bf16 %v5646_v3  ;;  %v5647_v61 = vunpack.i.l.bf16 %v5646_v3 }
 0x15c   : > { %v2008_v15 = vsel %vm1983_vm4, %v1975_v62, %v5642_v5  ;;  %v2009_v40 = vsel %vm1983_vm4, %v1976_v25, %v5643_v55 }
 0x15d   : > { %v5651_v6 = vpop.permute.xlu0 %5650  ;;  %v2010_v37 = vsel %vm1983_vm4, %v1977_v32, %v5647_v61  ;;  %v2011_v38 = vsel %vm1983_vm4, %v1978_v42, %v5648_v20 }
 0x15e   : > { %v5656_v0 = vpop.permute.xlu1 %5655  ;;  %v5653_v35 = vunpack.i.h.bf16 %v5651_v6  ;;  %v5652_v36 = vunpack.i.l.bf16 %v5651_v6 }
 0x15f   : > { %v5658_v10 = vunpack.i.h.bf16 %v5656_v0  ;;  %v5657_v31 = vunpack.i.l.bf16 %v5656_v0 }
 0x160   : > { %v2041_v34 = vsel %vm2016_vm5, %v2008_v15, %v5652_v36  ;;  %v2042_v30 = vsel %vm2016_vm5, %v2009_v40, %v5653_v35 }
 0x161   : > { %v5661_v39 = vpop.permute.xlu0 %5660  ;;  %v2043_v60 = vsel %vm2016_vm5, %v2010_v37, %v5657_v31  ;;  %v2044_v24 = vsel %vm2016_vm5, %v2011_v38, %v5658_v10 }
 0x162   : > { %v5666_v9 = vpop.permute.xlu1 %5665  ;;  %v5663_v23 = vunpack.i.h.bf16 %v5661_v39  ;;  %v5662_v44 = vunpack.i.l.bf16 %v5661_v39 }
 0x163   : > { %v5668_v8 = vunpack.i.h.bf16 %v5666_v9  ;;  %v5667_v7 = vunpack.i.l.bf16 %v5666_v9 }
 0x164   : > { %v2074_v14 = vsel %vm2049_vm6, %v2041_v34, %v5662_v44  ;;  %v2075_v33 = vsel %vm2049_vm6, %v2042_v30, %v5663_v23  ;;  %v6297_v23 = vld [vmem:[#allocation2 + $0x1e7] sm:$0xff] }
 0x165   : > { %v5671_v29 = vpop.permute.xlu0 %5670  ;;  %v2076_v53 = vsel %vm2049_vm6, %v2043_v60, %v5667_v7  ;;  %v2077_v27 = vsel %vm2049_vm6, %v2044_v24, %v5668_v8  ;;  %v6296_v60 = vld [vmem:[#allocation2 + $0x1ef] sm:$0xff] }
 0x166   : > { %v5676_v21 = vpop.permute.xlu1 %5675  ;;  %v5673_v48 = vunpack.i.h.bf16 %v5671_v29  ;;  %v5672_v49 = vunpack.i.l.bf16 %v5671_v29 }
 0x167   : > { %v5678_v46 = vunpack.i.h.bf16 %v5676_v21  ;;  %v5677_v47 = vunpack.i.l.bf16 %v5676_v21 }
 0x168   : > { %v2107_v2 = vsel %vm2082_vm7, %v2074_v14, %v5672_v49  ;;  %v2108_v63 = vsel %vm2082_vm7, %v2075_v33, %v5673_v48  ;;  %v6299_v48 = vld [vmem:[#allocation2 + $0x1c7] sm:$0xff] }
 0x169   : > { %v5681_v43 = vpop.permute.xlu0 %5680  ;;  %v2109_v59 = vsel %vm2082_vm7, %v2076_v53, %v5677_v47  ;;  %v2110_v45 = vsel %vm2082_vm7, %v2077_v27, %v5678_v46  ;;  %v6298_v46 = vld [vmem:[#allocation2 + $0x1cf] sm:$0xff] }
 0x16a   : > { %v5686_v17 = vpop.permute.xlu1 %5685  ;;  %v5683_v22 = vunpack.i.h.bf16 %v5681_v43  ;;  %v5682_v57 = vunpack.i.l.bf16 %v5681_v43 }
 0x16b   : > { %v5688_v50 = vunpack.i.h.bf16 %v5686_v17  ;;  %v5687_v51 = vunpack.i.l.bf16 %v5686_v17 }
 0x16c   : > { %v2140_v6 = vsel %vm2115_vm8, %v2107_v2, %v5682_v57  ;;  %v2141_v9 = vsel %vm2115_vm8, %v2108_v63, %v5683_v22 }
 0x16d   : > { %v5691_v56 = vpop.permute.xlu0 %5690  ;;  %v2142_v3 = vsel %vm2115_vm8, %v2109_v59, %v5687_v51  ;;  %v2143_v4 = vsel %vm2115_vm8, %v2110_v45, %v5688_v50 }
 0x16e   : > { %v5696_v52 = vpop.permute.xlu1 %5695  ;;  %v5693_v12 = vunpack.i.h.bf16 %v5691_v56  ;;  %v5692_v1 = vunpack.i.l.bf16 %v5691_v56 }
 0x16f   : > { %v5698_v11 = vunpack.i.h.bf16 %v5696_v52  ;;  %v5697_v58 = vunpack.i.l.bf16 %v5696_v52 }
 0x170   : > { %v2173_v20 = vsel %vm2148_vm9, %v2140_v6, %v5692_v1  ;;  %v2174_v61 = vsel %vm2148_vm9, %v2141_v9, %v5693_v12 }
 0x171   : > { %v5701_v16 = vpop.permute.xlu0 %5700  ;;  %v2175_v18 = vsel %vm2148_vm9, %v2142_v3, %v5697_v58  ;;  %v2176_v26 = vsel %vm2148_vm9, %v2143_v4, %v5698_v11 }
 0x172   : > { %v5706_v0 = vpop.permute.xlu1 %5705  ;;  %v5703_v19 = vunpack.i.h.bf16 %v5701_v16  ;;  %v5702_v41 = vunpack.i.l.bf16 %v5701_v16  ;;  %v6273_v16 = vld [vmem:[%s8438_s5 + $0x40] sm:$0xff]  }
 0x173   : > { %v5708_v39 = vunpack.i.h.bf16 %v5706_v0  ;;  %v5707_v13 = vunpack.i.l.bf16 %v5706_v0  ;;  %4883 = vmatprep.subr.bf16.mxu0 %v6273_v16  ;;  %5103 = vmatprep.subr.bf16.mxu1 %v6273_v16 }
 0x174   : > { %v2206_v54 = vsel %vm2181_vm10, %v2173_v20, %v5702_v41  ;;  %v2207_v55 = vsel %vm2181_vm10, %v2174_v61, %v5703_v19  ;;  %v6274_v20 = vld [vmem:[%s8438_s5] sm:$0xff]  }
 0x175   : > { %v2208_v21 = vsel %vm2181_vm10, %v2175_v18, %v5707_v13  ;;  %v2209_v28 = vsel %vm2181_vm10, %v2176_v26, %v5708_v39  ;;  %v5711_v10 = vpop.permute.xlu0 %5710  ;;  %v2226_v31 = vpack.c.bf16 %v2207_v55, %v2206_v54  ;;  %v7351_v55 = vld [vmem:[%s8437_s4] ss:$0 sm:$0xff]  ;;  %4884 = vmatpush3.bf16.msra.mxu0 %v6274_v20  ;;  %5111 = vmatpush3.bf16.msra.mxu1 %v6274_v20 }
 0x176   : > { %v5716_v5 = vpop.permute.xlu1 %5715  ;;  %v2227_v29 = vpack.c.bf16 %v2209_v28, %v2208_v21  ;;  %v5713_v38 = vunpack.i.h.bf16 %v5711_v10  ;;  %v5712_v17 = vunpack.i.l.bf16 %v5711_v10 }
 0x177   : > { %5059 = vmatprep.mubr.msk.bf16.mxu0 %vm2252_vm11, %v2226_v31  ;;  %v5718_v25 = vunpack.i.h.bf16 %v5716_v5  ;;  %v5717_v62 = vunpack.i.l.bf16 %v5716_v5 }
 0x178   : > { %5060 = vmatmul.mubr.msk.bf16.gmra.mrb[24].mxu0 %vm2252_vm11, %v2227_v29  ;;  %v1980_v47 = vsel %vm401_vm0, %v6298_v46, %v5713_v38  ;;  %v1979_v49 = vsel %vm401_vm0, %v6299_v48, %v5712_v17 }
 0x179   : > { %v5721_v32 = vpop.permute.xlu0 %5720  ;;  %v1982_v24 = vsel %vm401_vm0, %v6296_v60, %v5718_v25  ;;  %v1981_v44 = vsel %vm401_vm0, %v6297_v23, %v5717_v62  ;;  %vm4565_vm0 = vcmask 1042432  }
 0x17a   : > { %v5726_v42 = vpop.permute.xlu1 %5725  ;;  %v5722_v7 = vunpack.i.l.bf16 %v5721_v32  ;;  %v5723_v43 = vunpack.i.h.bf16 %v5721_v32 }
 0x17b   : > { %v5728_v40 = vunpack.i.h.bf16 %v5726_v42  ;;  %v5727_v8 = vunpack.i.l.bf16 %v5726_v42 }
 0x17c   : > { %v2012_v22 = vsel %vm1983_vm4, %v1979_v49, %v5722_v7  ;;  %v2013_v56 = vsel %vm1983_vm4, %v1980_v47, %v5723_v43  ;;  %v6276_v7 = vld [vmem:[%s8438_s5 + $0x8] sm:$0xff]  }
 0x17d   : > { %v5731_v36 = vpop.permute.xlu0 %5730  ;;  %v2014_v53 = vsel %vm1983_vm4, %v1981_v44, %v5727_v8  ;;  %v2015_v27 = vsel %vm1983_vm4, %v1982_v24, %v5728_v40  ;;  %vm4663_vm4 = vcmask 1045508  }
 0x17e   : > { %v5736_v35 = vpop.permute.xlu1 %5735  ;;  %v5732_v51 = vunpack.i.l.bf16 %v5731_v36  ;;  %v5733_v57 = vunpack.i.h.bf16 %v5731_v36 }
 0x17f   : > { %v5737_v34 = vunpack.i.l.bf16 %v5736_v35  ;;  %v5738_v50 = vunpack.i.h.bf16 %v5736_v35 }
 0x180   : > { %v2045_v63 = vsel %vm2016_vm5, %v2012_v22, %v5732_v51  ;;  %v2046_v6 = vsel %vm2016_vm5, %v2013_v56, %v5733_v57 }
 0x181   : > { %v5741_v15 = vpop.permute.xlu0 %5740  ;;  %v2047_v58 = vsel %vm2016_vm5, %v2014_v53, %v5737_v34  ;;  %v2048_v2 = vsel %vm2016_vm5, %v2015_v27, %v5738_v50  ;;  %v6277_v27 = vld [vmem:[%s8438_s5 + $0x50] sm:$0xff]  }
 0x182   : > { %v5746_v37 = vpop.permute.xlu1 %5745  ;;  %v5742_v11 = vunpack.i.l.bf16 %v5741_v15  ;;  %v5743_v59 = vunpack.i.h.bf16 %v5741_v15 }
 0x183   : > { %v5748_v14 = vunpack.i.h.bf16 %v5746_v37  ;;  %v5747_v33 = vunpack.i.l.bf16 %v5746_v37  ;;  %v6275_v37 = vld [vmem:[%s8438_s5 + $0x48] sm:$0xff]  }
 0x184   : > { %v2078_v19 = vsel %vm2049_vm6, %v2045_v63, %v5742_v11  ;;  %v2079_v61 = vsel %vm2049_vm6, %v2046_v6, %v5743_v59  ;;  %4885 = vmatprep.subr.bf16.mxu0 %v6275_v37  ;;  %5104 = vmatprep.subr.bf16.mxu1 %v6275_v37  ;;  %v6281_v63 = vld [vmem:[%s8438_s5 + $0x60] sm:$0xff]  }
 0x185   : > { %v5751_v52 = vpop.permute.xlu0 %5750  ;;  %v2080_v18 = vsel %vm2049_vm6, %v2047_v58, %v5747_v33  ;;  %v2081_v26 = vsel %vm2049_vm6, %v2048_v2, %v5748_v14  ;;  %4886 = vmatpush3.bf16.msra.mxu0 %v6276_v7  ;;  %5112 = vmatpush3.bf16.msra.mxu1 %v6276_v7  ;;  %v6278_v33 = vld [vmem:[%s8438_s5 + $0x10] sm:$0xff]   ;;  %v6280_v2 = vld [vmem:[%s8438_s5 + $0x18] sm:$0xff]  }
 0x186   : > { %v5756_v30 = vpop.permute.xlu1 %5755  ;;  %v5753_v3 = vunpack.i.h.bf16 %v5751_v52  ;;  %v5752_v4 = vunpack.i.l.bf16 %v5751_v52  ;;  %4887 = vmatprep.subr.bf16.mxu0 %v6277_v27  ;;  %5105 = vmatprep.subr.bf16.mxu1 %v6277_v27 }
 0x187   : > { %v5758_v45 = vunpack.i.h.bf16 %v5756_v30  ;;  %v5757_v12 = vunpack.i.l.bf16 %v5756_v30 }
 0x188   : > { %v2111_v5 = vsel %vm2082_vm7, %v2078_v19, %v5752_v4  ;;  %v2112_v29 = vsel %vm2082_vm7, %v2079_v61, %v5753_v3  ;;  %v6282_v4 = vld [vmem:[%s8438_s5 + $0x20] sm:$0xff]   ;;  %v6284_v19 = vld [vmem:[%s8438_s5 + $0x28] sm:$0xff]   ;;  %v6285_v61 = vld [vmem:[%s8438_s5 + $0x70] sm:$0xff]  }
 0x189   : > { %v5761_v0 = vpop.permute.xlu0 %5760  ;;  %v2113_v21 = vsel %vm2082_vm7, %v2080_v18, %v5757_v12  ;;  %v2114_v28 = vsel %vm2082_vm7, %v2081_v26, %v5758_v45  ;;  %4888 = vmatpush3.bf16.msra.mxu0 %v6278_v33  ;;  %5113 = vmatpush3.bf16.msra.mxu1 %v6278_v33  ;;  %v6283_v26 = vld [vmem:[%s8438_s5 + $0x68] sm:$0xff]  }
 0x18a   : > { %v5766_v1 = vpop.permute.xlu1 %5765  ;;  %v5762_v13 = vunpack.i.l.bf16 %v5761_v0  ;;  %v5763_v41 = vunpack.i.h.bf16 %v5761_v0 }
 0x18b   : > { %v5768_v9 = vunpack.i.h.bf16 %v5766_v1  ;;  %v5767_v39 = vunpack.i.l.bf16 %v5766_v1  ;;  %v6279_v1 = vld [vmem:[%s8438_s5 + $0x58] sm:$0xff]  }
 0x18c   : > { %v2144_v36 = vsel %vm2115_vm8, %v2111_v5, %v5762_v13  ;;  %v2145_v38 = vsel %vm2115_vm8, %v2112_v29, %v5763_v41  ;;  %4889 = vmatprep.subr.bf16.mxu0 %v6279_v1  ;;  %5106 = vmatprep.subr.bf16.mxu1 %v6279_v1  ;;  %v6287_v29 = vld [vmem:[%s8438_s5 + $0x78] sm:$0xff]  }
 0x18d   : > { %v5771_v42 = vpop.permute.xlu0 %5770  ;;  %v2146_v32 = vsel %vm2115_vm8, %v2113_v21, %v5767_v39  ;;  %v2147_v35 = vsel %vm2115_vm8, %v2114_v28, %v5768_v9  ;;  %4890 = vmatpush3.bf16.msra.mxu0 %v6280_v2  ;;  %5114 = vmatpush3.bf16.msra.mxu1 %v6280_v2  ;;  %v6286_v21 = vld [vmem:[%s8438_s5 + $0x30] sm:$0xff]  }
 0x18e   : > { %v5776_v54 = vpop.permute.xlu1 %5775  ;;  %v5772_v25 = vunpack.i.l.bf16 %v5771_v42  ;;  %v5037_v62 = vpop.f32.mrb[0].mxu0  ;;  %v5773_v15 = vunpack.i.h.bf16 %v5771_v42  ;;  %4891 = vmatprep.subr.bf16.mxu0 %v6281_v63  ;;  %5107 = vmatprep.subr.bf16.mxu1 %v6281_v63 }
 0x18f   : > { %v5778_v10 = vunpack.i.h.bf16 %v5776_v54  ;;  %v5777_v31 = vunpack.i.l.bf16 %v5776_v54  ;;  %v2351_v40 = vadd.f32 %v5037_v62, %v7351_v55  ;;  %v2342_v8 = vpop.f32.mrb[1].mxu0 }
 0x190   : > { %v2177_v60 = vsel %vm2148_vm9, %v2144_v36, %v5772_v25  ;;  %v2343_v24 = vadd.f32 %v7351_v55, %v2342_v8  ;;  %v5038_v23 = vpop.f32.mrb[2].mxu0  ;;  %v2178_v22 = vsel %vm2148_vm9, %v2145_v38, %v5773_v15 }
 0x191   : > { %v2179_v17 = vsel %vm2148_vm9, %v2146_v32, %v5777_v31  ;;  %v2180_v43 = vsel %vm2148_vm9, %v2147_v35, %v5778_v10  ;;  %v2471_v34 = vmax.f32 %v2351_v40, 0.0  ;;  %v2354_v30 = vadd.f32 %v5038_v23, %v7351_v55  ;;  %v5781_v48 = vpop.permute.xlu0 %5780  ;;  %v2345_v49 = vpop.f32.mrb[3].mxu0  ;;  %4892 = vmatpush3.bf16.msra.mxu0 %v6282_v4  ;;  %5115 = vmatpush3.bf16.msra.mxu1 %v6282_v4  ;;  %v6288_v10 = vld [vmem:[%s8438_s5 + $0x38] sm:$0xff]   ;;  %v7448_v35 = vld [vmem:[%s8438_s5 + $0x80] sm:$0xff]  }
 0x192   : > { %v5786_v44 = vpop.permute.xlu1 %5785  ;;  %v2469_v50 = vmax.f32 %v2343_v24, 0.0  ;;  %v5783_v51 = vunpack.i.h.bf16 %v5781_v48  ;;  %v5782_v52 = vunpack.i.l.bf16 %v5781_v48  ;;  %v2346_v53 = vadd.f32 %v7351_v55, %v2345_v49  ;;  %4893 = vmatprep.subr.bf16.mxu0 %v6283_v26  ;;  %5108 = vmatprep.subr.bf16.mxu1 %v6283_v26 }
 0x193   : > { %v5788_v46 = vunpack.i.h.bf16 %v5786_v44  ;;  %v5787_v47 = vunpack.i.l.bf16 %v5786_v44  ;;  %2504 = vst.msk [vmem:[#allocation3 + $0x48] sm:$0xff] %vm448_vm12, %v2471_v34  ;;  %v2472_v57 = vmax.f32 %v2354_v30, 0.0 }
 0x194   : > { %2502 = vst.msk [vmem:[#allocation3 + $0x28] sm:$0xff] %vm448_vm12, %v2469_v50  ;;  %v2210_v11 = vsel %vm2181_vm10, %v2177_v60, %v5782_v52  ;;  %v2211_v58 = vsel %vm2181_vm10, %v2178_v22, %v5783_v51  ;;  %v2470_v59 = vmax.f32 %v2346_v53, 0.0 }
 0x195   : > { %v2212_v56 = vsel %vm2181_vm10, %v2179_v17, %v5787_v47  ;;  %v2213_v14 = vsel %vm2181_vm10, %v2180_v43, %v5788_v46  ;;  %2505 = vst.msk [vmem:[#allocation3 + $0x50] sm:$0xff] %vm448_vm12, %v2472_v57  ;;  %v2228_v12 = vpack.c.bf16 %v2211_v58, %v2210_v11  ;;  %4894 = vmatpush3.bf16.msra.mxu0 %v6284_v19 }
 0x196   : > { %v2229_v45 = vpack.c.bf16 %v2213_v14, %v2212_v56  ;;  %2503 = vst.msk [vmem:[#allocation3 + $0x30] sm:$0xff] %vm448_vm12, %v2470_v59  ;;  %5116 = vmatpush3.bf16.msra.mxu1 %v6284_v19  ;;  %4895 = vmatprep.subr.bf16.mxu0 %v6285_v61 }
 0x197   : > { %5063 = vmatprep.mubr.msk.bf16.mxu0 %vm2252_vm11, %v2228_v12  ;;  %5109 = vmatprep.subr.bf16.mxu1 %v6285_v61 }
 0x198   : > { %5064 = vmatmul.mubr.msk.bf16.gmra.mrb[28].mxu0 %vm2252_vm11, %v2229_v45 }
 0x199   : > { %4896 = vmatpush3.bf16.msra.mxu0 %v6286_v21 }
 0x19a   : > { %v7398_v3 = vld [vmem:[#allocation3 + $0x47] sm:$0xff]  ;;  %5117 = vmatpush3.bf16.msra.mxu1 %v6286_v21  ;;  %4897 = vmatprep.subr.bf16.mxu0 %v6287_v29 }
 0x19b   : > { %v2570_v41 = vld [vmem:[#allocation3 + $0x48] sm:$0xff]  ;;  %5110 = vmatprep.subr.bf16.mxu1 %v6287_v29 }
 0x19c   : > { %v7403_v0 = vld [vmem:[#allocation3 + $0x49] sm:$0xff]  ;;  %v7405_v6 = vld [vmem:[#allocation3 + $0x51] sm:$0xff] }
 0x19d   : > { %v7407_v9 = vld [vmem:[#allocation3 + $0x4f] sm:$0xff]  ;;  %v5799_v39 = vpack.i.bf16 %v7405_v6, %v7403_v0  ;;  %v3787_v16 = vpack.c.bf16 %v7405_v6, %v7403_v0  ;;  %4898 = vmatpush3.bf16.msra.mxu0 %v6288_v10  ;;  %v7461_v24 = vld [vmem:[#allocation3 + $0x27] sm:$0xff] }
 0x19e   : > { %v5804_v13 = vpack.i.bf16 %v7407_v9, %v7398_v3  ;;  %v2571_v18 = vld [vmem:[#allocation3 + $0x50] sm:$0xff]  ;;  %v7441_v31 = vld [vmem:[#allocation3 + $0x28] sm:$0xff]  ;;  %5118 = vmatpush3.bf16.msra.mxu1 %v6288_v10  ;;  %5067 = vmatprep.subr.bf16.mxu0 %v7448_v35 }
 0x19f   : > { %5800 = vrot.lane.b32.xlu0 %v5799_v39, %s6323_s22  ;;  %v5809_v20 = vpack.i.bf16 %v2571_v18, %v2570_v41  ;;  %v2694_v28 = vld [vmem:[#allocation3 + $0x29] sm:$0xff]  ;;  %v2695_v54 = vld [vmem:[#allocation3 + $0x31] sm:$0xff] }
 0x1a0   : > { %5805 = vrot.lane.b32.xlu1 %v5804_v13, %s6325_s14  ;;  %v7431_v5 = vld [vmem:[#allocation3 + $0x30] sm:$0xff]  ;;  %v5839_v42 = vpack.i.bf16 %v2695_v54, %v2694_v28 }
 0x1a1   : > { %v5829_v32 = vpack.i.bf16 %v7431_v5, %v7441_v31  ;;  %v7456_v8 = vld [vmem:[#allocation3 + $0x2f] sm:$0xff] }
 0x1a2   : > { %v5844_v44 = vpack.i.bf16 %v7456_v8, %v7461_v24 }
 0x1a3   : > { %5820 = vrot.lane.b32.xlu0 %v5804_v13, %s6324_s23 }
 0x1a4   : > { %5810 = vrot.lane.b32.xlu1 %v5809_v20, %s6323_s22 }
 0x1a7   : > { %5825 = vrot.lane.b32.xlu0 %v5809_v20, %s6325_s14 }
 0x1a8   : > { %5815 = vrot.lane.b32.xlu1 %v5799_v39, %s6324_s23 }
 0x1ab   : > { %v5041_v36 = vpop.f32.mrb[4].mxu0  ;;  %5840 = vrot.lane.b32.xlu0 %v5839_v42, %s6323_s22 }
 0x1ac   : > { %5830 = vrot.lane.b32.xlu1 %v5829_v32, %s6323_s22  ;;  %v2367_v25 = vadd.f32 %v5041_v36, %v7351_v55  ;;  %v2358_v62 = vpop.f32.mrb[5].mxu0 }
 0x1ad   : > { %v2359_v37 = vadd.f32 %v7351_v55, %v2358_v62  ;;  %v5042_v38 = vpop.f32.mrb[6].mxu0 }
 0x1ae   : > { %v2475_v17 = vmax.f32 %v2367_v25, 0.0  ;;  %v2370_v15 = vadd.f32 %v5042_v38, %v7351_v55  ;;  %v2361_v40 = vpop.f32.mrb[7].mxu0 }
 0x1af   : > { %v2473_v7 = vmax.f32 %v2359_v37, 0.0  ;;  %v2362_v43 = vadd.f32 %v7351_v55, %v2361_v40 }
 0x1b0   : > { %5835 = vrot.lane.b32.xlu1 %v5839_v42, %s6324_s23  ;;  %2508 = vst.msk [vmem:[#allocation3 + $0x88] sm:$0xff] %vm448_vm12, %v2475_v17  ;;  %v2476_v60 = vmax.f32 %v2370_v15, 0.0 }
 0x1b1   : > { %2506 = vst.msk [vmem:[#allocation3 + $0x68] sm:$0xff] %vm448_vm12, %v2473_v7  ;;  %v2474_v23 = vmax.f32 %v2362_v43, 0.0 }
 0x1b2   : > { %2509 = vst.msk [vmem:[#allocation3 + $0x90] sm:$0xff] %vm448_vm12, %v2476_v60 }
 0x1b3   : > { %2507 = vst.msk [vmem:[#allocation3 + $0x70] sm:$0xff] %vm448_vm12, %v2474_v23 }
 0x1b4   : > { %5845 = vrot.lane.b32.xlu1 %v5844_v44, %s6325_s14 }
 0x1b7   : > { %v7469_v34 = vld [vmem:[#allocation3 + $0x87] sm:$0xff] }
 0x1b8   : > { %v7491_v27 = vld [vmem:[#allocation3 + $0x88] sm:$0xff] }
 0x1b9   : > { %v7471_v30 = vld [vmem:[#allocation3 + $0x8f] sm:$0xff]  ;;  %v7503_v14 = vld [vmem:[#allocation3 + $0x67] sm:$0xff] }
 0x1ba   : > { %v7473_v46 = vld [vmem:[#allocation3 + $0x89] sm:$0xff]  ;;  %v5849_v47 = vpack.i.bf16 %v7471_v30, %v7469_v34  ;;  %v7477_v48 = vld [vmem:[#allocation3 + $0x91] sm:$0xff] }
 0x1bb   : > { %v7479_v49 = vld [vmem:[#allocation3 + $0x90] sm:$0xff]  ;;  %v3793_v52 = vpack.c.bf16 %v7477_v48, %v7473_v46  ;;  %v5859_v57 = vpack.i.bf16 %v7477_v48, %v7473_v46  ;;  %v7511_v58 = vld [vmem:[#allocation3 + $0x68] sm:$0xff] }
 0x1bc   : > { %v7481_v50 = vld [vmem:[#allocation3 + $0x69] sm:$0xff]  ;;  %v7483_v51 = vld [vmem:[#allocation3 + $0x71] sm:$0xff]  ;;  %5850 = vrot.lane.b32.xlu0 %v5849_v47, %s6324_s23  ;;  %5865 = vrot.lane.b32.xlu1 %v5849_v47, %s6325_s14  ;;  %v5854_v22 = vpack.i.bf16 %v7479_v49, %v7491_v27 }
 0x1bd   : > { %v3790_v53 = vpack.c.bf16 %v7483_v51, %v7481_v50  ;;  %v7499_v56 = vld [vmem:[#allocation3 + $0x6f] sm:$0xff]  ;;  %v5889_v18 = vpack.i.bf16 %v7483_v51, %v7481_v50 }
 0x1be   : > { %v5879_v33 = vpack.i.bf16 %v7499_v56, %v7503_v14  ;;  %v7507_v11 = vld [vmem:[#allocation3 + $0x70] sm:$0xff] }
 0x1bf   : > { %v5884_v59 = vpack.i.bf16 %v7507_v11, %v7511_v58 }
 0x1c0   : > { %5855 = vrot.lane.b32.xlu0 %v5854_v22, %s6325_s14  ;;  %5870 = vrot.lane.b32.xlu1 %v5854_v22, %s6323_s22 }
 0x1c4   : > { %5860 = vrot.lane.b32.xlu0 %v5859_v57, %s6323_s22  ;;  %5875 = vrot.lane.b32.xlu1 %v5859_v57, %s6324_s23 }
 0x1c8   : > { %5880 = vrot.lane.b32.xlu0 %v5879_v33, %s6324_s23  ;;  %5895 = vrot.lane.b32.xlu1 %v5879_v33, %s6325_s14 }
 0x1cb   : > { %v5045_v45 = vpop.f32.mrb[8].mxu0 }
 0x1cc   : > { %v2383_v12 = vadd.f32 %v5045_v45, %v7351_v55  ;;  %v2374_v1 = vpop.f32.mrb[9].mxu0  ;;  %5885 = vrot.lane.b32.xlu0 %v5884_v59, %s6325_s14  ;;  %5900 = vrot.lane.b32.xlu1 %v5884_v59, %s6323_s22 }
 0x1cd   : > { %v2375_v2 = vadd.f32 %v7351_v55, %v2374_v1  ;;  %v5046_v63 = vpop.f32.mrb[10].mxu0 }
 0x1ce   : > { %v2479_v4 = vmax.f32 %v2383_v12, 0.0  ;;  %v2386_v39 = vadd.f32 %v5046_v63, %v7351_v55  ;;  %v2377_v13 = vpop.f32.mrb[11].mxu0 }
 0x1cf   : > { %v2477_v26 = vmax.f32 %v2375_v2, 0.0  ;;  %v2378_v19 = vadd.f32 %v7351_v55, %v2377_v13 }
 0x1d0   : > { %2512 = vst.msk [vmem:[#allocation3 + $0xc8] sm:$0xff] %vm448_vm12, %v2479_v4  ;;  %v2480_v41 = vmax.f32 %v2386_v39, 0.0  ;;  %5890 = vrot.lane.b32.xlu0 %v5889_v18, %s6323_s22  ;;  %5905 = vrot.lane.b32.xlu1 %v5889_v18, %s6324_s23 }
 0x1d1   : > { %2510 = vst.msk [vmem:[#allocation3 + $0xa8] sm:$0xff] %vm448_vm12, %v2477_v26  ;;  %v2478_v20 = vmax.f32 %v2378_v19, 0.0 }
 0x1d2   : > { %2513 = vst.msk [vmem:[#allocation3 + $0xd0] sm:$0xff] %vm448_vm12, %v2480_v41 }
 0x1d3   : > { %2511 = vst.msk [vmem:[#allocation3 + $0xb0] sm:$0xff] %vm448_vm12, %v2478_v20 }
 0x1d7   : > { %v2735_v61 = vld [vmem:[#allocation3 + $0xc7] sm:$0xff] }
 0x1d8   : > { %v2767_v62 = vld [vmem:[#allocation3 + $0xc8] sm:$0xff] }
 0x1d9   : > { %v2736_v21 = vld [vmem:[#allocation3 + $0xcf] sm:$0xff]  ;;  %v2733_v15 = vld [vmem:[#allocation3 + $0xa7] sm:$0xff] }
 0x1da   : > { %v7529_v28 = vld [vmem:[#allocation3 + $0xc9] sm:$0xff]  ;;  %v5909_v54 = vpack.i.bf16 %v2736_v21, %v2735_v61  ;;  %v7531_v29 = vld [vmem:[#allocation3 + $0xd1] sm:$0xff] }
 0x1db   : > { %v2768_v10 = vld [vmem:[#allocation3 + $0xd0] sm:$0xff]  ;;  %v3799_v36 = vpack.c.bf16 %v7531_v29, %v7529_v28  ;;  %v5919_v38 = vpack.i.bf16 %v7531_v29, %v7529_v28  ;;  %v2765_v43 = vld [vmem:[#allocation3 + $0xa8] sm:$0xff] }
 0x1dc   : > { %v7533_v42 = vld [vmem:[#allocation3 + $0xa9] sm:$0xff]  ;;  %v7535_v32 = vld [vmem:[#allocation3 + $0xb1] sm:$0xff]  ;;  %5910 = vrot.lane.b32.xlu0 %v5909_v54, %s6324_s23  ;;  %5925 = vrot.lane.b32.xlu1 %v5909_v54, %s6325_s14  ;;  %v5914_v37 = vpack.i.bf16 %v2768_v10, %v2767_v62 }
 0x1dd   : > { %v3796_v25 = vpack.c.bf16 %v7535_v32, %v7533_v42  ;;  %v2734_v17 = vld [vmem:[#allocation3 + $0xaf] sm:$0xff]  ;;  %v5949_v12 = vpack.i.bf16 %v7535_v32, %v7533_v42 }
 0x1de   : > { %v5939_v40 = vpack.i.bf16 %v2734_v17, %v2733_v15  ;;  %v2766_v7 = vld [vmem:[#allocation3 + $0xb0] sm:$0xff]  ;;  %v2664_v32 = vld [vmem:[#allocation3 + $0x48] sm:$0xff] }
 0x1df   : > { %v5944_v60 = vpack.i.bf16 %v2766_v7, %v2765_v43 }
 0x1e0   : > { %5915 = vrot.lane.b32.xlu0 %v5914_v37, %s6325_s14  ;;  %5930 = vrot.lane.b32.xlu1 %v5914_v37, %s6323_s22  ;;  %v7579_v37 = vpop.permute.xlu1 %5790 }
 0x1e4   : > { %5920 = vrot.lane.b32.xlu0 %v5919_v38, %s6323_s22  ;;  %5935 = vrot.lane.b32.xlu1 %v5919_v38, %s6324_s23  ;;  %v7583_v43 = vpop.permute.xlu1 %5795 }
 0x1e8   : > { %5940 = vrot.lane.b32.xlu0 %v5939_v40, %s6324_s23  ;;  %5955 = vrot.lane.b32.xlu1 %v5939_v40, %s6325_s14 }
 0x1eb   : > { %v5049_v23 = vpop.f32.mrb[12].mxu0 }
 0x1ec   : > { %v2399_v44 = vadd.f32 %v5049_v23, %v7351_v55  ;;  %v2390_v47 = vpop.f32.mrb[13].mxu0  ;;  %5945 = vrot.lane.b32.xlu0 %v5944_v60, %s6325_s14  ;;  %5960 = vrot.lane.b32.xlu1 %v5944_v60, %s6323_s22 }
 0x1ed   : > { %v2391_v22 = vadd.f32 %v7351_v55, %v2390_v47  ;;  %v5050_v57 = vpop.f32.mrb[14].mxu0 }
 0x1ee   : > { %v2483_v33 = vmax.f32 %v2399_v44, 0.0  ;;  %v2402_v59 = vadd.f32 %v5050_v57, %v7351_v55  ;;  %v2393_v45 = vpop.f32.mrb[15].mxu0 }
 0x1ef   : > { %v2481_v1 = vmax.f32 %v2391_v22, 0.0  ;;  %v2394_v2 = vadd.f32 %v7351_v55, %v2393_v45 }
 0x1f0   : > { %2516 = vst.msk [vmem:[#allocation3 + $0x108] sm:$0xff] %vm448_vm12, %v2483_v33  ;;  %v2484_v63 = vmax.f32 %v2402_v59, 0.0  ;;  %5950 = vrot.lane.b32.xlu0 %v5949_v12, %s6323_s22  ;;  %5965 = vrot.lane.b32.xlu1 %v5949_v12, %s6324_s23 }
 0x1f1   : > { %2514 = vst.msk [vmem:[#allocation3 + $0xe8] sm:$0xff] %vm448_vm12, %v2481_v1  ;;  %v2482_v4 = vmax.f32 %v2394_v2, 0.0 }
 0x1f2   : > { %2517 = vst.msk [vmem:[#allocation3 + $0x110] sm:$0xff] %vm448_vm12, %v2484_v63 }
 0x1f3   : > { %2515 = vst.msk [vmem:[#allocation3 + $0xf0] sm:$0xff] %vm448_vm12, %v2482_v4 }
 0x1f7   : > { %v2739_v39 = vld [vmem:[#allocation3 + $0x107] sm:$0xff] }
 0x1f8   : > { %v2771_v61 = vld [vmem:[#allocation3 + $0x108] sm:$0xff] }
 0x1f9   : > { %v2740_v13 = vld [vmem:[#allocation3 + $0x10f] sm:$0xff]  ;;  %v2737_v62 = vld [vmem:[#allocation3 + $0xe7] sm:$0xff] }
 0x1fa   : > { %v7565_v18 = vld [vmem:[#allocation3 + $0x109] sm:$0xff]  ;;  %v5969_v26 = vpack.i.bf16 %v2740_v13, %v2739_v39  ;;  %v7567_v19 = vld [vmem:[#allocation3 + $0x111] sm:$0xff] }
 0x1fb   : > { %v2772_v41 = vld [vmem:[#allocation3 + $0x110] sm:$0xff]  ;;  %v5979_v54 = vpack.i.bf16 %v7567_v19, %v7565_v18  ;;  %v2769_v15 = vld [vmem:[#allocation3 + $0xe8] sm:$0xff] }
 0x1fc   : > { %5970 = vrot.lane.b32.xlu0 %v5969_v26, %s6324_s23  ;;  %5985 = vrot.lane.b32.xlu1 %v5969_v26, %s6325_s14  ;;  %v5974_v21 = vpack.i.bf16 %v2772_v41, %v2771_v61  ;;  %v2738_v10 = vld [vmem:[#allocation3 + $0xef] sm:$0xff] }
 0x1fd   : > { %v5999_v38 = vpack.i.bf16 %v2738_v10, %v2737_v62  ;;  %v2770_v17 = vld [vmem:[#allocation3 + $0xf0] sm:$0xff] }
 0x1fe   : > { %v6004_v40 = vpack.i.bf16 %v2770_v17, %v2769_v15  ;;  %v7585_v60 = vld [vmem:[#allocation3 + $0xe9] sm:$0xff]  ;;  %v7587_v23 = vld [vmem:[#allocation3 + $0xf1] sm:$0xff] }
 0x1ff   : > { %v6009_v12 = vpack.i.bf16 %v7587_v23, %v7585_v60 }
 0x200   : > { %5975 = vrot.lane.b32.xlu0 %v5974_v21, %s6325_s14  ;;  %5990 = vrot.lane.b32.xlu1 %v5974_v21, %s6323_s22 }
 0x204   : > { %5980 = vrot.lane.b32.xlu0 %v5979_v54, %s6323_s22  ;;  %5995 = vrot.lane.b32.xlu1 %v5979_v54, %s6324_s23 }
 0x208   : > { %6000 = vrot.lane.b32.xlu0 %v5999_v38, %s6324_s23  ;;  %6015 = vrot.lane.b32.xlu1 %v5999_v38, %s6325_s14 }
 0x20b   : > { %v5053_v7 = vpop.f32.mrb[16].mxu0 }
 0x20c   : > { %v2415_v44 = vadd.f32 %v5053_v7, %v7351_v55  ;;  %v2406_v47 = vpop.f32.mrb[17].mxu0  ;;  %6005 = vrot.lane.b32.xlu0 %v6004_v40, %s6325_s14  ;;  %6020 = vrot.lane.b32.xlu1 %v6004_v40, %s6323_s22  ;;  %v5793_v40 = vunpack.i.h.bf16 %v7579_v37  ;;  %v5792_v7 = vunpack.i.l.bf16 %v7579_v37 }
 0x20d   : > { %v2407_v22 = vadd.f32 %v7351_v55, %v2406_v47  ;;  %v5054_v57 = vpop.f32.mrb[18].mxu0 }
 0x20e   : > { %v2487_v33 = vmax.f32 %v2415_v44, 0.0  ;;  %v2418_v59 = vadd.f32 %v5054_v57, %v7351_v55  ;;  %v2409_v45 = vpop.f32.mrb[19].mxu0  ;;  %v2534_v57 = vld [vmem:[#allocation3 + $0x7] sm:$0xff] }
 0x20f   : > { %v2485_v1 = vmax.f32 %v2407_v22, 0.0  ;;  %v2410_v2 = vadd.f32 %v7351_v55, %v2409_v45 }
 0x210   : > { %2520 = vst.msk [vmem:[#allocation3 + $0x148] sm:$0xff] %vm448_vm12, %v2487_v33  ;;  %v2488_v63 = vmax.f32 %v2418_v59, 0.0  ;;  %6010 = vrot.lane.b32.xlu0 %v6009_v12, %s6323_s22  ;;  %6025 = vrot.lane.b32.xlu1 %v6009_v12, %s6324_s23  ;;  %v2535_v33 = vld [vmem:[#allocation3 + $0xf] sm:$0xff] }
 0x211   : > { %2518 = vst.msk [vmem:[#allocation3 + $0x128] sm:$0xff] %vm448_vm12, %v2485_v1  ;;  %v2486_v4 = vmax.f32 %v2410_v2, 0.0  ;;  %v7601_v39 = vpop.permute.xlu0 %5800 }
 0x212   : > { %v7603_v13 = vpop.permute.xlu1 %5805  ;;  %2521 = vst.msk [vmem:[#allocation3 + $0x150] sm:$0xff] %vm448_vm12, %v2488_v63  ;;  %v5803_v48 = vunpack.i.h.bf16 %v7601_v39 }
 0x213   : > { %2519 = vst.msk [vmem:[#allocation3 + $0x130] sm:$0xff] %vm448_vm12, %v2486_v4 }
 0x215   : > { %v5821_v26 = vpop.permute.xlu0 %5820 }
 0x216   : > { %v7607_v41 = vpop.permute.xlu1 %5810  ;;  %v5823_v59 = vunpack.i.h.bf16 %v5821_v26  ;;  %v5822_v45 = vunpack.i.l.bf16 %v5821_v26 }
 0x217   : > { %v2743_v10 = vld [vmem:[#allocation3 + $0x147] sm:$0xff] }
 0x218   : > { %v2775_v22 = vld [vmem:[#allocation3 + $0x148] sm:$0xff] }
 0x219   : > { %v5826_v61 = vpop.permute.xlu0 %5825  ;;  %v2744_v54 = vld [vmem:[#allocation3 + $0x14f] sm:$0xff] }
 0x21a   : > { %v7609_v21 = vpop.permute.xlu1 %5815  ;;  %v6029_v62 = vpack.i.bf16 %v2744_v54, %v2743_v10  ;;  %v2776_v38 = vld [vmem:[#allocation3 + $0x150] sm:$0xff]  ;;  %v5828_v1 = vunpack.i.h.bf16 %v5826_v61  ;;  %v5827_v2 = vunpack.i.l.bf16 %v5826_v61  ;;  %v5798_v10 = vunpack.i.h.bf16 %v7583_v43 }
 0x21b   : > { %v6034_v12 = vpack.i.bf16 %v2776_v38, %v2775_v22  ;;  %v7621_v54 = vld [vmem:[#allocation3 + $0x149] sm:$0xff]  ;;  %v7623_v37 = vld [vmem:[#allocation3 + $0x151] sm:$0xff]  ;;  %v3591_v38 = vsel %vm448_vm12, %v2534_v57, %v5792_v7 }
 0x21c   : > { %6030 = vrot.lane.b32.xlu0 %v6029_v62, %s6324_s23  ;;  %6045 = vrot.lane.b32.xlu1 %v6029_v62, %s6325_s14  ;;  %v5797_v62 = vunpack.i.l.bf16 %v7583_v43  ;;  %v6039_v43 = vpack.i.bf16 %v7623_v37, %v7621_v54  ;;  %v2742_v22 = vld [vmem:[#allocation3 + $0x12f] sm:$0xff] }
 0x21d   : > { %v5841_v17 = vpop.permute.xlu0 %5840 }
 0x21e   : > { %v7613_v15 = vpop.permute.xlu1 %5830  ;;  %v5843_v44 = vunpack.i.h.bf16 %v5841_v17  ;;  %v5842_v47 = vunpack.i.l.bf16 %v5841_v17 }
 0x220   : > { %v3690_v63 = vsel %vm448_vm12, %v7431_v5, %v5843_v44  ;;  %v3689_v4 = vsel %vm448_vm12, %v7441_v31, %v5842_v47  ;;  %6035 = vrot.lane.b32.xlu0 %v6034_v12, %s6325_s14  ;;  %6050 = vrot.lane.b32.xlu1 %v6034_v12, %s6323_s22  ;;  %v3592_v31 = vsel %vm448_vm12, %v2535_v33, %v5793_v40  ;;  %v2741_v33 = vld [vmem:[#allocation3 + $0x127] sm:$0xff] }
 0x221   : > { %v3721_v61 = vsel %vm3623_vm14, %v3689_v4, %v5822_v45  ;;  %v3722_v5 = vsel %vm3623_vm14, %v3690_v63, %v5823_v59  ;;  %v3624_v12 = vsel %vm3623_vm14, %v3591_v38, %v5797_v62  ;;  %v3625_v20 = vsel %vm3623_vm14, %v3592_v31, %v5798_v10  ;;  %v2773_v4 = vld [vmem:[#allocation3 + $0x128] sm:$0xff]  ;;  %v7658_v38 = vld [vmem:[#allocation3 + $0x131] sm:$0xff] }
 0x222   : > { %v7629_v26 = vpop.permute.xlu1 %5835  ;;  %v3753_v17 = vsel %vm3656_vm15, %v3721_v61, %v5827_v2  ;;  %v3754_v44 = vsel %vm3656_vm15, %v3722_v5, %v5828_v1  ;;  %v6059_v59 = vpack.i.bf16 %v2742_v22, %v2741_v33  ;;  %v2774_v2 = vld [vmem:[#allocation3 + $0x130] sm:$0xff]  ;;  %v6290_v10 = vld [vmem:[%s8438_s5 + $0x88] sm:$0xff]  }
 0x223   : > { %v3786_v47 = vpack.c.bf16 %v3754_v44, %v3753_v17  ;;  %v6064_v61 = vpack.i.bf16 %v2774_v2, %v2773_v4  ;;  %v5837_v2 = vunpack.i.l.bf16 %v7629_v26 }
 0x224   : > { %6040 = vrot.lane.b32.xlu0 %v6039_v43, %s6323_s22  ;;  %6055 = vrot.lane.b32.xlu1 %v6039_v43, %s6324_s23 }
 0x225   : > { %4064 = vmatprep.mubr.bf16.mxu0 %v3786_v47 }
 0x226   : > { %v5846_v40 = vpop.permute.xlu1 %5845 }
 0x227   : > { %v5848_v7 = vunpack.i.h.bf16 %v5846_v40  ;;  %v5847_v57 = vunpack.i.l.bf16 %v5846_v40 }
 0x228   : > { %6060 = vrot.lane.b32.xlu0 %v6059_v59, %s6324_s23  ;;  %6075 = vrot.lane.b32.xlu1 %v6059_v59, %s6325_s14 }
 0x229   : > { %v3658_v45 = vsel %vm3656_vm15, %v3625_v20, %v5848_v7  ;;  %v3657_v1 = vsel %vm3656_vm15, %v3624_v12, %v5847_v57  ;;  %v7656_v20 = vld [vmem:[#allocation3 + $0x129] sm:$0xff] }
 0x22a   : > { %v3785_v63 = vpack.c.bf16 %v3658_v45, %v3657_v1  ;;  %v6069_v12 = vpack.i.bf16 %v7658_v38, %v7656_v20  ;;  %v5832_v45 = vunpack.i.l.bf16 %v7613_v15  ;;  %v5833_v1 = vunpack.i.h.bf16 %v7613_v15 }
 0x22b   : > { %v5057_v62 = vpop.f32.mrb[20].mxu0 }
 0x22c   : > { %4065 = vmatmul.mubr.bf16.vlgmr.msra.gmra.mrb[32].mxu0 %v3785_v63  ;;  %v2431_v5 = vadd.f32 %v5057_v62, %v7351_v55  ;;  %v2422_v31 = vpop.f32.mrb[21].mxu0  ;;  %6065 = vrot.lane.b32.xlu0 %v6064_v61, %s6325_s14  ;;  %v5838_v63 = vunpack.i.h.bf16 %v7629_v26  ;;  %v3594_v26 = vsel %vm448_vm12, %v7456_v8, %v5833_v1  ;;  %v5808_v8 = vunpack.i.h.bf16 %v7603_v13 }
 0x22d   : > { %5068 = vmatpush3.bf16.msra.mxu0 %v7448_v35  ;;  %5071 = vmatprep.mubr.msk.bf16.mxu0 %vm448_vm12, %v3787_v16  ;;  %v2423_v17 = vadd.f32 %v7351_v55, %v2422_v31  ;;  %v5058_v44 = vpop.f32.mrb[22].mxu0 }
 0x22e   : > { %6080 = vrot.lane.b32.xlu1 %v6064_v61, %s6323_s22  ;;  %v2491_v43 = vmax.f32 %v2431_v5, 0.0  ;;  %v2434_v47 = vadd.f32 %v5058_v44, %v7351_v55  ;;  %v2425_v35 = vpop.f32.mrb[23].mxu0  ;;  %v7664_v22 = vpop.permute.xlu0 %5850  ;;  %5069 = vmatprep.subr.bf16.mxu0 %v6290_v10 }
 0x22f   : > { %v2489_v0 = vmax.f32 %v2423_v17, 0.0  ;;  %v2426_v6 = vadd.f32 %v7351_v55, %v2425_v35  ;;  %v7667_v16 = vpop.permute.xlu1 %5865  ;;  %v2665_v17 = vld [vmem:[#allocation3 + $0x50] sm:$0xff] }
 0x230   : > { %2524 = vst.msk [vmem:[#allocation3 + $0x188] sm:$0xff] %vm448_vm12, %v2491_v43  ;;  %v2492_v40 = vmax.f32 %v2434_v47, 0.0  ;;  %6070 = vrot.lane.b32.xlu0 %v6069_v12, %s6323_s22  ;;  %v3692_v28 = vsel %vm448_vm12, %v2665_v17, %v5803_v48 }
 0x231   : > { %5070 = vmatpush3.bf16.msra.mxu0 %v6290_v10  ;;  %2522 = vst.msk [vmem:[#allocation3 + $0x168] sm:$0xff] %vm448_vm12, %v2489_v0  ;;  %v2490_v7 = vmax.f32 %v2426_v6, 0.0 }
 0x232   : > { %6085 = vrot.lane.b32.xlu1 %v6069_v12, %s6324_s23  ;;  %2525 = vst.msk [vmem:[#allocation3 + $0x190] sm:$0xff] %vm448_vm12, %v2492_v40  ;;  %v7676_v57 = vpop.permute.xlu0 %5855  ;;  %v5813_v40 = vunpack.i.h.bf16 %v7607_v41 }
 0x233   : > { %2523 = vst.msk [vmem:[#allocation3 + $0x170] sm:$0xff] %vm448_vm12, %v2490_v7  ;;  %v7679_v33 = vpop.permute.xlu1 %5870  ;;  %v3802_v7 = vpack.c.bf16 %v7587_v23, %v7585_v60 }
 0x234   : > { %5072 = vmatmul.mubr.msk.bf16.vlgmr.msra.gmra.mrb[36].mxu0 %vm448_vm12, %v3790_v53  ;;  %v5802_v53 = vunpack.i.l.bf16 %v7601_v39  ;;  %v5807_v39 = vunpack.i.l.bf16 %v7603_v13 }
 0x235   : > { %5075 = vmatprep.mubr.msk.bf16.mxu0 %vm448_vm12, %v3793_v52  ;;  %v3593_v52 = vsel %vm448_vm12, %v7461_v24, %v5832_v45  ;;  %v3627_v24 = vsel %vm3623_vm14, %v3594_v26, %v5838_v63  ;;  %v5818_v63 = vunpack.i.h.bf16 %v7609_v21  ;;  %v5857_v26 = vunpack.i.l.bf16 %v7676_v57 }
 0x236   : > { %v7689_v59 = vpop.permute.xlu0 %5860  ;;  %v3626_v62 = vsel %vm3623_vm14, %v3593_v52, %v5837_v2  ;;  %v3691_v44 = vsel %vm448_vm12, %v2664_v32, %v5802_v53  ;;  %v3660_v12 = vsel %vm3656_vm15, %v3627_v24, %v5808_v8  ;;  %v5812_v2 = vunpack.i.l.bf16 %v7607_v41 }
 0x237   : > { %v7695_v4 = vpop.permute.xlu1 %5875  ;;  %v2747_v50 = vld [vmem:[#allocation3 + $0x187] sm:$0xff]  ;;  %v3659_v29 = vsel %vm3656_vm15, %v3626_v62, %v5807_v39  ;;  %v5853_v52 = vunpack.i.h.bf16 %v7664_v22  ;;  %v5852_v41 = vunpack.i.l.bf16 %v7664_v22  ;;  %v8445_v22 = vpack.c.bf16 %v7567_v19, %v7565_v18 }
 0x238   : > { %v2779_v42 = vld [vmem:[#allocation3 + $0x188] sm:$0xff]  ;;  %v3788_v60 = vpack.c.bf16 %v3660_v12, %v3659_v29  ;;  %v3596_v32 = vsel %vm448_vm12, %v7407_v9, %v5813_v40 }
 0x239   : > { %v2748_v51 = vld [vmem:[#allocation3 + $0x18f] sm:$0xff] }
 0x23a   : > { %v5881_v10 = vpop.permute.xlu0 %5880  ;;  %v6089_v46 = vpack.i.bf16 %v2748_v51, %v2747_v50  ;;  %v2780_v15 = vld [vmem:[#allocation3 + $0x190] sm:$0xff] }
 0x23b   : > { %v5883_v61 = vunpack.i.h.bf16 %v5881_v10  ;;  %v5882_v5 = vunpack.i.l.bf16 %v5881_v10  ;;  %v6094_v31 = vpack.i.bf16 %v2780_v15, %v2779_v42  ;;  %v5896_v43 = vpop.permute.xlu1 %5895  ;;  %v7718_v0 = vld [vmem:[#allocation3 + $0x189] sm:$0xff]  ;;  %v7720_v6 = vld [vmem:[#allocation3 + $0x191] sm:$0xff]  ;;  %v5817_v10 = vunpack.i.l.bf16 %v7609_v21 }
 0x23c   : > { %5076 = vmatmul.mubr.msk.bf16.gmra.mrb[40].mxu0 %vm448_vm12, %v3796_v25  ;;  %6090 = vrot.lane.b32.xlu0 %v6089_v46, %s6324_s23  ;;  %v6099_v51 = vpack.i.bf16 %v7720_v6, %v7718_v0  ;;  %v7740_v23 = vld [vmem:[#allocation3 + $0x16f] sm:$0xff]  ;;  %v5858_v15 = vunpack.i.h.bf16 %v7676_v57  ;;  %v5898_v62 = vunpack.i.h.bf16 %v5896_v43  ;;  %v5897_v21 = vunpack.i.l.bf16 %v5896_v43  ;;  %v7758_v57 = vld [vmem:[#allocation3 + $0x167] sm:$0xff] }
 0x23d   : > { %6105 = vrot.lane.b32.xlu1 %v6089_v46, %s6325_s14  ;;  %5079 = vmatprep.mubr.msk.bf16.mxu0 %vm448_vm12, %v3799_v36  ;;  %v3723_v36 = vsel %vm3623_vm14, %v3691_v44, %v5882_v5  ;;  %v3724_v13 = vsel %vm3623_vm14, %v3692_v28, %v5883_v61  ;;  %v6119_v24 = vpack.i.bf16 %v7740_v23, %v7758_v57  ;;  %v7770_v8 = vld [vmem:[#allocation3 + $0x170] sm:$0xff]  ;;  %v7778_v44 = vld [vmem:[#allocation3 + $0x168] sm:$0xff] }
 0x23e   : > { %v5886_v25 = vpop.permute.xlu0 %5885 }
 0x23f   : > { %v5888_v47 = vunpack.i.h.bf16 %v5886_v25  ;;  %v5887_v35 = vunpack.i.l.bf16 %v5886_v25  ;;  %v7747_v61 = vpop.permute.xlu1 %5900 }
 0x240   : > { %6095 = vrot.lane.b32.xlu0 %v6094_v31, %s6325_s14 }
 0x241   : > { %6110 = vrot.lane.b32.xlu1 %v6094_v31, %s6323_s22  ;;  %v3755_v45 = vsel %vm3656_vm15, %v3723_v36, %v5887_v35  ;;  %v3756_v1 = vsel %vm3656_vm15, %v3724_v13, %v5888_v47  ;;  %v3629_v31 = vsel %vm3623_vm14, %v3596_v32, %v5818_v63  ;;  %v6124_v47 = vpack.i.bf16 %v7770_v8, %v7778_v44  ;;  %v2714_v36 = vld [vmem:[#allocation3 + $0x169] sm:$0xff] }
 0x242   : > { %v5891_v50 = vpop.permute.xlu0 %5890  ;;  %v3789_v53 = vpack.c.bf16 %v3756_v1, %v3755_v45  ;;  %v3662_v43 = vsel %vm3656_vm15, %v3629_v31, %v5898_v62  ;;  %v3811_v35 = vpack.c.bf16 %v7623_v37, %v7621_v54 }
 0x243   : > { %v5893_v46 = vunpack.i.h.bf16 %v5891_v50  ;;  %v5892_v48 = vunpack.i.l.bf16 %v5891_v50  ;;  %v7786_v28 = vpop.permute.xlu1 %5905 }
 0x244   : > { %5080 = vmatmul.mubr.msk.bf16.gmra.mrb[44].mxu0 %vm448_vm12, %v3802_v7  ;;  %6100 = vrot.lane.b32.xlu0 %v6099_v51, %s6323_s22 }
 0x245   : > { %4072 = vmatprep.mubr.bf16.mxu1 %v3789_v53  ;;  %v3694_v5 = vsel %vm448_vm12, %v7507_v11, %v5893_v46  ;;  %v3693_v39 = vsel %vm448_vm12, %v7511_v58, %v5892_v48  ;;  %6115 = vrot.lane.b32.xlu1 %v6099_v51, %s6324_s23  ;;  %v3595_v58 = vsel %vm448_vm12, %v7398_v3, %v5812_v2 }
 0x246   : > { %5083 = vmatprep.mubr.msk.bf16.mxu0 %vm448_vm12, %v8445_v22  ;;  %4073 = vmatmul.mubr.bf16.vlgmr.msra.gmra.mrb[0].mxu1 %v3788_v60  ;;  %v3725_v42 = vsel %vm3623_vm14, %v3693_v39, %v5852_v41  ;;  %v3726_v11 = vsel %vm3623_vm14, %v3694_v5, %v5853_v52  ;;  %v3628_v25 = vsel %vm3623_vm14, %v3595_v58, %v5817_v10  ;;  %v5903_v41 = vunpack.i.h.bf16 %v7747_v61 }
 0x247   : > { %v3757_v18 = vsel %vm3656_vm15, %v3725_v42, %v5857_v26  ;;  %v3758_v19 = vsel %vm3656_vm15, %v3726_v11, %v5858_v15  ;;  %v3808_v3 = vpack.c.bf16 %v7658_v38, %v7656_v20  ;;  %v3661_v9 = vsel %vm3656_vm15, %v3628_v25, %v5897_v21  ;;  %v2715_v20 = vld [vmem:[#allocation3 + $0x171] sm:$0xff] }
 0x248   : > { %6120 = vrot.lane.b32.xlu0 %v6119_v24, %s6324_s23  ;;  %v3792_v17 = vpack.c.bf16 %v3758_v19, %v3757_v18  ;;  %v3791_v12 = vpack.c.bf16 %v3662_v43, %v3661_v9  ;;  %v6129_v2 = vpack.i.bf16 %v2715_v20, %v2714_v36  ;;  %v3814_v46 = vpack.c.bf16 %v2715_v20, %v2714_v36 }
 0x249   : > { %6135 = vrot.lane.b32.xlu1 %v6119_v24, %s6325_s14  ;;  %v5902_v15 = vunpack.i.l.bf16 %v7747_v61  ;;  %v5863_v24 = vunpack.i.h.bf16 %v7689_v59  ;;  %v5862_v18 = vunpack.i.l.bf16 %v7689_v59  ;;  %v3598_v19 = vsel %vm448_vm12, %v7499_v56, %v5903_v41 }
 0x24a   : > { %4080 = vmatprep.mubr.bf16.mxu1 %v3792_v17 }
 0x24b   : > { %v5061_v29 = vpop.f32.mrb[24].mxu0  ;;  %v3696_v36 = vsel %vm448_vm12, %v7479_v49, %v5863_v24 }
 0x24c   : > { %5084 = vmatmul.mubr.msk.bf16.gmra.mrb[48].mxu0 %vm448_vm12, %v3808_v3  ;;  %v2447_v38 = vadd.f32 %v5061_v29, %v7351_v55  ;;  %v2438_v13 = vpop.f32.mrb[25].mxu0  ;;  %6125 = vrot.lane.b32.xlu0 %v6124_v47, %s6325_s14  ;;  %v3597_v3 = vsel %vm448_vm12, %v7503_v14, %v5902_v15  ;;  %v5868_v14 = vunpack.i.h.bf16 %v7667_v16  ;;  %v5867_v29 = vunpack.i.l.bf16 %v7667_v16 }
 0x24d   : > { %5087 = vmatprep.mubr.msk.bf16.mxu0 %vm448_vm12, %v3811_v35  ;;  %v2439_v40 = vadd.f32 %v7351_v55, %v2438_v13  ;;  %6140 = vrot.lane.b32.xlu1 %v6124_v47, %s6323_s22  ;;  %v5062_v54 = vpop.f32.mrb[26].mxu0 }
 0x24e   : > { %v2495_v37 = vmax.f32 %v2447_v38, 0.0  ;;  %v2450_v7 = vadd.f32 %v5062_v54, %v7351_v55  ;;  %4081 = vmatmul.mubr.bf16.gmra.mrb[4].mxu1 %v3791_v12  ;;  %v2441_v45 = vpop.f32.mrb[27].mxu0  ;;  %v7795_v1 = vpop.permute.xlu0 %5910  ;;  %v3695_v12 = vsel %vm448_vm12, %v7491_v27, %v5862_v18  ;;  %v5872_v27 = vunpack.i.l.bf16 %v7679_v33 }
 0x24f   : > { %v2493_v63 = vmax.f32 %v2439_v40, 0.0  ;;  %v2442_v50 = vadd.f32 %v7351_v55, %v2441_v45  ;;  %v7798_v51 = vpop.permute.xlu1 %5925  ;;  %v3817_v55 = vpack.c.bf16 %v7720_v6, %v7718_v0  ;;  %v5908_v0 = vunpack.i.h.bf16 %v7786_v28 }
 0x250   : > { %2528 = vst.msk [vmem:[#allocation3 + $0x1c8] sm:$0xff] %vm448_vm12, %v2495_v37  ;;  %v2496_v53 = vmax.f32 %v2450_v7, 0.0  ;;  %6130 = vrot.lane.b32.xlu0 %v6129_v2, %s6323_s22  ;;  %v5907_v6 = vunpack.i.l.bf16 %v7786_v28  ;;  %v5913_v18 = vunpack.i.h.bf16 %v7795_v1 }
 0x251   : > { %2526 = vst.msk [vmem:[#allocation3 + $0x1a8] sm:$0xff] %vm448_vm12, %v2493_v63  ;;  %v2494_v10 = vmax.f32 %v2442_v50, 0.0  ;;  %6145 = vrot.lane.b32.xlu1 %v6129_v2, %s6324_s23  ;;  %v3631_v35 = vsel %vm3623_vm14, %v3598_v19, %v5908_v0  ;;  %v5873_v63 = vunpack.i.h.bf16 %v7679_v33  ;;  %v5912_v33 = vunpack.i.l.bf16 %v7795_v1 }
 0x252   : > { %2529 = vst.msk [vmem:[#allocation3 + $0x1d0] sm:$0xff] %vm448_vm12, %v2496_v53  ;;  %v7805_v48 = vpop.permute.xlu0 %5915  ;;  %v3630_v56 = vsel %vm3623_vm14, %v3597_v3, %v5907_v6  ;;  %v3664_v2 = vsel %vm3656_vm15, %v3631_v35, %v5868_v14  ;;  %v2670_v3 = vld [vmem:[#allocation3 + $0xa8] sm:$0xff] }
 0x253   : > { %2527 = vst.msk [vmem:[#allocation3 + $0x1b0] sm:$0xff] %vm448_vm12, %v2494_v10  ;;  %v7810_v60 = vpop.permute.xlu1 %5930  ;;  %v3663_v45 = vsel %vm3656_vm15, %v3630_v56, %v5867_v29  ;;  %v5878_v10 = vunpack.i.h.bf16 %v7695_v4  ;;  %v3600_v1 = vsel %vm448_vm12, %v7471_v30, %v5873_v63 }
 0x254   : > { %5088 = vmatmul.mubr.msk.bf16.gmra.mrb[52].mxu0 %vm448_vm12, %v3814_v46  ;;  %v5877_v46 = vunpack.i.l.bf16 %v7695_v4  ;;  %v5918_v4 = vunpack.i.h.bf16 %v7805_v48 }
 0x255   : > { %5091 = vmatprep.mubr.msk.bf16.mxu0 %vm448_vm12, %v3817_v55  ;;  %v3633_v35 = vsel %vm3623_vm14, %v3600_v1, %v5878_v10 }
 0x256   : > { %v7814_v52 = vpop.permute.xlu0 %5920 }
 0x257   : > { %v7818_v26 = vld [vmem:[#allocation3 + $0x1c7] sm:$0xff]  ;;  %v7824_v21 = vpop.permute.xlu1 %5935 }
 0x258   : > { %v7820_v62 = vld [vmem:[#allocation3 + $0x1a7] sm:$0xff] }
 0x259   : > { %v7826_v5 = vld [vmem:[#allocation3 + $0x1cf] sm:$0xff] }
 0x25a   : > { %v2815_v39 = vld [vmem:[#allocation3 + $0x1c9] sm:$0xff]  ;;  %v2816_v22 = vld [vmem:[#allocation3 + $0x1d1] sm:$0xff]  ;;  %v5941_v42 = vpop.permute.xlu0 %5940  ;;  %v7831_v61 = vpack.i.bf16 %v7826_v5, %v7818_v26 }
 0x25b   : > { %v7833_v11 = vld [vmem:[#allocation3 + $0x1af] sm:$0xff]  ;;  %v5943_v9 = vunpack.i.h.bf16 %v5941_v42  ;;  %v5942_v43 = vunpack.i.l.bf16 %v5941_v42  ;;  %v3823_v47 = vpack.c.bf16 %v2816_v22, %v2815_v39  ;;  %v5956_v40 = vpop.permute.xlu1 %5955  ;;  %v6159_v41 = vpack.i.bf16 %v2816_v22, %v2815_v39 }
 0x25c   : > { %v2813_v58 = vld [vmem:[#allocation3 + $0x1a9] sm:$0xff]  ;;  %v2814_v32 = vld [vmem:[#allocation3 + $0x1b1] sm:$0xff]  ;;  %v7840_v25 = vpack.i.bf16 %v7833_v11, %v7820_v62  ;;  %6150 = vrot.lane.b32.xlu0 %v7831_v61, %s6324_s23  ;;  %v3794_v42 = vpack.c.bf16 %v3664_v2, %v3663_v45  ;;  %v5958_v19 = vunpack.i.h.bf16 %v5956_v40  ;;  %v5917_v39 = vunpack.i.l.bf16 %v7805_v48 }
 0x25d   : > { %v3820_v31 = vpack.c.bf16 %v2814_v32, %v2813_v58  ;;  %v7842_v17 = vld [vmem:[#allocation3 + $0x1d0] sm:$0xff]  ;;  %v7855_v28 = vld [vmem:[#allocation3 + $0x1c8] sm:$0xff]  ;;  %v3727_v49 = vsel %vm3623_vm14, %v3695_v12, %v5942_v43  ;;  %v3728_v7 = vsel %vm3623_vm14, %v3696_v36, %v5943_v9  ;;  %v6189_v24 = vpack.i.bf16 %v2814_v32, %v2813_v58 }
 0x25e   : > { %v7848_v59 = vld [vmem:[#allocation3 + $0x1b0] sm:$0xff]  ;;  %6180 = vrot.lane.b32.xlu1 %v7840_v25, %s6325_s14  ;;  %v5946_v20 = vpop.permute.xlu0 %5945  ;;  %v7864_v38 = vpack.i.bf16 %v7842_v17, %v7855_v28  ;;  %v7866_v13 = vld [vmem:[#allocation3 + $0x1a8] sm:$0xff]  ;;  %v3599_v43 = vsel %vm448_vm12, %v7469_v34, %v5872_v27  ;;  %v3666_v34 = vsel %vm3656_vm15, %v3633_v35, %v5958_v19  ;;  %v5923_v19 = vunpack.i.h.bf16 %v7814_v52 }
 0x25f   : > { %5092 = vmatmul.mubr.msk.bf16.gmra.mrb[56].mxu0 %vm448_vm12, %v3820_v31  ;;  %v5948_v54 = vunpack.i.h.bf16 %v5946_v20  ;;  %v5947_v37 = vunpack.i.l.bf16 %v5946_v20  ;;  %v6184_v16 = vpack.i.bf16 %v7848_v59, %v7866_v13  ;;  %v5957_v31 = vunpack.i.l.bf16 %v5956_v40  ;;  %v2671_v9 = vld [vmem:[#allocation3 + $0xb0] sm:$0xff]  ;;  %v7890_v22 = vpop.permute.xlu1 %5960 }
 0x260   : > { %5095 = vmatprep.mubr.msk.bf16.mxu0 %vm448_vm12, %v3823_v47  ;;  %6155 = vrot.lane.b32.xlu0 %v7864_v38, %s6325_s14  ;;  %v3632_v48 = vsel %vm3623_vm14, %v3599_v43, %v5877_v46 }
 0x261   : > { %v3759_v50 = vsel %vm3656_vm15, %v3727_v49, %v5947_v37  ;;  %v3760_v53 = vsel %vm3656_vm15, %v3728_v7, %v5948_v54  ;;  %v3665_v30 = vsel %vm3656_vm15, %v3632_v48, %v5957_v31  ;;  %v6300_v54 = vld [vmem:[%s8437_s4] ss:$0 sm:$0xff] }
 0x262   : > { %6185 = vrot.lane.b32.xlu1 %v6184_v16, %s6323_s22  ;;  %v5951_v55 = vpop.permute.xlu0 %5950  ;;  %v3795_v15 = vpack.c.bf16 %v3760_v53, %v3759_v50  ;;  %v3797_v40 = vpack.c.bf16 %v3666_v34, %v3665_v30  ;;  %v5928_v30 = vunpack.i.h.bf16 %v7798_v51  ;;  %v5927_v34 = vunpack.i.l.bf16 %v7798_v51 }
 0x263   : > { %v5953_v0 = vunpack.i.h.bf16 %v5951_v55  ;;  %v5952_v6 = vunpack.i.l.bf16 %v5951_v55  ;;  %v5966_v20 = vpop.permute.xlu1 %5965 }
 0x264   : > { %6160 = vrot.lane.b32.xlu0 %v6159_v41, %s6323_s22  ;;  %4088 = vmatprep.mubr.bf16.mxu1 %v3795_v15  ;;  %v5963_v15 = vunpack.i.h.bf16 %v7890_v22 }
 0x265   : > { %v3698_v58 = vsel %vm448_vm12, %v2671_v9, %v5953_v0  ;;  %v3697_v32 = vsel %vm448_vm12, %v2670_v3, %v5952_v6  ;;  %4089 = vmatmul.mubr.bf16.gmra.mrb[8].mxu1 %v3794_v42  ;;  %v5962_v0 = vunpack.i.l.bf16 %v7890_v22  ;;  %v5968_v6 = vunpack.i.h.bf16 %v5966_v20  ;;  %v2544_v22 = vld [vmem:[#allocation3 + $0xa7] sm:$0xff] }
 0x266   : > { %6190 = vrot.lane.b32.xlu1 %v6189_v24, %s6324_s23  ;;  %v3729_v47 = vsel %vm3623_vm14, %v3697_v32, %v5912_v33  ;;  %v3730_v56 = vsel %vm3623_vm14, %v3698_v58, %v5913_v18  ;;  %v2545_v58 = vld [vmem:[#allocation3 + $0xaf] sm:$0xff] }
 0x267   : > { %v3761_v14 = vsel %vm3656_vm15, %v3729_v47, %v5917_v39  ;;  %v3762_v29 = vsel %vm3656_vm15, %v3730_v56, %v5918_v4  ;;  %v5922_v39 = vunpack.i.l.bf16 %v7814_v52  ;;  %v3602_v43 = vsel %vm448_vm12, %v2545_v58, %v5963_v15 }
 0x268   : > { %6165 = vrot.lane.b32.xlu0 %v7840_v25, %s6324_s23  ;;  %v3798_v36 = vpack.c.bf16 %v3762_v29, %v3761_v14  ;;  %v3601_v47 = vsel %vm448_vm12, %v2544_v22, %v5962_v0  ;;  %v2673_v14 = vld [vmem:[#allocation3 + $0xd0] sm:$0xff]  ;;  %v5932_v15 = vunpack.i.l.bf16 %v7810_v60  ;;  %v5938_v0 = vunpack.i.h.bf16 %v7824_v21 }
 0x26a   : > { %6195 = vrot.lane.b32.xlu1 %v7831_v61, %s6325_s14  ;;  %4096 = vmatprep.mubr.bf16.mxu1 %v3798_v36  ;;  %v3635_v36 = vsel %vm3623_vm14, %v3602_v43, %v5968_v6  ;;  %v5937_v6 = vunpack.i.l.bf16 %v7824_v21 }
 0x26b   : > { %v5065_v12 = vpop.f32.mrb[28].mxu0 }
 0x26c   : > { %v2463_v37 = vadd.f32 %v6300_v54, %v5065_v12  ;;  %v2454_v49 = vpop.f32.mrb[29].mxu0  ;;  %6170 = vrot.lane.b32.xlu0 %v6184_v16, %s6325_s14  ;;  %v3700_v12 = vsel %vm448_vm12, %v2673_v14, %v5923_v19  ;;  %v2547_v14 = vld [vmem:[#allocation3 + $0xcf] sm:$0xff] }
 0x26d   : > { %v2455_v25 = vadd.f32 %v6300_v54, %v2454_v49  ;;  %v5066_v7 = vpop.f32.mrb[30].mxu0  ;;  %4097 = vmatmul.mubr.bf16.gmra.mrb[12].mxu1 %v3797_v40 }
 0x26e   : > { %6200 = vrot.lane.b32.xlu1 %v7864_v38, %s6323_s22  ;;  %v2499_v45 = vmax.f32 %v2463_v37, 0.0  ;;  %v2466_v61 = vadd.f32 %v6300_v54, %v5066_v7  ;;  %v2457_v2 = vpop.f32.mrb[31].mxu0  ;;  %v7917_v63 = vpop.permute.xlu0 %5970 }
 0x26f   : > { %v2497_v27 = vmax.f32 %v2455_v25, 0.0  ;;  %v2458_v50 = vadd.f32 %v6300_v54, %v2457_v2  ;;  %v7919_v53 = vpop.permute.xlu1 %5985 }
 0x270   : > { %2532 = vst.msk [vmem:[#allocation3 + $0x208] sm:$0xff] %vm448_vm12, %v2499_v45  ;;  %v2500_v10 = vmax.f32 %v2466_v61, 0.0  ;;  %6175 = vrot.lane.b32.xlu0 %v6189_v24, %s6323_s22  ;;  %v5967_v24 = vunpack.i.l.bf16 %v5966_v20  ;;  %v2672_v20 = vld [vmem:[#allocation3 + $0xc8] sm:$0xff] }
 0x271   : > { %2530 = vst.msk [vmem:[#allocation3 + $0x1e8] sm:$0xff] %vm448_vm12, %v2497_v27  ;;  %v2498_v16 = vmax.f32 %v2458_v50, 0.0  ;;  %v3699_v37 = vsel %vm448_vm12, %v2672_v20, %v5922_v39  ;;  %v3668_v27 = vsel %vm3656_vm15, %v3635_v36, %v5928_v30  ;;  %v5933_v50 = vunpack.i.h.bf16 %v7810_v60  ;;  %v2675_v60 = vld [vmem:[#allocation3 + $0xf0] sm:$0xff] }
 0x272   : > { %6225 = vrot.lane.b32.xlu1 %v6159_v41, %s6324_s23  ;;  %2533 = vst.msk [vmem:[#allocation3 + $0x210] sm:$0xff] %vm448_vm12, %v2500_v10  ;;  %v7926_v38 = vpop.permute.xlu0 %5975  ;;  %v3634_v29 = vsel %vm3623_vm14, %v3601_v47, %v5967_v24 }
 0x273   : > { %2531 = vst.msk [vmem:[#allocation3 + $0x1f0] sm:$0xff] %vm448_vm12, %v2498_v16  ;;  %v7929_v46 = vpop.permute.xlu1 %5990  ;;  %v3667_v2 = vsel %vm3656_vm15, %v3634_v29, %v5927_v34  ;;  %v5978_v43 = vunpack.i.h.bf16 %v7926_v38  ;;  %v5977_v47 = vunpack.i.l.bf16 %v7926_v38 }
 0x274   : > { %v3800_v58 = vpack.c.bf16 %v3668_v27, %v3667_v2 }
 0x276   : > { %v7931_v55 = vpop.permute.xlu0 %5980 }
 0x277   : > { %v7935_v42 = vpop.permute.xlu1 %5995  ;;  %v2755_v38 = vld [vmem:[#allocation3 + $0x207] sm:$0xff] }
 0x278   : > { %v7937_v18 = vld [vmem:[#allocation3 + $0x1e7] sm:$0xff] }
 0x279   : > { %v7939_v41 = vld [vmem:[#allocation3 + $0x209] sm:$0xff]  ;;  %v7941_v33 = vld [vmem:[#allocation3 + $0x211] sm:$0xff] }
 0x27a   : > { %v6001_v31 = vpop.permute.xlu0 %6000  ;;  %v7944_v3 = vld [vmem:[#allocation3 + $0x1ef] sm:$0xff]  ;;  %v3829_v52 = vpack.c.bf16 %v7941_v33, %v7939_v41 }
 0x27b   : > { %v2817_v9 = vld [vmem:[#allocation3 + $0x1e9] sm:$0xff]  ;;  %v2818_v4 = vld [vmem:[#allocation3 + $0x1f1] sm:$0xff]  ;;  %v6204_v32 = vpack.i.bf16 %v7944_v3, %v7937_v18  ;;  %v6003_v56 = vunpack.i.h.bf16 %v6001_v31  ;;  %v6002_v48 = vunpack.i.l.bf16 %v6001_v31  ;;  %v6016_v49 = vpop.permute.xlu1 %6015 }
 0x27c   : > { %v3826_v1 = vpack.c.bf16 %v2818_v4, %v2817_v9  ;;  %v7951_v35 = vld [vmem:[#allocation3 + $0x1f0] sm:$0xff]  ;;  %v7963_v54 = vld [vmem:[#allocation3 + $0x1e8] sm:$0xff]  ;;  %v6214_v22 = vpack.i.bf16 %v2818_v4, %v2817_v9  ;;  %v6018_v21 = vunpack.i.h.bf16 %v6016_v49  ;;  %v6017_v29 = vunpack.i.l.bf16 %v6016_v49 }
 0x27d   : > { %6205 = vrot.lane.b32.xlu0 %v6204_v32, %s6324_s23  ;;  %6235 = vrot.lane.b32.xlu1 %v6204_v32, %s6325_s14  ;;  %v6209_v45 = vpack.i.bf16 %v7951_v35, %v7963_v54  ;;  %v3731_v51 = vsel %vm3623_vm14, %v3699_v37, %v6002_v48  ;;  %v3732_v61 = vsel %vm3623_vm14, %v3700_v12, %v6003_v56  ;;  %v5973_v32 = vunpack.i.h.bf16 %v7917_v63  ;;  %v2674_v56 = vld [vmem:[#allocation3 + $0xe8] sm:$0xff] }
 0x27e   : > { %5096 = vmatmul.mubr.msk.bf16.gmra.mrb[60].mxu0 %vm448_vm12, %v3826_v1  ;;  %v6006_v40 = vpop.permute.xlu0 %6005  ;;  %v5972_v1 = vunpack.i.l.bf16 %v7917_v63  ;;  %v2756_v48 = vld [vmem:[#allocation3 + $0x20f] sm:$0xff]  ;;  %v2546_v63 = vld [vmem:[#allocation3 + $0xc7] sm:$0xff]  ;;  %v3604_v4 = vsel %vm448_vm12, %v2547_v14, %v5933_v50 }
 0x27f   : > { %v6008_v25 = vunpack.i.h.bf16 %v6006_v40  ;;  %v6007_v7 = vunpack.i.l.bf16 %v6006_v40  ;;  %5099 = vmatprep.mubr.msk.bf16.mxu0 %vm448_vm12, %v3829_v52  ;;  %v6021_v36 = vpop.permute.xlu1 %6020  ;;  %v3603_v20 = vsel %vm448_vm12, %v2546_v63, %v5932_v15  ;;  %v6219_v12 = vpack.i.bf16 %v2756_v48, %v2755_v38  ;;  %v8003_v2 = vld [vmem:[#allocation3 + $0x208] sm:$0xff]  ;;  %v2822_v15 = vld [vmem:[#allocation3 + $0x231] sm:$0xff] }
 0x280   : > { %v3636_v49 = vsel %vm3623_vm14, %v3603_v20, %v5937_v6  ;;  %v2757_v6 = vld [vmem:[#allocation3 + $0x227] sm:$0xff]  ;;  %v6022_v48 = vunpack.i.l.bf16 %v6021_v36  ;;  %v2549_v63 = vld [vmem:[#allocation3 + $0xef] sm:$0xff] }
 0x281   : > { %6210 = vrot.lane.b32.xlu0 %v6209_v45, %s6325_s14  ;;  %6245 = vrot.lane.b32.xlu1 %v6209_v45, %s6323_s22  ;;  %v3763_v10 = vsel %vm3656_vm15, %v3731_v51, %v6007_v7  ;;  %v3764_v16 = vsel %vm3656_vm15, %v3732_v61, %v6008_v25  ;;  %v3637_v25 = vsel %vm3623_vm14, %v3604_v4, %v5938_v0  ;;  %v7997_v45 = vld [vmem:[#allocation3 + $0x210] sm:$0xff] }
 0x282   : > { %v6011_v24 = vpop.permute.xlu0 %6010  ;;  %v3801_v19 = vpack.c.bf16 %v3764_v16, %v3763_v10  ;;  %v3669_v51 = vsel %vm3656_vm15, %v3636_v49, %v6017_v29  ;;  %v3670_v61 = vsel %vm3656_vm15, %v3637_v25, %v6018_v21  ;;  %v6229_v50 = vpack.i.bf16 %v7997_v45, %v8003_v2  ;;  %v2821_v16 = vld [vmem:[#allocation3 + $0x229] sm:$0xff] }
 0x283   : > { %v6013_v31 = vunpack.i.h.bf16 %v6011_v24  ;;  %v6012_v39 = vunpack.i.l.bf16 %v6011_v24  ;;  %v6026_v27 = vpop.permute.xlu1 %6025  ;;  %v3803_v10 = vpack.c.bf16 %v3670_v61, %v3669_v51  ;;  %v3832_v0 = vpack.c.bf16 %v2822_v15, %v2821_v16  ;;  %v2758_v24 = vld [vmem:[#allocation3 + $0x22f] sm:$0xff] }
 0x284   : > { %4104 = vmatprep.mubr.bf16.mxu1 %v3801_v19  ;;  %v5983_v29 = vunpack.i.h.bf16 %v7931_v55  ;;  %v2677_v49 = vld [vmem:[#allocation3 + $0x110] sm:$0xff] }
 0x285   : > { %v3702_v52 = vsel %vm448_vm12, %v2675_v60, %v6013_v31  ;;  %v3701_v9 = vsel %vm448_vm12, %v2674_v56, %v6012_v39  ;;  %6215 = vrot.lane.b32.xlu0 %v6214_v22, %s6323_s22  ;;  %6255 = vrot.lane.b32.xlu1 %v6214_v22, %s6324_s23  ;;  %v6239_v39 = vpack.i.bf16 %v7941_v33, %v7939_v41  ;;  %v6023_v60 = vunpack.i.h.bf16 %v6021_v36 }
 0x286   : > { %4105 = vmatmul.mubr.bf16.gmra.mrb[16].mxu1 %v3800_v58  ;;  %v3733_v30 = vsel %vm3623_vm14, %v3701_v9, %v5972_v1  ;;  %v3734_v34 = vsel %vm3623_vm14, %v3702_v52, %v5973_v32  ;;  %5100 = vmatmul.mubr.msk.bf16.gmra.mrb[64].mxu0 %vm448_vm12, %v3832_v0  ;;  %v6249_v22 = vpack.i.bf16 %v2758_v24, %v2757_v6  ;;  %v2789_v58 = vld [vmem:[#allocation3 + $0x228] sm:$0xff]  ;;  %v2790_v32 = vld [vmem:[#allocation3 + $0x230] sm:$0xff]  ;;  %v6028_v41 = vunpack.i.h.bf16 %v6026_v27 }
 0x287   : > { %v3765_v40 = vsel %vm3656_vm15, %v3733_v30, %v5977_v47  ;;  %v3766_v37 = vsel %vm3656_vm15, %v3734_v34, %v5978_v43  ;;  %v6259_v47 = vpack.i.bf16 %v2790_v32, %v2789_v58  ;;  %v6027_v33 = vunpack.i.l.bf16 %v6026_v27  ;;  %v2548_v9 = vld [vmem:[#allocation3 + $0xe7] sm:$0xff] }
 0x288   : > { %v3804_v7 = vpack.c.bf16 %v3766_v37, %v3765_v40  ;;  %v5982_v52 = vunpack.i.l.bf16 %v7931_v55  ;;  %v3606_v4 = vsel %vm448_vm12, %v2549_v63, %v6023_v60  ;;  %v3605_v38 = vsel %vm448_vm12, %v2548_v9, %v6022_v48  ;;  %v2676_v37 = vld [vmem:[#allocation3 + $0x108] sm:$0xff]  ;;  %v2679_v63 = vld [vmem:[#allocation3 + $0x130] sm:$0xff] }
 0x289   : > { %6220 = vrot.lane.b32.xlu0 %v6219_v12, %s6324_s23  ;;  %6265 = vrot.lane.b32.xlu1 %v6219_v12, %s6325_s14  ;;  %v3638_v36 = vsel %vm3623_vm14, %v3605_v38, %v6027_v33  ;;  %v3639_v20 = vsel %vm3623_vm14, %v3606_v4, %v6028_v41  ;;  %v5988_v12 = vunpack.i.h.bf16 %v7919_v53  ;;  %v5987_v40 = vunpack.i.l.bf16 %v7919_v53  ;;  %v2678_v9 = vld [vmem:[#allocation3 + $0x128] sm:$0xff] }
 0x28a   : > { %4112 = vmatprep.mubr.bf16.mxu1 %v3804_v7  ;;  %v3704_v7 = vsel %vm448_vm12, %v2677_v49, %v5983_v29  ;;  %v3703_v51 = vsel %vm448_vm12, %v2676_v37, %v5982_v52  ;;  %v5993_v6 = vunpack.i.h.bf16 %v7929_v46  ;;  %v5992_v24 = vunpack.i.l.bf16 %v7929_v46  ;;  %v2550_v46 = vld [vmem:[#allocation3 + $0x107] sm:$0xff]  ;;  %v2551_v4 = vld [vmem:[#allocation3 + $0x10f] sm:$0xff] }
 0x28b   : > { %v3671_v16 = vsel %vm3656_vm15, %v3638_v36, %v5987_v40  ;;  %v3672_v15 = vsel %vm3656_vm15, %v3639_v20, %v5988_v12  ;;  %v5997_v32 = vunpack.i.l.bf16 %v7935_v42 }
 0x28c   : > { %v3806_v48 = vpack.c.bf16 %v3672_v15, %v3671_v16  ;;  %v3608_v36 = vsel %vm448_vm12, %v2551_v4, %v5993_v6 }
 0x28d   : > { %6230 = vrot.lane.b32.xlu0 %v6229_v50, %s6325_s14 }
 0x28e   : > { %4113 = vmatmul.mubr.bf16.gmra.mrb[20].mxu1 %v3803_v10  ;;  %v8008_v19 = vpop.permute.xlu0 %6030  ;;  %v8010_v31 = vpop.permute.xlu1 %6045 }
 0x28f   : > { %v6033_v41 = vunpack.i.h.bf16 %v8008_v19  ;;  %v6032_v33 = vunpack.i.l.bf16 %v8008_v19  ;;  %v3607_v19 = vsel %vm448_vm12, %v2550_v46, %v5992_v24  ;;  %v2680_v46 = vld [vmem:[#allocation3 + $0x148] sm:$0xff] }
 0x290   : > { %v3640_v40 = vsel %vm3623_vm14, %v3607_v19, %v5997_v32  ;;  %v2552_v32 = vld [vmem:[#allocation3 + $0x127] sm:$0xff] }
 0x291   : > { %6240 = vrot.lane.b32.xlu0 %v6239_v39, %s6323_s22  ;;  %v5998_v39 = vunpack.i.h.bf16 %v7935_v42 }
 0x292   : > { %v8016_v1 = vpop.permute.xlu0 %6035  ;;  %v8018_v43 = vpop.permute.xlu1 %6050 }
 0x293   : > { %v6038_v38 = vunpack.i.h.bf16 %v8016_v1  ;;  %v3641_v37 = vsel %vm3623_vm14, %v3608_v36, %v5998_v39 }
 0x295   : > { %6250 = vrot.lane.b32.xlu0 %v6249_v22, %s6324_s23 }
 0x296   : > { %v8021_v56 = vpop.permute.xlu0 %6040  ;;  %v8023_v14 = vpop.permute.xlu1 %6055 }
 0x299   : > { %6260 = vrot.lane.b32.xlu0 %v6259_v47, %s6325_s14 }
 0x29a   : > { %v6061_v21 = vpop.permute.xlu0 %6060  ;;  %v6076_v25 = vpop.permute.xlu1 %6075 }
 0x29b   : > { %v6063_v30 = vunpack.i.h.bf16 %v6061_v21  ;;  %v6062_v34 = vunpack.i.l.bf16 %v6061_v21  ;;  %v6078_v21 = vunpack.i.h.bf16 %v6076_v25  ;;  %v6077_v29 = vunpack.i.l.bf16 %v6076_v25 }
 0x29d   : > { %v3735_v50 = vsel %vm3623_vm14, %v3703_v51, %v6062_v34  ;;  %v3736_v10 = vsel %vm3623_vm14, %v3704_v7, %v6063_v30  ;;  %v6037_v30 = vunpack.i.l.bf16 %v8016_v1  ;;  %v3674_v7 = vsel %vm3656_vm15, %v3641_v37, %v6078_v21 }
 0x29e   : > { %v6066_v55 = vpop.permute.xlu0 %6065 }
 0x29f   : > { %v6068_v61 = vunpack.i.h.bf16 %v6066_v55  ;;  %v6067_v27 = vunpack.i.l.bf16 %v6066_v55  ;;  %v3673_v55 = vsel %vm3656_vm15, %v3640_v40, %v6077_v29 }
 0x2a0   : > { %v6081_v52 = vpop.permute.xlu1 %6080 }
 0x2a1   : > { %v3767_v53 = vsel %vm3656_vm15, %v3735_v50, %v6067_v27  ;;  %v3768_v0 = vsel %vm3656_vm15, %v3736_v10, %v6068_v61  ;;  %v3809_v61 = vpack.c.bf16 %v3674_v7, %v3673_v55 }
 0x2a2   : > { %v6071_v22 = vpop.permute.xlu0 %6070  ;;  %v3807_v58 = vpack.c.bf16 %v3768_v0, %v3767_v53  ;;  %v6083_v53 = vunpack.i.h.bf16 %v6081_v52  ;;  %v6082_v0 = vunpack.i.l.bf16 %v6081_v52 }
 0x2a3   : > { %v6073_v47 = vunpack.i.h.bf16 %v6071_v22  ;;  %v6072_v60 = vunpack.i.l.bf16 %v6071_v22  ;;  %v6043_v22 = vunpack.i.h.bf16 %v8021_v56 }
 0x2a4   : > { %4120 = vmatprep.mubr.bf16.mxu1 %v3807_v58  ;;  %v6086_v51 = vpop.permute.xlu1 %6085  ;;  %v6042_v58 = vunpack.i.l.bf16 %v8021_v56  ;;  %v2681_v56 = vld [vmem:[#allocation3 + $0x150] sm:$0xff] }
 0x2a5   : > { %v3706_v42 = vsel %vm448_vm12, %v2679_v63, %v6073_v47  ;;  %v3705_v34 = vsel %vm448_vm12, %v2678_v9, %v6072_v60  ;;  %4121 = vmatmul.mubr.bf16.gmra.mrb[24].mxu1 %v3806_v48  ;;  %v6088_v6 = vunpack.i.h.bf16 %v6086_v51  ;;  %v6087_v24 = vunpack.i.l.bf16 %v6086_v51  ;;  %v2553_v47 = vld [vmem:[#allocation3 + $0x12f] sm:$0xff] }
 0x2a6   : > { %v3737_v20 = vsel %vm3623_vm14, %v3705_v34, %v6032_v33  ;;  %v3738_v12 = vsel %vm3623_vm14, %v3706_v42, %v6033_v41  ;;  %v3610_v48 = vsel %vm448_vm12, %v2553_v47, %v6083_v53  ;;  %v3609_v41 = vsel %vm448_vm12, %v2552_v32, %v6082_v0  ;;  %v2555_v32 = vld [vmem:[#allocation3 + $0x14f] sm:$0xff] }
 0x2a7   : > { %v3769_v49 = vsel %vm3656_vm15, %v3737_v20, %v6037_v30  ;;  %v3770_v1 = vsel %vm3656_vm15, %v3738_v12, %v6038_v38  ;;  %v3642_v29 = vsel %vm3623_vm14, %v3609_v41, %v6087_v24  ;;  %v3643_v52 = vsel %vm3623_vm14, %v3610_v48, %v6088_v6 }
 0x2a8   : > { %v3810_v25 = vpack.c.bf16 %v3770_v1, %v3769_v49  ;;  %v6048_v9 = vunpack.i.h.bf16 %v8010_v31  ;;  %v6047_v63 = vunpack.i.l.bf16 %v8010_v31  ;;  %v3708_v38 = vsel %vm448_vm12, %v2681_v56, %v6043_v22 }
 0x2a9   : > { %v3707_v30 = vsel %vm448_vm12, %v2680_v46, %v6042_v58  ;;  %v6053_v49 = vunpack.i.h.bf16 %v8018_v43  ;;  %v6052_v1 = vunpack.i.l.bf16 %v8018_v43  ;;  %v6057_v51 = vunpack.i.l.bf16 %v8023_v14  ;;  %v2554_v58 = vld [vmem:[#allocation3 + $0x147] sm:$0xff] }
 0x2aa   : > { %4128 = vmatprep.mubr.bf16.mxu1 %v3810_v25  ;;  %v3675_v20 = vsel %vm3656_vm15, %v3642_v29, %v6047_v63  ;;  %v3676_v12 = vsel %vm3656_vm15, %v3643_v52, %v6048_v9  ;;  %v6058_v25 = vunpack.i.h.bf16 %v8023_v14 }
 0x2ab   : > { %v3812_v0 = vpack.c.bf16 %v3676_v12, %v3675_v20  ;;  %v3612_v41 = vsel %vm448_vm12, %v2555_v32, %v6053_v49 }
 0x2ac   : > { %v3645_v52 = vsel %vm3623_vm14, %v3612_v41, %v6058_v25 }
 0x2ad   : > { %4129 = vmatmul.mubr.bf16.gmra.mrb[28].mxu1 %v3809_v61 }
 0x2ae   : > { %v8062_v27 = vpop.permute.xlu0 %6090 }
 0x2af   : > { %v8064_v50 = vpop.permute.xlu1 %6105  ;;  %v6093_v6 = vunpack.i.h.bf16 %v8062_v27  ;;  %v6092_v24 = vunpack.i.l.bf16 %v8062_v27  ;;  %v3611_v27 = vsel %vm448_vm12, %v2554_v58, %v6052_v1 }
 0x2b0   : > { %v3644_v29 = vsel %vm3623_vm14, %v3611_v27, %v6057_v51 }
 0x2b2   : > { %v8066_v10 = vpop.permute.xlu0 %6095 }
 0x2b3   : > { %v8068_v16 = vpop.permute.xlu1 %6110  ;;  %v6098_v43 = vunpack.i.h.bf16 %v8066_v10  ;;  %v6097_v47 = vunpack.i.l.bf16 %v8066_v10 }
 0x2b4   : > { %v6113_v41 = vunpack.i.h.bf16 %v8068_v16  ;;  %v6112_v27 = vunpack.i.l.bf16 %v8068_v16 }
 0x2b6   : > { %v8070_v15 = vpop.permute.xlu0 %6100 }
 0x2b7   : > { %v8074_v60 = vpop.permute.xlu1 %6115  ;;  %v6102_v49 = vunpack.i.l.bf16 %v8070_v15 }
 0x2ba   : > { %v6121_v39 = vpop.permute.xlu0 %6120 }
 0x2bb   : > { %v6123_v33 = vunpack.i.h.bf16 %v6121_v39  ;;  %v6122_v21 = vunpack.i.l.bf16 %v6121_v39  ;;  %v6136_v40 = vpop.permute.xlu1 %6135 }
 0x2bc   : > { %v6138_v39 = vunpack.i.h.bf16 %v6136_v40  ;;  %v6137_v22 = vunpack.i.l.bf16 %v6136_v40 }
 0x2bd   : > { %v3739_v36 = vsel %vm3623_vm14, %v3707_v30, %v6122_v21  ;;  %v3740_v19 = vsel %vm3623_vm14, %v3708_v38, %v6123_v33 }
 0x2be   : > { %v6126_v4 = vpop.permute.xlu0 %6125  ;;  %v3678_v46 = vsel %vm3656_vm15, %v3645_v52, %v6138_v39  ;;  %v6117_v52 = vunpack.i.l.bf16 %v8074_v60 }
 0x2bf   : > { %v6128_v42 = vunpack.i.h.bf16 %v6126_v4  ;;  %v6127_v34 = vunpack.i.l.bf16 %v6126_v4  ;;  %v6141_v9 = vpop.permute.xlu1 %6140 }
 0x2c1   : > { %v3771_v31 = vsel %vm3656_vm15, %v3739_v36, %v6127_v34  ;;  %v3772_v37 = vsel %vm3656_vm15, %v3740_v19, %v6128_v42  ;;  %v6143_v36 = vunpack.i.h.bf16 %v6141_v9  ;;  %v6142_v19 = vunpack.i.l.bf16 %v6141_v9 }
 0x2c2   : > { %v6131_v55 = vpop.permute.xlu0 %6130  ;;  %v3813_v7 = vpack.c.bf16 %v3772_v37, %v3771_v31  ;;  %v6103_v37 = vunpack.i.h.bf16 %v8070_v15  ;;  %v6301_v15 = vld [vmem:[#allocation3 + $0x190] sm:$0xff] }
 0x2c3   : > { %v6133_v61 = vunpack.i.h.bf16 %v6131_v55  ;;  %v6132_v53 = vunpack.i.l.bf16 %v6131_v55  ;;  %v6146_v4 = vpop.permute.xlu1 %6145  ;;  %v3614_v1 = vsel %vm448_vm12, %v7740_v23, %v6143_v36  ;;  %v3613_v25 = vsel %vm448_vm12, %v7758_v57, %v6142_v19  ;;  %v6302_v23 = vld [vmem:[#allocation3 + $0x188] sm:$0xff] }
 0x2c4   : > { %4136 = vmatprep.mubr.bf16.mxu1 %v3813_v7  ;;  %v6148_v12 = vunpack.i.h.bf16 %v6146_v4  ;;  %v6147_v40 = vunpack.i.l.bf16 %v6146_v4  ;;  %v3712_v39 = vsel %vm448_vm12, %v6301_v15, %v6103_v37 }
 0x2c5   : > { %v3710_v48 = vsel %vm448_vm12, %v7770_v8, %v6133_v61  ;;  %v3709_v14 = vsel %vm448_vm12, %v7778_v44, %v6132_v53  ;;  %4137 = vmatmul.mubr.bf16.gmra.mrb[32].mxu1 %v3812_v0  ;;  %v3677_v44 = vsel %vm3656_vm15, %v3644_v29, %v6137_v22  ;;  %v6108_v53 = vunpack.i.h.bf16 %v8064_v50 }
 0x2c6   : > { %v3741_v33 = vsel %vm3623_vm14, %v3709_v14, %v6092_v24  ;;  %v3742_v21 = vsel %vm3623_vm14, %v3710_v48, %v6093_v6  ;;  %v3815_v56 = vpack.c.bf16 %v3678_v46, %v3677_v44  ;;  %v3646_v51 = vsel %vm3623_vm14, %v3613_v25, %v6147_v40  ;;  %v6304_v40 = vld [vmem:[#allocation3 + $0x187] sm:$0xff] }
 0x2c7   : > { %v3773_v10 = vsel %vm3656_vm15, %v3741_v33, %v6097_v47  ;;  %v3774_v8 = vsel %vm3656_vm15, %v3742_v21, %v6098_v43  ;;  %v3647_v61 = vsel %vm3623_vm14, %v3614_v1, %v6148_v12  ;;  %v6107_v0 = vunpack.i.l.bf16 %v8064_v50  ;;  %v6303_v12 = vld [vmem:[#allocation3 + $0x18f] sm:$0xff] }
 0x2c8   : > { %v3816_v63 = vpack.c.bf16 %v3774_v8, %v3773_v10  ;;  %v3711_v22 = vsel %vm448_vm12, %v6302_v23, %v6102_v49  ;;  %v3680_v48 = vsel %vm3656_vm15, %v3647_v61, %v6108_v53  ;;  %v6118_v33 = vunpack.i.h.bf16 %v8074_v60 }
 0x2c9   : > { %v3679_v47 = vsel %vm3656_vm15, %v3646_v51, %v6107_v0 }
 0x2ca   : > { %4144 = vmatprep.mubr.bf16.mxu1 %v3816_v63  ;;  %v3818_v9 = vpack.c.bf16 %v3680_v48, %v3679_v47 }
 0x2cd   : > { %4145 = vmatmul.mubr.bf16.gmra.mrb[36].mxu1 %v3815_v56 }
 0x2ce   : > { %v6151_v38 = vpop.permute.xlu0 %6150 }
 0x2cf   : > { %v6153_v63 = vunpack.i.h.bf16 %v6151_v38  ;;  %v6152_v44 = vunpack.i.l.bf16 %v6151_v38  ;;  %v3616_v38 = vsel %vm448_vm12, %v6303_v12, %v6113_v41 }
 0x2d0   : > { %v8112_v30 = vpop.permute.xlu1 %6180 }
 0x2d1   : > { %v6183_v46 = vunpack.i.h.bf16 %v8112_v30  ;;  %v6182_v56 = vunpack.i.l.bf16 %v8112_v30 }
 0x2d2   : > { %v8114_v42 = vpop.permute.xlu0 %6155 }
 0x2d3   : > { %v6158_v36 = vunpack.i.h.bf16 %v8114_v42  ;;  %v6157_v16 = vunpack.i.l.bf16 %v8114_v42  ;;  %v3649_v42 = vsel %vm3623_vm14, %v3616_v38, %v6118_v33 }
 0x2d4   : > { %v8118_v20 = vpop.permute.xlu1 %6185 }
 0x2d5   : > { %v6188_v61 = vunpack.i.h.bf16 %v8118_v20  ;;  %v6187_v53 = vunpack.i.l.bf16 %v8118_v20 }
 0x2d6   : > { %v8116_v34 = vpop.permute.xlu0 %6160 }
 0x2d7   : > { %v6163_v0 = vunpack.i.h.bf16 %v8116_v34  ;;  %v3618_v47 = vsel %vm448_vm12, %v7833_v11, %v6188_v61  ;;  %v3617_v20 = vsel %vm448_vm12, %v7820_v62, %v6187_v53 }
 0x2d8   : > { %v8130_v6 = vpop.permute.xlu1 %6190 }
 0x2d9   : > { %v6192_v23 = vunpack.i.l.bf16 %v8130_v6  ;;  %v3716_v48 = vsel %vm448_vm12, %v7842_v17, %v6163_v0 }
 0x2da   : > { %v6166_v31 = vpop.permute.xlu0 %6165 }
 0x2db   : > { %v6168_v55 = vunpack.i.h.bf16 %v6166_v31  ;;  %v6167_v7 = vunpack.i.l.bf16 %v6166_v31  ;;  %v3615_v31 = vsel %vm448_vm12, %v6304_v40, %v6112_v27 }
 0x2dc   : > { %v6196_v4 = vpop.permute.xlu1 %6195  ;;  %v3648_v49 = vsel %vm3623_vm14, %v3615_v31, %v6117_v52 }
 0x2dd   : > { %v3743_v32 = vsel %vm3623_vm14, %v3711_v22, %v6167_v7  ;;  %v3744_v43 = vsel %vm3623_vm14, %v3712_v39, %v6168_v55  ;;  %v3681_v25 = vsel %vm3656_vm15, %v3648_v49, %v6182_v56  ;;  %v3682_v55 = vsel %vm3656_vm15, %v3649_v42, %v6183_v46 }
 0x2de   : > { %v6171_v24 = vpop.permute.xlu0 %6170  ;;  %v3821_v51 = vpack.c.bf16 %v3682_v55, %v3681_v25  ;;  %v6193_v39 = vunpack.i.h.bf16 %v8130_v6  ;;  %v3650_v6 = vsel %vm3623_vm14, %v3617_v20, %v6192_v23 }
 0x2df   : > { %v6173_v57 = vunpack.i.h.bf16 %v6171_v24  ;;  %v6172_v58 = vunpack.i.l.bf16 %v6171_v24  ;;  %v6162_v24 = vunpack.i.l.bf16 %v8116_v34 }
 0x2e0   : > { %v6201_v7 = vpop.permute.xlu1 %6200 }
 0x2e1   : > { %v3775_v50 = vsel %vm3656_vm15, %v3743_v32, %v6172_v58  ;;  %v3776_v14 = vsel %vm3656_vm15, %v3744_v43, %v6173_v57  ;;  %v6198_v57 = vunpack.i.h.bf16 %v6196_v4  ;;  %v6197_v58 = vunpack.i.l.bf16 %v6196_v4 }
 0x2e2   : > { %v6176_v21 = vpop.permute.xlu0 %6175  ;;  %v3819_v29 = vpack.c.bf16 %v3776_v14, %v3775_v50  ;;  %v3715_v34 = vsel %vm448_vm12, %v7855_v28, %v6162_v24  ;;  %v3651_v14 = vsel %vm3623_vm14, %v3618_v47, %v6193_v39 }
 0x2e3   : > { %v6178_v10 = vunpack.i.h.bf16 %v6176_v21  ;;  %v6177_v8 = vunpack.i.l.bf16 %v6176_v21  ;;  %v3683_v62 = vsel %vm3656_vm15, %v3650_v6, %v6197_v58 }
 0x2e4   : > { %4152 = vmatprep.mubr.bf16.mxu1 %v3819_v29  ;;  %v6226_v22 = vpop.permute.xlu1 %6225  ;;  %v3684_v29 = vsel %vm3656_vm15, %v3651_v14, %v6198_v57 }
 0x2e5   : > { %v3714_v19 = vsel %vm448_vm12, %v7848_v59, %v6178_v10  ;;  %v3713_v60 = vsel %vm448_vm12, %v7866_v13, %v6177_v8  ;;  %4153 = vmatmul.mubr.bf16.gmra.mrb[40].mxu1 %v3818_v9  ;;  %v3824_v8 = vpack.c.bf16 %v3684_v29, %v3683_v62  ;;  %v6203_v9 = vunpack.i.h.bf16 %v6201_v7 }
 0x2e6   : > { %v3745_v30 = vsel %vm3623_vm14, %v3713_v60, %v6152_v44  ;;  %v3746_v37 = vsel %vm3623_vm14, %v3714_v19, %v6153_v63  ;;  %v6202_v63 = vunpack.i.l.bf16 %v6201_v7  ;;  %v6228_v46 = vunpack.i.h.bf16 %v6226_v22 }
 0x2e7   : > { %v3777_v59 = vsel %vm3656_vm15, %v3745_v30, %v6157_v16  ;;  %v3778_v1 = vsel %vm3656_vm15, %v3746_v37, %v6158_v36  ;;  %v6227_v56 = vunpack.i.l.bf16 %v6226_v22  ;;  %v3620_v40 = vsel %vm448_vm12, %v7826_v5, %v6203_v9  ;;  %v8203_v22 = vld [vmem:[%s8439_s6] ss:$0 sm:$0xff] }
 0x2e8   : > { %v3822_v13 = vpack.c.bf16 %v3778_v1, %v3777_v59  ;;  %v3619_v31 = vsel %vm448_vm12, %v7818_v26, %v6202_v63  ;;  %v3653_v49 = vsel %vm3623_vm14, %v3620_v40, %v6228_v46 }
 0x2e9   : > { %v3652_v37 = vsel %vm3623_vm14, %v3619_v31, %v6227_v56 }
 0x2ea   : > { %4160 = vmatprep.mubr.bf16.mxu1 %v3822_v13 }
 0x2ed   : > { %4161 = vmatmul.mubr.bf16.gmra.mrb[44].mxu1 %v3821_v51 }
 0x2ef   : > { %v6206_v15 = vpop.permute.xlu0 %6205  ;;  %v6236_v41 = vpop.permute.xlu1 %6235 }
 0x2f0   : > { %v6208_v32 = vunpack.i.h.bf16 %v6206_v15  ;;  %v6207_v43 = vunpack.i.l.bf16 %v6206_v15  ;;  %v6238_v19 = vunpack.i.h.bf16 %v6236_v41  ;;  %v6237_v60 = vunpack.i.l.bf16 %v6236_v41 }
 0x2f2   : > { %v3747_v21 = vsel %vm3623_vm14, %v3715_v34, %v6207_v43  ;;  %v3748_v11 = vsel %vm3623_vm14, %v3716_v48, %v6208_v32  ;;  %v3685_v0 = vsel %vm3656_vm15, %v3652_v37, %v6237_v60  ;;  %v3686_v24 = vsel %vm3656_vm15, %v3653_v49, %v6238_v19 }
 0x2f3   : > { %v6211_v50 = vpop.permute.xlu0 %6210  ;;  %v6246_v44 = vpop.permute.xlu1 %6245  ;;  %v3827_v57 = vpack.c.bf16 %v3686_v24, %v3685_v0 }
 0x2f4   : > { %v6213_v27 = vunpack.i.h.bf16 %v6211_v50  ;;  %v6212_v33 = vunpack.i.l.bf16 %v6211_v50  ;;  %v6248_v58 = vunpack.i.h.bf16 %v6246_v44  ;;  %v6247_v32 = vunpack.i.l.bf16 %v6246_v44 }
 0x2f6   : > { %v3779_v17 = vsel %vm3656_vm15, %v3747_v21, %v6212_v33  ;;  %v3780_v28 = vsel %vm3656_vm15, %v3748_v11, %v6213_v27 }
 0x2f7   : > { %v6216_v52 = vpop.permute.xlu0 %6215  ;;  %v3825_v10 = vpack.c.bf16 %v3780_v28, %v3779_v17  ;;  %v6256_v25 = vpop.permute.xlu1 %6255 }
 0x2f8   : > { %v6218_v4 = vunpack.i.h.bf16 %v6216_v52  ;;  %v6217_v16 = vunpack.i.l.bf16 %v6216_v52  ;;  %v6258_v48 = vunpack.i.h.bf16 %v6256_v25  ;;  %v6257_v34 = vunpack.i.l.bf16 %v6256_v25 }
 0x2f9   : > { %4168 = vmatprep.mubr.bf16.mxu1 %v3825_v10  ;;  %v3622_v52 = vsel %vm448_vm12, %v7944_v3, %v6248_v58  ;;  %v3621_v10 = vsel %vm448_vm12, %v7937_v18, %v6247_v32 }
 0x2fa   : > { %4169 = vmatmul.mubr.bf16.gmra.mrb[48].mxu1 %v3824_v8  ;;  %v3718_v42 = vsel %vm448_vm12, %v7951_v35, %v6218_v4  ;;  %v3717_v13 = vsel %vm448_vm12, %v7963_v54, %v6217_v16  ;;  %v3654_v9 = vsel %vm3623_vm14, %v3621_v10, %v6257_v34  ;;  %v3655_v63 = vsel %vm3623_vm14, %v3622_v52, %v6258_v48 }
 0x2fb   : > { %v6221_v36 = vpop.permute.xlu0 %6220  ;;  %v6266_v43 = vpop.permute.xlu1 %6265 }
 0x2fc   : > { %v6223_v12 = vunpack.i.h.bf16 %v6221_v36  ;;  %v6222_v38 = vunpack.i.l.bf16 %v6221_v36  ;;  %v6268_v11 = vunpack.i.h.bf16 %v6266_v43  ;;  %v6267_v62 = vunpack.i.l.bf16 %v6266_v43 }
 0x2fe   : > { %v3749_v26 = vsel %vm3623_vm14, %v3717_v13, %v6222_v38  ;;  %v3750_v61 = vsel %vm3623_vm14, %v3718_v42, %v6223_v12  ;;  %v3687_v60 = vsel %vm3656_vm15, %v3654_v9, %v6267_v62  ;;  %v3688_v12 = vsel %vm3656_vm15, %v3655_v63, %v6268_v11 }
 0x2ff   : > { %v4899_v30 = vpop.f32.mrb[32].mxu0  ;;  %v6231_v59 = vpop.permute.xlu0 %6230  ;;  %v3830_v49 = vpack.c.bf16 %v3688_v12, %v3687_v60 }
 0x300   : > { %v4900_v1 = vpop.f32.mrb[33].mxu0  ;;  %v6233_v55 = vunpack.i.h.bf16 %v6231_v59  ;;  %v6232_v7 = vunpack.i.l.bf16 %v6231_v59 }
 0x301   : > { %v4901_v5 = vadd.f32 %v4900_v1, %v4899_v30  ;;  %v4902_v51 = vpop.f32.mrb[34].mxu0 }
 0x302   : > { %v4903_v53 = vpop.f32.mrb[35].mxu0  ;;  %v3781_v15 = vsel %vm3656_vm15, %v3749_v26, %v6232_v7  ;;  %v3782_v39 = vsel %vm3656_vm15, %v3750_v61, %v6233_v55 }
 0x303   : > { %v4904_v35 = vadd.f32 %v4903_v53, %v4902_v51  ;;  %v6241_v54 = vpop.permute.xlu0 %6240  ;;  %v3828_v23 = vpack.c.bf16 %v3782_v39, %v3781_v15  ;;  %v4067_v20 = vadd.f32 %v4901_v5, %v8203_v22 }
 0x304   : > { %v6243_v50 = vunpack.i.h.bf16 %v6241_v54  ;;  %v6242_v6 = vunpack.i.l.bf16 %v6241_v54 }
 0x305   : > { %4176 = vmatprep.mubr.bf16.mxu1 %v3828_v23  ;;  %v4070_v21 = vadd.f32 %v4904_v35, %v8203_v22 }
 0x306   : > { %4177 = vmatmul.mubr.bf16.gmra.mrb[52].mxu1 %v3827_v57  ;;  %v3720_v44 = vsel %vm448_vm12, %v7997_v45, %v6243_v50  ;;  %v3719_v46 = vsel %vm448_vm12, %v8003_v2, %v6242_v6 }
 0x307   : > { %v5073_v47 = vpop.f32.mrb[36].mxu0  ;;  %v6251_v14 = vpop.permute.xlu0 %6250 }
 0x308   : > { %v4227_v41 = vpop.f32.mrb[37].mxu0  ;;  %v6253_v29 = vunpack.i.h.bf16 %v6251_v14  ;;  %v6252_v17 = vunpack.i.l.bf16 %v6251_v14 }
 0x309   : > { %v4228_v27 = vadd.f32 %v4227_v41, %v4067_v20  ;;  %v5074_v33 = vpop.f32.mrb[38].mxu0 }
 0x30a   : > { %v4230_v28 = vpop.f32.mrb[39].mxu0  ;;  %v3751_v3 = vsel %vm3623_vm14, %v3719_v46, %v6252_v17  ;;  %v3752_v18 = vsel %vm3623_vm14, %v3720_v44, %v6253_v29 }
 0x30b   : > { %v4231_v8 = vadd.f32 %v4230_v28, %v4070_v21  ;;  %v6261_v56 = vpop.permute.xlu0 %6260  ;;  %v4354_v4 = vmax.f32 %v4228_v27, 0.0 }
 0x30c   : > { %v6263_v16 = vunpack.i.h.bf16 %v6261_v56  ;;  %v6262_v19 = vunpack.i.l.bf16 %v6261_v56 }
 0x30d   : > { %v4355_v36 = vmax.f32 %v4231_v8, 0.0 }
 0x30e   : > { %v3783_v45 = vsel %vm3656_vm15, %v3751_v3, %v6262_v19  ;;  %v3784_v2 = vsel %vm3656_vm15, %v3752_v18, %v6263_v16 }
 0x30f   : > { %v8221_v38 = vpack.c.bf16 %v4355_v36, %v4354_v4  ;;  %v5077_v40 = vpop.f32.mrb[40].mxu0  ;;  %v3831_v30 = vpack.c.bf16 %v3784_v2, %v3783_v45 }
 0x310   : > { %v4243_v31 = vpop.f32.mrb[41].mxu0 }
 0x311   : > { %v5078_v37 = vpop.f32.mrb[42].mxu0  ;;  %4184 = vmatprep.mubr.bf16.mxu1 %v3831_v30 }
 0x312   : > { %v4246_v42 = vpop.f32.mrb[43].mxu0  ;;  %4185 = vmatmul.mubr.bf16.gmra.mrb[56].mxu1 %v3830_v49 }
 0x317   : > { %v8225_v59 = vpop.f32.mrb[44].mxu0 }
 0x318   : > { %v4259_v1 = vpop.f32.mrb[45].mxu0 }
 0x319   : > { %v8227_v13 = vpop.f32.mrb[46].mxu0  ;;  %v4905_v25 = vpop.f32.mrb[0].mxu1 }
 0x31a   : > { %v4262_v55 = vpop.f32.mrb[47].mxu0  ;;  %v4906_v7 = vpop.f32.mrb[1].mxu1 }
 0x31b   : > { %v4907_v5 = vadd.f32 %v4906_v7, %v4905_v25  ;;  %v4908_v51 = vpop.f32.mrb[2].mxu1 }
 0x31c   : > { %v4909_v26 = vpop.f32.mrb[3].mxu1 }
 0x31d   : > { %v4075_v61 = vadd.f32 %v4907_v5, %v8203_v22  ;;  %v4910_v53 = vadd.f32 %v4909_v26, %v4908_v51 }
 0x31f   : > { %v8230_v0 = vpop.f32.mrb[48].mxu0  ;;  %v4236_v24 = vadd.f32 %v5073_v47, %v4075_v61  ;;  %v4078_v35 = vadd.f32 %v4910_v53, %v8203_v22 }
 0x320   : > { %v8233_v15 = vpop.f32.mrb[49].mxu0 }
 0x321   : > { %v8235_v39 = vpop.f32.mrb[50].mxu0  ;;  %v4239_v54 = vadd.f32 %v5074_v33, %v4078_v35  ;;  %v4911_v23 = vpop.f32.mrb[4].mxu1  ;;  %v4356_v32 = vmax.f32 %v4236_v24, 0.0 }
 0x322   : > { %v8237_v57 = vpop.f32.mrb[51].mxu0  ;;  %v4912_v58 = vpop.f32.mrb[5].mxu1 }
 0x323   : > { %v4357_v43 = vmax.f32 %v4239_v54, 0.0  ;;  %v4913_v20 = vadd.f32 %v4912_v58, %v4911_v23  ;;  %v4914_v48 = vpop.f32.mrb[6].mxu1 }
 0x324   : > { %v4915_v34 = vpop.f32.mrb[7].mxu1 }
 0x325   : > { %v4083_v50 = vadd.f32 %v4913_v20, %v8203_v22  ;;  %v4916_v6 = vadd.f32 %v4915_v34, %v4914_v48  ;;  %v8240_v47 = vpack.c.bf16 %v4357_v43, %v4356_v32 }
 0x327   : > { %v8242_v14 = vpop.f32.mrb[52].mxu0  ;;  %v4244_v41 = vadd.f32 %v4243_v31, %v4083_v50  ;;  %v4086_v27 = vadd.f32 %v4916_v6, %v8203_v22 }
 0x328   : > { %v8245_v33 = vpop.f32.mrb[53].mxu0 }
 0x329   : > { %v8247_v21 = vpop.f32.mrb[54].mxu0  ;;  %v4247_v11 = vadd.f32 %v4246_v42, %v4086_v27  ;;  %v4358_v29 = vmax.f32 %v4244_v41, 0.0 }
 0x32a   : > { %v8249_v62 = vpop.f32.mrb[55].mxu0 }
 0x32b   : > { %v4359_v17 = vmax.f32 %v4247_v11, 0.0 }
 0x32d   : > { %v8251_v28 = vpack.c.bf16 %v4359_v17, %v4358_v29 }
 0x332   : > { %v8253_v52 = vpop.f32.mrb[56].mxu0 }
 0x333   : > { %v8255_v10 = vpop.f32.mrb[57].mxu0 }
 0x334   : > { %v8257_v8 = vpop.f32.mrb[58].mxu0 }
 0x335   : > { %v8259_v9 = vpop.f32.mrb[59].mxu0 }
 0x338   : > { %v4917_v63 = vpop.f32.mrb[8].mxu1 }
 0x339   : > { %v4918_v44 = vpop.f32.mrb[9].mxu1 }
 0x33a   : > { %v4919_v46 = vadd.f32 %v4918_v44, %v4917_v63  ;;  %v4920_v56 = vpop.f32.mrb[10].mxu1 }
 0x33b   : > { %v4921_v4 = vpop.f32.mrb[11].mxu1 }
 0x33c   : > { %v4091_v36 = vadd.f32 %v4919_v46, %v8203_v22  ;;  %v4922_v16 = vadd.f32 %v4921_v4, %v4920_v56 }
 0x33e   : > { %v4252_v19 = vadd.f32 %v5077_v40, %v4091_v36  ;;  %v4094_v3 = vadd.f32 %v4922_v16, %v8203_v22 }
 0x340   : > { %v4255_v18 = vadd.f32 %v5078_v37, %v4094_v3  ;;  %v4923_v60 = vpop.f32.mrb[12].mxu1  ;;  %v4360_v45 = vmax.f32 %v4252_v19, 0.0 }
 0x341   : > { %v4924_v12 = vpop.f32.mrb[13].mxu1 }
 0x342   : > { %v4361_v2 = vmax.f32 %v4255_v18, 0.0  ;;  %v4925_v31 = vadd.f32 %v4924_v12, %v4923_v60  ;;  %v4926_v30 = vpop.f32.mrb[14].mxu1 }
 0x343   : > { %v4927_v49 = vpop.f32.mrb[15].mxu1 }
 0x344   : > { %v4099_v42 = vadd.f32 %v4925_v31, %v8203_v22  ;;  %v4928_v25 = vadd.f32 %v4927_v49, %v4926_v30  ;;  %v8264_v7 = vpack.c.bf16 %v4361_v2, %v4360_v45  ;;  %v8300_v45 = vld [vmem:[%s8440_s7] sm:$0xff]   ;;  %v4405_v49 = vld [vmem:[%s8441_s8 + $0x8] sm:$0x7f] }
 0x345   : > { %5029 = vmatprep.mubr.msk.bf16.mxu0 %vm448_vm12, %v8300_v45 }
 0x346   : > { %v4260_v5 = vadd.f32 %v4259_v1, %v4099_v42  ;;  %v4102_v51 = vadd.f32 %v4928_v25, %v8203_v22  ;;  %v6326_v25 = vmov 0  }
 0x347   : > { %6270 = vset.pattern.permute.xlu1 %v6326_v25  ;;  %6269 = vset.pattern.permute.xlu0 %v6326_v25 }
 0x348   : > { %v4263_v26 = vadd.f32 %v4262_v55, %v4102_v51  ;;  %v4362_v40 = vmax.f32 %v4260_v5, 0.0  ;;  %4413 = vperm.xlu0 %6269, %v4405_v49  }
 0x34a   : > { %v4363_v61 = vmax.f32 %v4263_v26, 0.0 }
 0x34c   : > { %v8267_v53 = vpack.c.bf16 %v4363_v61, %v4362_v40 }
 0x351   : > { %v8269_v37 = vpop.f32.mrb[60].mxu0 }
 0x352   : > { %v8271_v24 = vpop.f32.mrb[61].mxu0 }
 0x353   : > { %v8273_v35 = vpop.f32.mrb[62].mxu0 }
 0x354   : > { %v8275_v54 = vpop.f32.mrb[63].mxu0 }
 0x359   : > { %v4929_v23 = vpop.f32.mrb[16].mxu1  ;;  %v8281_v27 = vpop.f32.mrb[64].mxu0 }
 0x35a   : > { %v4930_v58 = vpop.f32.mrb[17].mxu1  ;;  %v8283_v44 = vpop.f32.mrb[65].mxu0 }
 0x35b   : > { %v4931_v32 = vadd.f32 %v4930_v58, %v4929_v23  ;;  %v4932_v43 = vpop.f32.mrb[18].mxu1  ;;  %v8285_v56 = vpop.f32.mrb[66].mxu0 }
 0x35c   : > { %v4933_v1 = vpop.f32.mrb[19].mxu1  ;;  %v8290_v16 = vpop.f32.mrb[67].mxu0 }
 0x35d   : > { %v4107_v20 = vadd.f32 %v4931_v32, %v8203_v22  ;;  %v4934_v55 = vadd.f32 %v4933_v1, %v4932_v43 }
 0x35f   : > { %v4268_v48 = vadd.f32 %v8225_v59, %v4107_v20  ;;  %v4110_v34 = vadd.f32 %v4934_v55, %v8203_v22 }
 0x361   : > { %v4271_v50 = vadd.f32 %v8227_v13, %v4110_v34  ;;  %v4935_v6 = vpop.f32.mrb[20].mxu1  ;;  %v4364_v11 = vmax.f32 %v4268_v48, 0.0 }
 0x362   : > { %v4936_v41 = vpop.f32.mrb[21].mxu1 }
 0x363   : > { %v4365_v29 = vmax.f32 %v4271_v50, 0.0  ;;  %v4937_v17 = vadd.f32 %v4936_v41, %v4935_v6  ;;  %v4938_v63 = vpop.f32.mrb[22].mxu1 }
 0x364   : > { %v4939_v46 = vpop.f32.mrb[23].mxu1 }
 0x365   : > { %v4115_v4 = vadd.f32 %v4937_v17, %v8203_v22  ;;  %v4940_v59 = vadd.f32 %v4939_v46, %v4938_v63  ;;  %v8288_v36 = vpack.c.bf16 %v4365_v29, %v4364_v11  ;;  %v4425_v17 = vsel %vm448_vm12, %v8221_v38, 0 }
 0x367   : > { %v4276_v13 = vadd.f32 %v8233_v15, %v4115_v4  ;;  %v4118_v19 = vadd.f32 %v4940_v59, %v8203_v22 }
 0x369   : > { %v4279_v3 = vadd.f32 %v8237_v57, %v4118_v19  ;;  %v4366_v18 = vmax.f32 %v4276_v13, 0.0  ;;  %v4404_v57 = vld [vmem:[%s8441_s8] sm:$0xff] }
 0x36a   : > { %4408 = vperm.xlu1 %6270, %v4404_v57  }
 0x36b   : > { %v4367_v60 = vmax.f32 %v4279_v3, 0.0 }
 0x36d   : > { %v8295_v12 = vpack.c.bf16 %v4367_v60, %v4366_v18 }
 0x378   : > { %v4941_v2 = vpop.f32.mrb[24].mxu1 }
 0x379   : > { %v4942_v31 = vpop.f32.mrb[25].mxu1 }
 0x37a   : > { %v4943_v30 = vadd.f32 %v4942_v31, %v4941_v2  ;;  %v4944_v15 = vpop.f32.mrb[26].mxu1 }
 0x37b   : > { %v4945_v42 = vpop.f32.mrb[27].mxu1 }
 0x37c   : > { %v4123_v5 = vadd.f32 %v4943_v30, %v8203_v22  ;;  %v4946_v51 = vadd.f32 %v4945_v42, %v4944_v15 }
 0x37e   : > { %v4284_v26 = vadd.f32 %v8230_v0, %v4123_v5  ;;  %v4126_v40 = vadd.f32 %v4946_v51, %v8203_v22 }
 0x380   : > { %v4287_v61 = vadd.f32 %v8235_v39, %v4126_v40  ;;  %v4947_v23 = vpop.f32.mrb[28].mxu1  ;;  %v4368_v32 = vmax.f32 %v4284_v26, 0.0 }
 0x381   : > { %v4948_v58 = vpop.f32.mrb[29].mxu1 }
 0x382   : > { %v4369_v43 = vmax.f32 %v4287_v61, 0.0  ;;  %v4949_v1 = vadd.f32 %v4948_v58, %v4947_v23  ;;  %v4950_v20 = vpop.f32.mrb[30].mxu1  ;;  %v4431_v23 = vsel %vm448_vm12, %v8251_v28, 0 }
 0x383   : > { %v4951_v55 = vpop.f32.mrb[31].mxu1 }
 0x384   : > { %v4131_v48 = vadd.f32 %v4949_v1, %v8203_v22  ;;  %v4952_v34 = vadd.f32 %v4951_v55, %v4950_v20  ;;  %v8315_v50 = vpack.c.bf16 %v4369_v43, %v4368_v32 }
 0x386   : > { %v4292_v6 = vadd.f32 %v8245_v33, %v4131_v48  ;;  %v4134_v0 = vadd.f32 %v4952_v34, %v8203_v22 }
 0x388   : > { %v4295_v41 = vadd.f32 %v8249_v62, %v4134_v0  ;;  %v4370_v11 = vmax.f32 %v4292_v6, 0.0 }
 0x38a   : > { %v4371_v39 = vmax.f32 %v4295_v41, 0.0 }
 0x38c   : > { %v4396_v29 = vpack.c.bf16 %v4371_v39, %v4370_v11 }
 0x38e   : > { %5119 = vmatprep.subr.msk.bf16.mxu0 %vm448_vm12, %v4396_v29 }
 0x38f   : > { %5014 = vmatpush3.bf16.xpose.msra.mxu0 %v4425_v17 }
 0x398   : > { %v4953_v63 = vpop.f32.mrb[32].mxu1 }
 0x399   : > { %v4954_v46 = vpop.f32.mrb[33].mxu1 }
 0x39a   : > { %v4955_v4 = vadd.f32 %v4954_v46, %v4953_v63  ;;  %v4956_v59 = vpop.f32.mrb[34].mxu1 }
 0x39b   : > { %v4957_v13 = vpop.f32.mrb[35].mxu1 }
 0x39c   : > { %v4139_v33 = vadd.f32 %v4955_v4, %v8203_v22  ;;  %v4958_v19 = vadd.f32 %v4957_v13, %v4956_v59 }
 0x39e   : > { %v4300_v3 = vadd.f32 %v8242_v14, %v4139_v33  ;;  %v4142_v62 = vadd.f32 %v4958_v19, %v8203_v22  ;;  %v4428_v14 = vsel %vm448_vm12, %v8240_v47, 0 }
 0x3a0   : > { %v4303_v18 = vadd.f32 %v8247_v21, %v4142_v62  ;;  %v4959_v60 = vpop.f32.mrb[36].mxu1  ;;  %v4372_v31 = vmax.f32 %v4300_v3, 0.0 }
 0x3a1   : > { %v4960_v2 = vpop.f32.mrb[37].mxu1 }
 0x3a2   : > { %v4373_v30 = vmax.f32 %v4303_v18, 0.0  ;;  %v4961_v38 = vadd.f32 %v4960_v2, %v4959_v60  ;;  %v4962_v15 = vpop.f32.mrb[38].mxu1 }
 0x3a3   : > { %v4963_v57 = vpop.f32.mrb[39].mxu1 }
 0x3a4   : > { %v4397_v49 = vpack.c.bf16 %v4373_v30, %v4372_v31  ;;  %v4147_v42 = vadd.f32 %v4961_v38, %v8203_v22  ;;  %v4964_v25 = vadd.f32 %v4963_v57, %v4962_v15 }
 0x3a6   : > { %v4308_v5 = vadd.f32 %v8255_v10, %v4147_v42  ;;  %v4150_v51 = vadd.f32 %v4964_v25, %v8203_v22  ;;  %5120 = vmatprep.subr.msk.bf16.mxu0 %vm448_vm12, %v4397_v49 }
 0x3a7   : > { %5016 = vmatpush3.bf16.xpose.msra.mxu0 %v4428_v14 }
 0x3a8   : > { %v4311_v21 = vadd.f32 %v8259_v9, %v4150_v51  ;;  %v4374_v26 = vmax.f32 %v4308_v5, 0.0  ;;  %v4440_v5 = vsel %vm448_vm12, %v8288_v36, 0  ;;  %v4443_v36 = vsel %vm448_vm12, %v8295_v12, 0 }
 0x3a9   : > { %v4446_v12 = vsel %vm448_vm12, %v8315_v50, 0 }
 0x3aa   : > { %v4375_v40 = vmax.f32 %v4311_v21, 0.0 }
 0x3ac   : > { %v4398_v61 = vpack.c.bf16 %v4375_v40, %v4374_v26 }
 0x3ae   : > { %5121 = vmatprep.subr.msk.bf16.mxu0 %vm448_vm12, %v4398_v61 }
 0x3af   : > { %5018 = vmatpush3.bf16.xpose.msra.mxu0 %v4431_v23 }
 0x3b8   : > { %v4965_v10 = vpop.f32.mrb[40].mxu1 }
 0x3b9   : > { %v4966_v58 = vpop.f32.mrb[41].mxu1 }
 0x3ba   : > { %v4967_v32 = vadd.f32 %v4966_v58, %v4965_v10  ;;  %v4968_v43 = vpop.f32.mrb[42].mxu1 }
 0x3bb   : > { %v4969_v1 = vpop.f32.mrb[43].mxu1 }
 0x3bc   : > { %v4155_v20 = vadd.f32 %v4967_v32, %v8203_v22  ;;  %v4970_v47 = vadd.f32 %v4969_v1, %v4968_v43 }
 0x3be   : > { %v4316_v55 = vadd.f32 %v8253_v52, %v4155_v20  ;;  %v4158_v9 = vadd.f32 %v4970_v47, %v8203_v22  ;;  %v4434_v52 = vsel %vm448_vm12, %v8264_v7, 0 }
 0x3c0   : > { %v4319_v48 = vadd.f32 %v8257_v8, %v4158_v9  ;;  %v4971_v34 = vpop.f32.mrb[44].mxu1  ;;  %v4376_v0 = vmax.f32 %v4316_v55, 0.0 }
 0x3c1   : > { %v4972_v6 = vpop.f32.mrb[45].mxu1 }
 0x3c2   : > { %v4377_v41 = vmax.f32 %v4319_v48, 0.0  ;;  %v4973_v28 = vadd.f32 %v4972_v6, %v4971_v34  ;;  %v4974_v11 = vpop.f32.mrb[46].mxu1 }
 0x3c3   : > { %v4975_v39 = vpop.f32.mrb[47].mxu1 }
 0x3c4   : > { %v4399_v29 = vpack.c.bf16 %v4377_v41, %v4376_v0  ;;  %v4163_v17 = vadd.f32 %v4973_v28, %v8203_v22  ;;  %v4976_v63 = vadd.f32 %v4975_v39, %v4974_v11 }
 0x3c6   : > { %v4324_v46 = vadd.f32 %v8271_v24, %v4163_v17  ;;  %v4166_v4 = vadd.f32 %v4976_v63, %v8203_v22  ;;  %5122 = vmatprep.subr.msk.bf16.mxu0 %vm448_vm12, %v4399_v29  ;;  %v4437_v24 = vsel %vm448_vm12, %v8267_v53, 0 }
 0x3c7   : > { %5020 = vmatpush3.bf16.xpose.msra.mxu0 %v4434_v52  ;;  %v4521_v52 = vld [vmem:[%s8442_s9 + $0x10] sm:$0x1] }
 0x3c8   : > { %v4327_v8 = vadd.f32 %v8275_v54, %v4166_v4  ;;  %v4378_v59 = vmax.f32 %v4324_v46, 0.0  ;;  %v4519_v46 = vld [vmem:[%s8442_s9] sm:$0xc0] }
 0x3ca   : > { %v4379_v13 = vmax.f32 %v4327_v8, 0.0  ;;  %v4520_v8 = vld [vmem:[%s8442_s9 + $0x8] sm:$0xc0] }
 0x3cc   : > { %v4400_v33 = vpack.c.bf16 %v4379_v13, %v4378_v59  ;;  %v4522_v59 = vld [vmem:[%s8442_s9 + $0x18] sm:$0x1]  ;;  %v4527_v13 = vrot.slane %v4519_v46, 3 }
 0x3cd   : > { %v4977_v19 = vpop.f32.mrb[48].mxu1 }
 0x3ce   : > { %v4978_v3 = vpop.f32.mrb[49].mxu1  ;;  %5123 = vmatprep.subr.msk.bf16.mxu0 %vm448_vm12, %v4400_v33  ;;  %v4528_v33 = vrot.slane %v4521_v52, 3 }
 0x3cf   : > { %v4979_v62 = vadd.f32 %v4978_v3, %v4977_v19  ;;  %v4980_v18 = vpop.f32.mrb[50].mxu1  ;;  %5022 = vmatpush3.bf16.xpose.msra.mxu0 %v4437_v24  ;;  %v4566_v19 = vrot.slane %v4519_v46, 5  ;;  %v4567_v3 = vrot.slane %v4521_v52, 5  ;;  %v4576_v24 = vrot.slane %v4519_v46, 2 }
 0x3d0   : > { %v4981_v60 = vpop.f32.mrb[51].mxu1 }
 0x3d1   : > { %v4171_v2 = vadd.f32 %v4979_v62, %v8203_v22  ;;  %v4982_v7 = vadd.f32 %v4981_v60, %v4980_v18  ;;  %v4577_v62 = vrot.slane %v4521_v52, 2  ;;  %v4530_v18 = vrot.slane %v4520_v8, 3 }
 0x3d2   : > { %v4531_v60 = vrot.slane %v4522_v59, 3 }
 0x3d3   : > { %v4332_v31 = vadd.f32 %v8269_v37, %v4171_v2  ;;  %v4174_v54 = vadd.f32 %v4982_v7, %v8203_v22  ;;  %v4569_v2 = vrot.slane %v4520_v8, 5  ;;  %v4570_v7 = vrot.slane %v4522_v59, 5 }
 0x3d5   : > { %v4335_v30 = vadd.f32 %v8273_v35, %v4174_v54  ;;  %v4380_v38 = vmax.f32 %v4332_v31, 0.0  ;;  %v4579_v31 = vrot.slane %v4520_v8, 2  ;;  %v4580_v54 = vrot.slane %v4522_v59, 2 }
 0x3d7   : > { %v4381_v15 = vmax.f32 %v4335_v30, 0.0  ;;  %v4515_v30 = vld [vmem:[%s8442_s9] sm:$0x7] }
 0x3d9   : > { %v4401_v57 = vpack.c.bf16 %v4381_v15, %v4380_v38  ;;  %v4983_v49 = vpop.f32.mrb[52].mxu1  ;;  %v4516_v38 = vld [vmem:[%s8442_s9 + $0x8] sm:$0x7]  ;;  %v4529_v15 = vsel %vm2301_vm2, %v4527_v13, %v4528_v33 }
 0x3da   : > { %v4984_v42 = vpop.f32.mrb[53].mxu1 }
 0x3db   : > { %v4985_v25 = vadd.f32 %v4984_v42, %v4983_v49  ;;  %v4986_v53 = vpop.f32.mrb[54].mxu1  ;;  %5124 = vmatprep.subr.msk.bf16.mxu0 %vm448_vm12, %v4401_v57  ;;  %v4517_v57 = vld [vmem:[%s8442_s9] sm:$0x38]  ;;  %v4518_v49 = vld [vmem:[%s8442_s9 + $0x8] sm:$0x38]  ;;  %v4532_v42 = vsel %vm2301_vm2, %v4530_v18, %v4531_v60  ;;  %vm4648_vm2 = vcmask 1044484  }
 0x3dc   : > { %v4987_v51 = vpop.f32.mrb[55].mxu1  ;;  %5024 = vmatpush3.bf16.xpose.msra.mxu0 %v4440_v5  ;;  %v4539_v5 = vrot.slane %v4515_v30, 5  ;;  %vm8409_vm5 = vmor %vm4647_vm1, %vm4648_vm2 }
 0x3dd   : > { %v4988_v14 = vadd.f32 %v4987_v51, %v4986_v53  ;;  %v4179_v37 = vadd.f32 %v4985_v25, %v8203_v22  ;;  %v4568_v25 = vsel %vm4565_vm0, %v4566_v19, %v4567_v3  ;;  %v4578_v53 = vsel %vm2302_vm3, %v4576_v24, %v4577_v62 }
 0x3de   : > { %v4540_v51 = vrot.slane %v4516_v38, 5 }
 0x3df   : > { %v4340_v21 = vadd.f32 %v8283_v44, %v4179_v37  ;;  %v4182_v35 = vadd.f32 %v4988_v14, %v8203_v22  ;;  %v4571_v14 = vsel %vm4565_vm0, %v4569_v2, %v4570_v7  ;;  %v4581_v37 = vsel %vm2302_vm3, %v4579_v31, %v4580_v54 }
 0x3e0   : > { %vm4662_vm3 = vcmask 1041408  }
 0x3e1   : > { %v4343_v26 = vadd.f32 %v8290_v16, %v4182_v35  ;;  %v4382_v40 = vmax.f32 %v4340_v21, 0.0  ;;  %vm8420_vm6 = vmor %vm4662_vm3, %vm4663_vm4 }
 0x3e3   : > { %v4383_v61 = vmax.f32 %v4343_v26, 0.0 }
 0x3e5   : > { %v4402_v23 = vpack.c.bf16 %v4383_v61, %v4382_v40  ;;  %v4989_v10 = vpop.f32.mrb[56].mxu1  ;;  %v4551_v40 = vrot.slane %v4517_v57, 5  ;;  %v4552_v61 = vrot.slane %v4518_v49, 5 }
 0x3e6   : > { %v4990_v58 = vpop.f32.mrb[57].mxu1 }
 0x3e7   : > { %v4991_v32 = vadd.f32 %v4990_v58, %v4989_v10  ;;  %v4992_v43 = vpop.f32.mrb[58].mxu1  ;;  %5125 = vmatprep.subr.msk.bf16.mxu0 %vm448_vm12, %v4402_v23 }
 0x3e8   : > { %v4993_v1 = vpop.f32.mrb[59].mxu1  ;;  %5026 = vmatpush3.bf16.xpose.msra.mxu0 %v4443_v36 }
 0x3e9   : > { %v4187_v44 = vadd.f32 %v4991_v32, %v8203_v22  ;;  %v4994_v20 = vadd.f32 %v4993_v1, %v4992_v43  ;;  %v4409_v6 = vpop.permute.xlu1 %4408 }
 0x3eb   : > { %v4348_v16 = vadd.f32 %v8281_v27, %v4187_v44  ;;  %v4190_v47 = vadd.f32 %v4994_v20, %v8203_v22  ;;  %v4414_v27 = vpop.permute.xlu0 %4413 }
 0x3ed   : > { %v4351_v55 = vadd.f32 %v8285_v56, %v4190_v47  ;;  %v4384_v9 = vmax.f32 %v4348_v16, 0.0 }
 0x3ef   : > { %v4385_v48 = vmax.f32 %v4351_v55, 0.0 }
 0x3f1   : > { %v4403_v34 = vpack.c.bf16 %v4385_v48, %v4384_v9 }
 0x3f3   : > { %5126 = vmatprep.subr.msk.bf16.mxu0 %vm448_vm12, %v4403_v34 }
 0x3f4   : > { %5028 = vmatpush3.bf16.xpose.msra.mxu0 %v4446_v12 }
 0x3fb   : > { %5030 = vmatmul.mubr.msk.bf16.vlgmr.msra.gmra.mrb[68].mxu0 %vm448_vm12, %v8300_v45 }
 0x4ce   : > { %v4506_v0 = vpop.f32.mrb[68].mxu0 }
 0x4cf   : > { %v4507_v41 = vadd.f32 %v4506_v0, %v4409_v6  ;;  %v4508_v22 = vpop.f32.mrb[69].mxu0 }
 0x4d0   : > { %v4509_v28 = vadd.f32 %v4508_v22, %v4409_v6  ;;  %v4510_v56 = vpop.f32.mrb[70].mxu0 }
 0x4d1   : > { %v4511_v11 = vadd.f32 %v4510_v56, %v4414_v27  ;;  %v4512_v39 = vpop.f32.mrb[71].mxu0  ;;  %v4535_v35 = vmul.f32 %v4529_v15, %v4507_v41  ;;  %v4545_v26 = vmul.f32 %v4519_v46, %v4507_v41 }
 0x4d2   : > { %v4640_v29 = vcombine.low %v4507_v41, %v4509_v28  ;;  %v4513_v50 = vadd.f32 %v4512_v39, %v4414_v27  ;;  %v4536_v10 = vmul.f32 %v4532_v42, %v4509_v28  ;;  %v4546_v36 = vmul.f32 %v4520_v8, %v4509_v28 }
 0x4d3   : > { %v4559_v17 = vmin.f32 %v4511_v11, 4.1351666  ;;  %v4547_v58 = vmul.f32 %v4521_v52, %v4511_v11  ;;  %v4543_v55 = vadd.f32 %v4539_v5, %v4535_v35  ;;  %v4555_v9 = vadd.f32 %v4551_v40, %v4545_v26 }
 0x4d4   : > { %4642 = vst [vmem:[%s394_s29] sm:$0x77] %v4640_v29  ;;  %v4560_v63 = vmin.f32 %v4513_v50, 4.1351666  ;;  %v4548_v1 = vmul.f32 %v4522_v59, %v4513_v50  ;;  %v4544_v12 = vadd.f32 %v4540_v51, %v4536_v10  ;;  %v4556_v41 = vadd.f32 %v4552_v61, %v4546_v36  ;;  %s4864_s29 = sshll.u32 %s8451_s18, 5 }
 0x4d5   : > { %v4561_v45 = vmul.f32 1.442695, %v4559_v17  ;;  %v4557_v6 = vadd.f32 %v4551_v40, %v4547_v58  ;;  %s399_s12 = scalar_lea.vmem %s8444_s11, %s4864_s29 }
 0x4d6   : > { %v4563_v4 = vmul.f32 1.442695, %v4560_v63  ;;  %v4558_v22 = vadd.f32 %v4552_v61, %v4548_v1 }
 0x4d7   : > { %6292 = vpow2.f32 %v4561_v45 }
 0x4d8   : > { %6294 = vpow2.f32 %v4563_v4 }
 0x4e1   : > { %v6293_v21 = vpop.eup %6292 }
 0x4e2   : > { %v6295_v23 = vpop.eup %6294  ;;  %v4574_v32 = vmul.f32 %v6293_v21, %v4568_v25  ;;  %v4584_v43 = vmul.f32 %v6293_v21, %v4578_v53 }
 0x4e3   : > { %v4575_v44 = vmul.f32 %v6295_v23, %v4571_v14  ;;  %v4585_v20 = vmul.f32 %v6295_v23, %v4581_v37 }
 0x4e4   : > { %v4586_v16 = vmul.f32 0.5, %v4574_v32  ;;  %v4600_v47 = vmul.f32 0.5, %v4584_v43 }
 0x4e5   : > { %v4587_v48 = vmul.f32 0.5, %v4575_v44  ;;  %v4601_v34 = vmul.f32 0.5, %v4585_v20 }
 0x4e6   : > { %v4590_v0 = vrot.slane %v4586_v16, 6  ;;  %v4604_v27 = vrot.slane %v4600_v47, 6 }
 0x4e7   : > { %v4591_v56 = vrot.slane %v4587_v48, 6  ;;  %v4605_v11 = vrot.slane %v4601_v34, 6 }
 0x4e8   : > { %v4594_v28 = vsub.f32 %v4543_v55, %v4590_v0  ;;  %v4608_v39 = vsub.f32 %v4555_v9, %v4604_v27  ;;  %v4610_v29 = vsub.f32 %v4557_v6, %v4604_v27  ;;  %v4620_v50 = vadd.f32 %v4590_v0, %v4543_v55 }
 0x4e9   : > { %v4626_v17 = vadd.f32 %v4604_v27, %v4555_v9  ;;  %v4628_v63 = vadd.f32 %v4604_v27, %v4557_v6  ;;  %v4595_v45 = vsub.f32 %v4544_v12, %v4591_v56  ;;  %v4609_v46 = vsub.f32 %v4556_v41, %v4605_v11 }
 0x4ea   : > { %v4596_v4 = vmax.f32 %v4594_v28, 0.0  ;;  %v4612_v52 = vmax.f32 %v4608_v39, 0.0  ;;  %v4614_v8 = vmax.f32 %v4610_v29, 0.0  ;;  %v4622_v59 = vmax.f32 %v4620_v50, 0.0 }
 0x4eb   : > { %v4630_v13 = vmax.f32 %v4626_v17, 0.0  ;;  %v4597_v33 = vmax.f32 %v4595_v45, 0.0  ;;  %v4611_v19 = vsub.f32 %v4558_v22, %v4605_v11  ;;  %v4632_v62 = vmax.f32 %v4628_v63, 0.0 }
 0x4ec   : > { %v4598_v3 = vmin.f32 %v4596_v4, 16.0  ;;  %v4616_v24 = vmin.f32 %v4612_v52, 16.0  ;;  %v4618_v18 = vmin.f32 %v4614_v8, 16.0  ;;  %v4624_v60 = vmin.f32 %v4622_v59, 16.0 }
 0x4ed   : > { %v4599_v2 = vmin.f32 %v4597_v33, 16.0  ;;  %v4613_v7 = vmax.f32 %v4609_v46, 0.0  ;;  %v4615_v31 = vmax.f32 %v4611_v19, 0.0  ;;  %v4621_v54 = vadd.f32 %v4591_v56, %v4544_v12 }
 0x4ee   : > { %v4627_v30 = vadd.f32 %v4605_v11, %v4556_v41  ;;  %v4629_v38 = vadd.f32 %v4605_v11, %v4558_v22  ;;  %v4634_v15 = vmin.f32 %v4630_v13, 16.0  ;;  %v4636_v37 = vmin.f32 %v4632_v62, 16.0 }
 0x4ef   : > { %v4617_v57 = vmin.f32 %v4613_v7, 16.0  ;;  %v4645_v49 = vcombine.low %v4598_v3, %v4599_v2  ;;  %v4646_v42 = vcombine.high %v4598_v3, %v4599_v2  ;;  %v4619_v25 = vmin.f32 %v4615_v31, 16.0 }
 0x4f0   : > { %v4623_v53 = vmax.f32 %v4621_v54, 0.0  ;;  %v4631_v5 = vmax.f32 %v4627_v30, 0.0  ;;  %v4633_v51 = vmax.f32 %v4629_v38, 0.0 }
 0x4f1   : > { %v4853_v21 = vrot.slane %v4645_v49, 11  ;;  %v4652_v35 = vrot.slane %v4646_v42, 7  ;;  %v4660_v26 = vcombine.high %v4616_v24, %v4617_v57  ;;  %v4661_v10 = vcombine.low %v4618_v18, %v4619_v25 }
 0x4f2   : > { %v4625_v40 = vmin.f32 %v4623_v53, 16.0  ;;  %v4635_v61 = vmin.f32 %v4631_v5, 16.0  ;;  %v4637_v23 = vmin.f32 %v4633_v51, 16.0 }
 0x4f3   : > { %v4653_v58 = vsel %vm8409_vm5, %v4853_v21, %v4652_v35  ;;  %v4854_v43 = vrot.slane %v4660_v26, 10  ;;  %v4667_v36 = vrot.slane %v4661_v10, 6 }
 0x4f4   : > { %4655 = vst [vmem:[%s399_s12] sm:$0x77] %v4653_v58  ;;  %v4674_v1 = vcombine.low %v4624_v60, %v4625_v40  ;;  %v4675_v44 = vcombine.high %v4624_v60, %v4625_v40  ;;  %v4687_v20 = vcombine.high %v4634_v15, %v4635_v61  ;;  %v4688_v16 = vcombine.low %v4636_v37, %v4637_v23 }
 0x4f5   : > { %v4668_v47 = vsel %vm8420_vm6, %v4854_v43, %v4667_v36 }
 0x4f6   : > { %v4856_v55 = vrot.slane %v4674_v1, 11  ;;  %v4678_v9 = vrot.slane %v4675_v44, 7  ;;  %v4858_v48 = vrot.slane %v4687_v20, 10  ;;  %4855 = vst [vmem:[%s399_s12 + $0x8] sm:$0x77] %v4668_v47  ;;  %v4691_v34 = vrot.slane %v4688_v16, 6 }
 0x4f8   : > { %v4679_v12 = vsel %vm8409_vm5, %v4856_v55, %v4678_v9  ;;  %v4692_v6 = vsel %vm8420_vm6, %v4858_v48, %v4691_v34 }
 0x4f9   : > { %4857 = vst [vmem:[%s399_s12 + $0x10] sm:$0x77] %v4679_v12  ;;  %4859 = vst [vmem:[%s399_s12 + $0x18] sm:$0x77] %v4692_v6 }
 0x4fa PF: > { %s22_s17 = sadd.s32 1, %s6311_s17  }
 0x4fb   : > { %p19_p4 = scmp.ge.s32.totalorder %s22_s17, 4  }
 0x4fd   :  { %21 = sbr.rel (!%p19_p4) target bundleno = 1 (0x1), region = 111 }

</bundles_post_ra>
